<compile_context>
chip_gen: v7x
topology: tpu7x:2x2x1
jax: 0.10.0
libtpu: 0.0.40
codegen_flags: <defaults>
</compile_context>

<pallas_src>
import functools

import jax
import jax.numpy as jnp
import numpy as np
from jax import lax
from jax.experimental import pallas as pl
from jax.experimental.pallas import tpu as pltpu

# ---- module hyper-params (from the PyTorch source) ----
N_EMBD = 192
NUM_HEADS = 6
HEAD_SIZE = N_EMBD // NUM_HEADS  # 32
BLOCK_SIZE = 128                 # max context; we run T <= BLOCK_SIZE

NEG_INF = -1e30          # large finite negative (avoids NaN if a row were fully masked)
MAX_ROWS_PER_BLOCK = 4   # fixed small cap: amortizes per-step overhead without the
                         # VMEM / unroll cliff (v7x has only 64 MiB VMEM)


def mha_kernel(x_ref, wqkv_ref, wp_ref, b_ref, o_ref, *, num_heads):
    """One grid step = `Bt` batch rows of fused causal MHA + output projection.

    x_ref    : (Bt, T, C)  bf16
    wqkv_ref : (C, 3C)     bf16   [Wq*scale | Wk | Wv], heads stacked along columns
    wp_ref   : (C, C)      bf16   projection weight, pre-transposed (y = cat @ Wp + b)
    b_ref    : (1, C)      f32
    o_ref    : (Bt, T, C)  f32
    """
    Bt, T, C = x_ref.shape
    H = num_heads
    hs = C // H

    wqkv = wqkv_ref[...]          # (C, 3C)
    wp = wp_ref[...]              # (C, C)
    bias = b_ref[...]             # (1, C)

    # ONE lane-dense fused QKV projection for all Bt rows (leading-dim merge is free):
    # amortizes MXU weight pushes and fills the 256-row MXU pass on v6e/v7x.
    x_flat = x_ref[...].reshape(Bt * T, C)                       # bf16
    qkv = jnp.dot(x_flat, wqkv, preferred_element_type=jnp.float32)
    qkv = qkv.astype(jnp.bfloat16)                               # (Bt*T, 3C)

    # causal mask built once: query i attends to key j iff j <= i
    rows = lax.broadcasted_iota(jnp.int32, (T, T), 0)
    cols = lax.broadcasted_iota(jnp.int32, (T, T), 1)
    causal = cols <= rows

    cat_rows = []
    for bi in range(Bt):          # static, Bt <= 4
        qkv_b = qkv[bi * T:(bi + 1) * T]                         # (T, 3C) static slice

        head_outs = []
        for h in range(H):        # static, H = 6
            q = qkv_b[:, h * hs:(h + 1) * hs]                    # scale folded into Wq
            k = qkv_b[:, C + h * hs:C + (h + 1) * hs]
            v = qkv_b[:, 2 * C + h * hs:2 * C + (h + 1) * hs]

            # scores = q @ k^T: contract the head dim directly, no explicit transpose
            s = lax.dot_general(q, k, (((1,), (1,)), ((), ())),
                                preferred_element_type=jnp.float32)   # (T, T)
            s = jnp.where(causal, s, NEG_INF)

            # softmax along keys (kept in f32 for accuracy / v5e friendliness)
            s = s - jnp.max(s, axis=-1, keepdims=True)
            p = jnp.exp(s)
            p = p * pl.reciprocal(jnp.sum(p, axis=-1, keepdims=True), approx=True)

            # attention dropout: identity (eval mode)
            head_outs.append(jnp.dot(p.astype(jnp.bfloat16), v,
                                     preferred_element_type=jnp.float32))  # (T, hs)

        # in-register concat of the 6 heads (no VMEM scratch, no masked 32-lane stores)
        cat_rows.append(jnp.concatenate(head_outs, axis=-1))     # (T, C) f32

    cat = jnp.concatenate(cat_rows, axis=0).astype(jnp.bfloat16)  # (Bt*T, C)

    # ONE lane-dense output projection for all Bt rows; bias broadcast exactly once.
    y = jnp.dot(cat, wp, preferred_element_type=jnp.float32) + bias   # (Bt*T, C)
    # output dropout: identity (eval mode)
    o_ref[...] = y.reshape(Bt, T, C).astype(o_ref.dtype)


def _stack_heads(w):
    """(H, C, hs) -> (C, H*hs) so that column block h equals w[h]."""
    H, C, hs = w.shape
    return jnp.transpose(w, (1, 0, 2)).reshape(C, H * hs)


def _pick_rows_per_block(B):
    """Small fixed cap on rows/step; keep >= 2 grid blocks for dual-TC chips; pad
    odd/prime large B instead of falling back to rows_per_block = 1."""
    if B <= 1:
        return 1, max(B, 1)
    limit = min(MAX_ROWS_PER_BLOCK, B // 2)   # >= 2 grid blocks when B >= 2
    for bt in range(limit, 1, -1):
        if B % bt == 0:
            return bt, B
    if B > MAX_ROWS_PER_BLOCK:
        bt = MAX_ROWS_PER_BLOCK
        b_pad = ((B + bt - 1) // bt) * bt
        return bt, b_pad
    return 1, B


@jax.jit
def multi_head_attention(x, wq, wk, wv, wp_t, bias):
    """x: (B,T,C) f32; wq/wk/wv: (H,C,hs); wp_t: (C,C) pre-transposed; bias: (C,)."""
    B, T, C = x.shape
    H, _, hs = wq.shape

    rows_per_block, b_pad = _pick_rows_per_block(B)

    scale = jnp.float32(C) ** -0.5   # PyTorch module scales by C**-0.5 (C = n_embd)
    wqkv = jnp.concatenate(
        [_stack_heads(wq * scale), _stack_heads(wk), _stack_heads(wv)], axis=1
    ).astype(jnp.bfloat16)           # (C, 3C) — lane-dense fused QKV weight
    wp_bf = wp_t.astype(jnp.bfloat16)
    bias2d = bias.reshape(1, C).astype(jnp.float32)

    x_bf = x.astype(jnp.bfloat16)
    if b_pad != B:
        x_bf = jnp.pad(x_bf, ((0, b_pad - B), (0, 0), (0, 0)))
    grid = (b_pad // rows_per_block,)

    kernel = functools.partial(mha_kernel, num_heads=H)

    out = pl.pallas_call(
        kernel,
        out_shape=jax.ShapeDtypeStruct((b_pad, T, C), jnp.float32),
        grid_spec=pltpu.PrefetchScalarGridSpec(
            num_scalar_prefetch=0,
            grid=grid,
            in_specs=[
                pl.BlockSpec((rows_per_block, T, C), lambda b: (b, 0, 0)),
                pl.BlockSpec((C, 3 * C), lambda b: (0, 0)),
                pl.BlockSpec((C, C), lambda b: (0, 0)),
                pl.BlockSpec((1, C), lambda b: (0, 0)),
            ],
            out_specs=pl.BlockSpec((rows_per_block, T, C), lambda b: (b, 0, 0)),
        ),
        compiler_params=pltpu.CompilerParams(
            dimension_semantics=("parallel",)),
    )(x_bf, wqkv, wp_bf, bias2d)

    if b_pad != B:
        out = out[:B]
    return out


def reference_mha(x, wq, wk, wv, wp_t, bias):
    """Pure-JAX f32 reference mirroring the PyTorch forward (eval mode)."""
    B, T, C = x.shape
    H = wq.shape[0]
    scale = C ** -0.5
    tril = jnp.tril(jnp.ones((T, T), dtype=bool))
    outs = []
    for h in range(H):
        q = x @ wq[h]
        k = x @ wk[h]
        v = x @ wv[h]
        wei = (q @ jnp.swapaxes(k, -2, -1)) * scale
        wei = jnp.where(tril, wei, -jnp.inf)
        wei = jax.nn.softmax(wei, axis=-1)
        outs.append(wei @ v)
    cat = jnp.concatenate(outs, axis=-1)
    return cat @ wp_t + bias


if __name__ == "__main__":
    key = jax.random.PRNGKey(0)
    B, T, C, H, hs = 2, BLOCK_SIZE, N_EMBD, NUM_HEADS, HEAD_SIZE

    kx, kq, kk, kv, kp, kb = jax.random.split(key, 6)
    x = jax.random.normal(kx, (B, T, C), dtype=jnp.float32)

    # deterministic "Linear" weights; stored pre-transposed for x @ W
    lim = 1.0 / np.sqrt(C)
    wq = jax.random.uniform(kq, (H, C, hs), jnp.float32, -lim, lim)
    wk = jax.random.uniform(kk, (H, C, hs), jnp.float32, -lim, lim)
    wv = jax.random.uniform(kv, (H, C, hs), jnp.float32, -lim, lim)
    wp_t = jax.random.uniform(kp, (C, C), jnp.float32, -lim, lim)   # proj weight (transposed)
    bias = jax.random.uniform(kb, (C,), jnp.float32, -lim, lim)

    out = jax.block_until_ready(multi_head_attention(x, wq, wk, wv, wp_t, bias))

    ref = reference_mha(x, wq, wk, wv, wp_t, bias)
    # bf16 matmul inputs (f32 accumulation) + approx reciprocal: relaxed tolerance
    np.testing.assert_allclose(np.asarray(out), np.asarray(ref), rtol=2e-2, atol=2e-2)

    print("KERNEL_OK")
</pallas_src>

<mosaic_0001>
module attributes {stable_mosaic.version = 11 : i64} {
  func.func @mha_kernel(%arg0: i32, %arg1: memref<1x128x192xbf16, #tpu.memory_space<vmem>>, %arg2: memref<192x576xbf16, #tpu.memory_space<vmem>>, %arg3: memref<192x192xbf16, #tpu.memory_space<vmem>>, %arg4: memref<1x192xf32, #tpu.memory_space<vmem>>, %arg5: memref<1x128x192xf32, #tpu.memory_space<vmem>>) attributes {dimension_semantics = [#tpu.dimension_semantics<parallel>], iteration_bounds = array<i64: 2>, scalar_prefetch = 0 : i64, scratch_operands = 0 : i64, tpu.core_type = #tpu.core_type<tc>, window_params = [{transform_indices = @transform_0, window_bounds = array<i64: 1, 128, 192>}, {pipeline_mode = #tpu.pipeline_mode<synchronous>, transform_indices = @transform_1, window_bounds = array<i64: 192, 576>}, {pipeline_mode = #tpu.pipeline_mode<synchronous>, transform_indices = @transform_2, window_bounds = array<i64: 192, 192>}, {pipeline_mode = #tpu.pipeline_mode<synchronous>, transform_indices = @transform_3, window_bounds = array<i64: 1, 192>}, {transform_indices = @transform_4, window_bounds = array<i64: 1, 128, 192>}]} {
    %c0 = arith.constant 0 : index
    %c0_0 = arith.constant 0 : index
    %0 = vector.load %arg2[%c0, %c0_0] : memref<192x576xbf16, #tpu.memory_space<vmem>>, vector<192x576xbf16>
    %c0_1 = arith.constant 0 : index
    %c0_2 = arith.constant 0 : index
    %1 = vector.load %arg3[%c0_1, %c0_2] : memref<192x192xbf16, #tpu.memory_space<vmem>>, vector<192x192xbf16>
    %c0_3 = arith.constant 0 : index
    %c0_4 = arith.constant 0 : index
    %2 = vector.load %arg4[%c0_3, %c0_4] : memref<1x192xf32, #tpu.memory_space<vmem>>, vector<1x192xf32>
    %c0_5 = arith.constant 0 : index
    %c0_6 = arith.constant 0 : index
    %c0_7 = arith.constant 0 : index
    %3 = vector.load %arg1[%c0_5, %c0_6, %c0_7] : memref<1x128x192xbf16, #tpu.memory_space<vmem>>, vector<1x128x192xbf16>
    %4 = vector.shape_cast %3 : vector<1x128x192xbf16> to vector<128x192xbf16>
    %cst = arith.constant dense<0.000000e+00> : vector<128x576xf32>
    %5 = tpu.matmul %4, %0, %cst {dimension_numbers = #tpu.dot_dimension_numbers<[1], [0], [0], [1], [0, 0, 1, 1], [], []>} : vector<128x192xbf16>, vector<192x576xbf16>, vector<128x576xf32> -> vector<128x576xf32>
    %6 = arith.truncf %5 : vector<128x576xf32> to vector<128x576xbf16>
    %7 = tpu.iota {dimensions = array<i32: 0>} : vector<128x128xi32>
    %8 = tpu.iota {dimensions = array<i32: 1>} : vector<128x128xi32>
    %9 = arith.cmpi sle, %8, %7 : vector<128x128xi32>
    %10 = vector.extract_strided_slice %6 {offsets = [0, 0], sizes = [128, 32], strides = [1, 1]} : vector<128x576xbf16> to vector<128x32xbf16>
    %11 = vector.extract_strided_slice %6 {offsets = [0, 192], sizes = [128, 32], strides = [1, 1]} : vector<128x576xbf16> to vector<128x32xbf16>
    %12 = vector.extract_strided_slice %6 {offsets = [0, 384], sizes = [128, 32], strides = [1, 1]} : vector<128x576xbf16> to vector<128x32xbf16>
    %cst_8 = arith.constant dense<0.000000e+00> : vector<128x128xf32>
    %13 = tpu.matmul %10, %11, %cst_8 {dimension_numbers = #tpu.dot_dimension_numbers<[1], [1], [0], [0], [0, 0, 1, 0], [], []>} : vector<128x32xbf16>, vector<128x32xbf16>, vector<128x128xf32> -> vector<128x128xf32>
    %cst_9 = arith.constant -1.000000e+30 : f32
    %14 = vector.broadcast %cst_9 : f32 to vector<128x128xf32>
    %15 = arith.select %9, %13, %14 : vector<128x128xi1>, vector<128x128xf32>
    %cst_10 = arith.constant dense<0xFF800000> : vector<128xf32>
    %16 = vector.multi_reduction <maximumf>, %15, %cst_10 [1] : vector<128x128xf32> to vector<128xf32>
    %17 = vector.shape_cast %16 : vector<128xf32> to vector<128x1xf32>
    %18 = vector.broadcast %17 : vector<128x1xf32> to vector<128x128xf32>
    %19 = arith.subf %15, %18 : vector<128x128xf32>
    %20 = math.exp %19 : vector<128x128xf32>
    %cst_11 = arith.constant dense<0.000000e+00> : vector<128xf32>
    %21 = vector.multi_reduction <add>, %20, %cst_11 [1] : vector<128x128xf32> to vector<128xf32>
    %22 = vector.shape_cast %21 : vector<128xf32> to vector<128x1xf32>
    %23 = tpu.reciprocal %22 {approx = true} : vector<128x1xf32> -> vector<128x1xf32>
    %24 = vector.broadcast %23 : vector<128x1xf32> to vector<128x128xf32>
    %25 = arith.mulf %20, %24 : vector<128x128xf32>
    %26 = arith.truncf %25 : vector<128x128xf32> to vector<128x128xbf16>
    %cst_12 = arith.constant dense<0.000000e+00> : vector<128x32xf32>
    %27 = tpu.matmul %26, %12, %cst_12 {dimension_numbers = #tpu.dot_dimension_numbers<[1], [0], [0], [1], [0, 0, 1, 1], [], []>} : vector<128x128xbf16>, vector<128x32xbf16>, vector<128x32xf32> -> vector<128x32xf32>
    %28 = vector.extract_strided_slice %6 {offsets = [0, 32], sizes = [128, 32], strides = [1, 1]} : vector<128x576xbf16> to vector<128x32xbf16>
    %29 = vector.extract_strided_slice %6 {offsets = [0, 224], sizes = [128, 32], strides = [1, 1]} : vector<128x576xbf16> to vector<128x32xbf16>
    %30 = vector.extract_strided_slice %6 {offsets = [0, 416], sizes = [128, 32], strides = [1, 1]} : vector<128x576xbf16> to vector<128x32xbf16>
    %cst_13 = arith.constant dense<0.000000e+00> : vector<128x128xf32>
    %31 = tpu.matmul %28, %29, %cst_13 {dimension_numbers = #tpu.dot_dimension_numbers<[1], [1], [0], [0], [0, 0, 1, 0], [], []>} : vector<128x32xbf16>, vector<128x32xbf16>, vector<128x128xf32> -> vector<128x128xf32>
    %cst_14 = arith.constant -1.000000e+30 : f32
    %32 = vector.broadcast %cst_14 : f32 to vector<128x128xf32>
    %33 = arith.select %9, %31, %32 : vector<128x128xi1>, vector<128x128xf32>
    %cst_15 = arith.constant dense<0xFF800000> : vector<128xf32>
    %34 = vector.multi_reduction <maximumf>, %33, %cst_15 [1] : vector<128x128xf32> to vector<128xf32>
    %35 = vector.shape_cast %34 : vector<128xf32> to vector<128x1xf32>
    %36 = vector.broadcast %35 : vector<128x1xf32> to vector<128x128xf32>
    %37 = arith.subf %33, %36 : vector<128x128xf32>
    %38 = math.exp %37 : vector<128x128xf32>
    %cst_16 = arith.constant dense<0.000000e+00> : vector<128xf32>
    %39 = vector.multi_reduction <add>, %38, %cst_16 [1] : vector<128x128xf32> to vector<128xf32>
    %40 = vector.shape_cast %39 : vector<128xf32> to vector<128x1xf32>
    %41 = tpu.reciprocal %40 {approx = true} : vector<128x1xf32> -> vector<128x1xf32>
    %42 = vector.broadcast %41 : vector<128x1xf32> to vector<128x128xf32>
    %43 = arith.mulf %38, %42 : vector<128x128xf32>
    %44 = arith.truncf %43 : vector<128x128xf32> to vector<128x128xbf16>
    %cst_17 = arith.constant dense<0.000000e+00> : vector<128x32xf32>
    %45 = tpu.matmul %44, %30, %cst_17 {dimension_numbers = #tpu.dot_dimension_numbers<[1], [0], [0], [1], [0, 0, 1, 1], [], []>} : vector<128x128xbf16>, vector<128x32xbf16>, vector<128x32xf32> -> vector<128x32xf32>
    %46 = vector.extract_strided_slice %6 {offsets = [0, 64], sizes = [128, 32], strides = [1, 1]} : vector<128x576xbf16> to vector<128x32xbf16>
    %47 = vector.extract_strided_slice %6 {offsets = [0, 256], sizes = [128, 32], strides = [1, 1]} : vector<128x576xbf16> to vector<128x32xbf16>
    %48 = vector.extract_strided_slice %6 {offsets = [0, 448], sizes = [128, 32], strides = [1, 1]} : vector<128x576xbf16> to vector<128x32xbf16>
    %cst_18 = arith.constant dense<0.000000e+00> : vector<128x128xf32>
    %49 = tpu.matmul %46, %47, %cst_18 {dimension_numbers = #tpu.dot_dimension_numbers<[1], [1], [0], [0], [0, 0, 1, 0], [], []>} : vector<128x32xbf16>, vector<128x32xbf16>, vector<128x128xf32> -> vector<128x128xf32>
    %cst_19 = arith.constant -1.000000e+30 : f32
    %50 = vector.broadcast %cst_19 : f32 to vector<128x128xf32>
    %51 = arith.select %9, %49, %50 : vector<128x128xi1>, vector<128x128xf32>
    %cst_20 = arith.constant dense<0xFF800000> : vector<128xf32>
    %52 = vector.multi_reduction <maximumf>, %51, %cst_20 [1] : vector<128x128xf32> to vector<128xf32>
    %53 = vector.shape_cast %52 : vector<128xf32> to vector<128x1xf32>
    %54 = vector.broadcast %53 : vector<128x1xf32> to vector<128x128xf32>
    %55 = arith.subf %51, %54 : vector<128x128xf32>
    %56 = math.exp %55 : vector<128x128xf32>
    %cst_21 = arith.constant dense<0.000000e+00> : vector<128xf32>
    %57 = vector.multi_reduction <add>, %56, %cst_21 [1] : vector<128x128xf32> to vector<128xf32>
    %58 = vector.shape_cast %57 : vector<128xf32> to vector<128x1xf32>
    %59 = tpu.reciprocal %58 {approx = true} : vector<128x1xf32> -> vector<128x1xf32>
    %60 = vector.broadcast %59 : vector<128x1xf32> to vector<128x128xf32>
    %61 = arith.mulf %56, %60 : vector<128x128xf32>
    %62 = arith.truncf %61 : vector<128x128xf32> to vector<128x128xbf16>
    %cst_22 = arith.constant dense<0.000000e+00> : vector<128x32xf32>
    %63 = tpu.matmul %62, %48, %cst_22 {dimension_numbers = #tpu.dot_dimension_numbers<[1], [0], [0], [1], [0, 0, 1, 1], [], []>} : vector<128x128xbf16>, vector<128x32xbf16>, vector<128x32xf32> -> vector<128x32xf32>
    %64 = vector.extract_strided_slice %6 {offsets = [0, 96], sizes = [128, 32], strides = [1, 1]} : vector<128x576xbf16> to vector<128x32xbf16>
    %65 = vector.extract_strided_slice %6 {offsets = [0, 288], sizes = [128, 32], strides = [1, 1]} : vector<128x576xbf16> to vector<128x32xbf16>
    %66 = vector.extract_strided_slice %6 {offsets = [0, 480], sizes = [128, 32], strides = [1, 1]} : vector<128x576xbf16> to vector<128x32xbf16>
    %cst_23 = arith.constant dense<0.000000e+00> : vector<128x128xf32>
    %67 = tpu.matmul %64, %65, %cst_23 {dimension_numbers = #tpu.dot_dimension_numbers<[1], [1], [0], [0], [0, 0, 1, 0], [], []>} : vector<128x32xbf16>, vector<128x32xbf16>, vector<128x128xf32> -> vector<128x128xf32>
    %cst_24 = arith.constant -1.000000e+30 : f32
    %68 = vector.broadcast %cst_24 : f32 to vector<128x128xf32>
    %69 = arith.select %9, %67, %68 : vector<128x128xi1>, vector<128x128xf32>
    %cst_25 = arith.constant dense<0xFF800000> : vector<128xf32>
    %70 = vector.multi_reduction <maximumf>, %69, %cst_25 [1] : vector<128x128xf32> to vector<128xf32>
    %71 = vector.shape_cast %70 : vector<128xf32> to vector<128x1xf32>
    %72 = vector.broadcast %71 : vector<128x1xf32> to vector<128x128xf32>
    %73 = arith.subf %69, %72 : vector<128x128xf32>
    %74 = math.exp %73 : vector<128x128xf32>
    %cst_26 = arith.constant dense<0.000000e+00> : vector<128xf32>
    %75 = vector.multi_reduction <add>, %74, %cst_26 [1] : vector<128x128xf32> to vector<128xf32>
    %76 = vector.shape_cast %75 : vector<128xf32> to vector<128x1xf32>
    %77 = tpu.reciprocal %76 {approx = true} : vector<128x1xf32> -> vector<128x1xf32>
    %78 = vector.broadcast %77 : vector<128x1xf32> to vector<128x128xf32>
    %79 = arith.mulf %74, %78 : vector<128x128xf32>
    %80 = arith.truncf %79 : vector<128x128xf32> to vector<128x128xbf16>
    %cst_27 = arith.constant dense<0.000000e+00> : vector<128x32xf32>
    %81 = tpu.matmul %80, %66, %cst_27 {dimension_numbers = #tpu.dot_dimension_numbers<[1], [0], [0], [1], [0, 0, 1, 1], [], []>} : vector<128x128xbf16>, vector<128x32xbf16>, vector<128x32xf32> -> vector<128x32xf32>
    %82 = vector.extract_strided_slice %6 {offsets = [0, 128], sizes = [128, 32], strides = [1, 1]} : vector<128x576xbf16> to vector<128x32xbf16>
    %83 = vector.extract_strided_slice %6 {offsets = [0, 320], sizes = [128, 32], strides = [1, 1]} : vector<128x576xbf16> to vector<128x32xbf16>
    %84 = vector.extract_strided_slice %6 {offsets = [0, 512], sizes = [128, 32], strides = [1, 1]} : vector<128x576xbf16> to vector<128x32xbf16>
    %cst_28 = arith.constant dense<0.000000e+00> : vector<128x128xf32>
    %85 = tpu.matmul %82, %83, %cst_28 {dimension_numbers = #tpu.dot_dimension_numbers<[1], [1], [0], [0], [0, 0, 1, 0], [], []>} : vector<128x32xbf16>, vector<128x32xbf16>, vector<128x128xf32> -> vector<128x128xf32>
    %cst_29 = arith.constant -1.000000e+30 : f32
    %86 = vector.broadcast %cst_29 : f32 to vector<128x128xf32>
    %87 = arith.select %9, %85, %86 : vector<128x128xi1>, vector<128x128xf32>
    %cst_30 = arith.constant dense<0xFF800000> : vector<128xf32>
    %88 = vector.multi_reduction <maximumf>, %87, %cst_30 [1] : vector<128x128xf32> to vector<128xf32>
    %89 = vector.shape_cast %88 : vector<128xf32> to vector<128x1xf32>
    %90 = vector.broadcast %89 : vector<128x1xf32> to vector<128x128xf32>
    %91 = arith.subf %87, %90 : vector<128x128xf32>
    %92 = math.exp %91 : vector<128x128xf32>
    %cst_31 = arith.constant dense<0.000000e+00> : vector<128xf32>
    %93 = vector.multi_reduction <add>, %92, %cst_31 [1] : vector<128x128xf32> to vector<128xf32>
    %94 = vector.shape_cast %93 : vector<128xf32> to vector<128x1xf32>
    %95 = tpu.reciprocal %94 {approx = true} : vector<128x1xf32> -> vector<128x1xf32>
    %96 = vector.broadcast %95 : vector<128x1xf32> to vector<128x128xf32>
    %97 = arith.mulf %92, %96 : vector<128x128xf32>
    %98 = arith.truncf %97 : vector<128x128xf32> to vector<128x128xbf16>
    %cst_32 = arith.constant dense<0.000000e+00> : vector<128x32xf32>
    %99 = tpu.matmul %98, %84, %cst_32 {dimension_numbers = #tpu.dot_dimension_numbers<[1], [0], [0], [1], [0, 0, 1, 1], [], []>} : vector<128x128xbf16>, vector<128x32xbf16>, vector<128x32xf32> -> vector<128x32xf32>
    %100 = vector.extract_strided_slice %6 {offsets = [0, 160], sizes = [128, 32], strides = [1, 1]} : vector<128x576xbf16> to vector<128x32xbf16>
    %101 = vector.extract_strided_slice %6 {offsets = [0, 352], sizes = [128, 32], strides = [1, 1]} : vector<128x576xbf16> to vector<128x32xbf16>
    %102 = vector.extract_strided_slice %6 {offsets = [0, 544], sizes = [128, 32], strides = [1, 1]} : vector<128x576xbf16> to vector<128x32xbf16>
    %cst_33 = arith.constant dense<0.000000e+00> : vector<128x128xf32>
    %103 = tpu.matmul %100, %101, %cst_33 {dimension_numbers = #tpu.dot_dimension_numbers<[1], [1], [0], [0], [0, 0, 1, 0], [], []>} : vector<128x32xbf16>, vector<128x32xbf16>, vector<128x128xf32> -> vector<128x128xf32>
    %cst_34 = arith.constant -1.000000e+30 : f32
    %104 = vector.broadcast %cst_34 : f32 to vector<128x128xf32>
    %105 = arith.select %9, %103, %104 : vector<128x128xi1>, vector<128x128xf32>
    %cst_35 = arith.constant dense<0xFF800000> : vector<128xf32>
    %106 = vector.multi_reduction <maximumf>, %105, %cst_35 [1] : vector<128x128xf32> to vector<128xf32>
    %107 = vector.shape_cast %106 : vector<128xf32> to vector<128x1xf32>
    %108 = vector.broadcast %107 : vector<128x1xf32> to vector<128x128xf32>
    %109 = arith.subf %105, %108 : vector<128x128xf32>
    %110 = math.exp %109 : vector<128x128xf32>
    %cst_36 = arith.constant dense<0.000000e+00> : vector<128xf32>
    %111 = vector.multi_reduction <add>, %110, %cst_36 [1] : vector<128x128xf32> to vector<128xf32>
    %112 = vector.shape_cast %111 : vector<128xf32> to vector<128x1xf32>
    %113 = tpu.reciprocal %112 {approx = true} : vector<128x1xf32> -> vector<128x1xf32>
    %114 = vector.broadcast %113 : vector<128x1xf32> to vector<128x128xf32>
    %115 = arith.mulf %110, %114 : vector<128x128xf32>
    %116 = arith.truncf %115 : vector<128x128xf32> to vector<128x128xbf16>
    %cst_37 = arith.constant dense<0.000000e+00> : vector<128x32xf32>
    %117 = tpu.matmul %116, %102, %cst_37 {dimension_numbers = #tpu.dot_dimension_numbers<[1], [0], [0], [1], [0, 0, 1, 1], [], []>} : vector<128x128xbf16>, vector<128x32xbf16>, vector<128x32xf32> -> vector<128x32xf32>
    %118 = tpu.concatenate %27, %45, %63, %81, %99, %117 in 1 : vector<128x32xf32>, vector<128x32xf32>, vector<128x32xf32>, vector<128x32xf32>, vector<128x32xf32>, vector<128x32xf32> -> vector<128x192xf32>
    %119 = arith.truncf %118 : vector<128x192xf32> to vector<128x192xbf16>
    %cst_38 = arith.constant dense<0.000000e+00> : vector<128x192xf32>
    %120 = tpu.matmul %119, %1, %cst_38 {dimension_numbers = #tpu.dot_dimension_numbers<[1], [0], [0], [1], [0, 0, 1, 1], [], []>} : vector<128x192xbf16>, vector<192x192xbf16>, vector<128x192xf32> -> vector<128x192xf32>
    %121 = vector.broadcast %2 : vector<1x192xf32> to vector<128x192xf32>
    %122 = arith.addf %120, %121 : vector<128x192xf32>
    %123 = vector.shape_cast %122 : vector<128x192xf32> to vector<1x128x192xf32>
    %c0_39 = arith.constant 0 : index
    %c0_40 = arith.constant 0 : index
    %c0_41 = arith.constant 0 : index
    %124 = vector.load %arg5[%c0_39, %c0_40, %c0_41] : memref<1x128x192xf32, #tpu.memory_space<vmem>>, vector<1x128x192xf32>
    tpu.vector_store %arg5[%c0_39, %c0_40, %c0_41], %123 {strides = array<i32>} : memref<1x128x192xf32, #tpu.memory_space<vmem>>, vector<1x128x192xf32>,
    return
  }
  func.func @transform_0(%arg0: i32) -> (i32, i32, i32) {
    %c0_i32 = arith.constant 0 : i32
    %c0_i32_0 = arith.constant 0 : i32
    %c0_i32_1 = arith.constant 0 : i32
    return %arg0, %c0_i32, %c0_i32_0 : i32, i32, i32
  }
  func.func @transform_1(%arg0: i32) -> (i32, i32) {
    %c0_i32 = arith.constant 0 : i32
    %c0_i32_0 = arith.constant 0 : i32
    %c0_i32_1 = arith.constant 0 : i32
    return %c0_i32, %c0_i32_0 : i32, i32
  }
  func.func @transform_2(%arg0: i32) -> (i32, i32) {
    %c0_i32 = arith.constant 0 : i32
    %c0_i32_0 = arith.constant 0 : i32
    %c0_i32_1 = arith.constant 0 : i32
    return %c0_i32, %c0_i32_0 : i32, i32
  }
  func.func @transform_3(%arg0: i32) -> (i32, i32) {
    %c0_i32 = arith.constant 0 : i32
    %c0_i32_0 = arith.constant 0 : i32
    %c0_i32_1 = arith.constant 0 : i32
    return %c0_i32, %c0_i32_0 : i32, i32
  }
  func.func @transform_4(%arg0: i32) -> (i32, i32, i32) {
    %c0_i32 = arith.constant 0 : i32
    %c0_i32_0 = arith.constant 0 : i32
    %c0_i32_1 = arith.constant 0 : i32
    return %arg0, %c0_i32, %c0_i32_0 : i32, i32, i32
  }
}

</mosaic_0001>

<bundles_post_ra>
// kernel: multi_head_attention.1
= control target key start
LH: loop header
LB: loop body
LE: loop exit
PB: predicated region body
PF: predicated region fallthrough
CT: control target
= control target key end

     0   :  { %s6106_s15 = smov 0   ;;  %s8795_s0 = inlined_call_operand.vmem [shape: bf16[2,128,192], index: 0, kind: input, shape index: {}]   ;;  %s8796_s1 = inlined_call_operand.vmem [shape: bf16[192,576], index: 1, kind: input, shape index: {}]   ;;  %s8797_s2 = inlined_call_operand.vmem [shape: bf16[192,192], index: 2, kind: input, shape index: {}]   ;;  %s8798_s3 = inlined_call_operand.vmem [shape: f32[1,192], index: 3, kind: input, shape index: {}]   ;;  %s8799_s4 = inlined_call_operand.vmem [shape: f32[2,128,192], index: 4, kind: output, shape index: {}]  }
   0x1 LB: > { %s4552_s16 = sadd.s32 4294967295, %s6075_s15   ;;  %p4556_p0 = scmp.ge.s32.totalorder %s6075_s15, 1  ;;  %s6075_s15 = sphi %s6106_s15, %s14_s15  }
   0x2   : > { %p162_p1 = scmp.lt.s32.totalorder %s6075_s15, 3 }
   0x4   : > { %p163_p2 = pnand %p4556_p0, %p162_p1 }
   0x6   : > { %166 = sbr.rel (%p163_p2) target bundleno = 3222 (0xc96), region = 36 }
   0xd   : > { %v5541_v0 = vld [vmem:[%s8796_s1 + $0x4] ss:$20 sps:$4 sm:$0xff]   ;;  %v5543_v1 = vld [vmem:[%s8796_s1] ss:$20 sps:$4 sm:$0xff]   ;;  %p188_p3 = scmp.lt.s32.totalorder %s4552_s16, 1  ;;  %vm8838_vm0 = vcmask 523264  }
   0xe   : > { %721 = vmatprep.subr.bf16.mxu0 %v5541_v0  ;;  %v5544_v2 = vld [vmem:[%s8796_s1 + $0x2c] ss:$20 sps:$4 sm:$0xff]   ;;  %v5546_v3 = vld [vmem:[%s8796_s1 + $0x28] ss:$20 sps:$4 sm:$0xff]   ;;  %v5549_v5 = vld [vmem:[%s8796_s1 + $0x50] ss:$20 sps:$4 sm:$0xff]  }
   0xf   : > { %722 = vmatpush1.bf16.msra.mxu0 %v5543_v1  ;;  %v5547_v4 = vld [vmem:[%s8796_s1 + $0x54] ss:$20 sps:$4 sm:$0xff]   ;;  %s9493_s16 = smov (!%p188_p3, %s4552_s16), 1  ;;  %v5550_v6 = vld [vmem:[%s8796_s1 + $0x7c] ss:$20 sps:$4 sm:$0xff]   ;;  %v6077_v1 = vmov 0  }
  0x10   : > { %723 = vmatprep.subr.bf16.mxu0 %v5544_v2  ;;  %s4743_s5 = sshll.u32 %s9493_s16, 7  ;;  %v5552_v7 = vld [vmem:[%s8796_s1 + $0x78] ss:$20 sps:$4 sm:$0xff]   ;;  %v5555_v9 = vld [vmem:[%s8796_s1 + $0xa0] ss:$20 sps:$4 sm:$0xff]   ;;  %vm8841_vm1 = vcmask 261120  }
  0x11   : > { %v5553_v8 = vld [vmem:[%s8796_s1 + $0xa4] ss:$20 sps:$4 sm:$0xff]   ;;  %s6147_s12 = scalar_lea.vmem %s8795_s0, %s4743_s5  ;;  %v5556_v10 = vld [vmem:[%s8796_s1 + $0xcc] ss:$20 sps:$4 sm:$0xff]   ;;  %v5558_v12 = vld [vmem:[%s8796_s1 + $0xc8] ss:$20 sps:$4 sm:$0xff]  }
  0x12   : > { %v6156_v11 = vld [vmem:[%s6147_s12 + $0x4] ss:$8 sps:$4 sm:$0xff]   ;;  %v5559_v13 = vld [vmem:[%s8796_s1 + $0xf4] ss:$20 sps:$4 sm:$0xff]   ;;  %v5562_v15 = vld [vmem:[%s8796_s1 + $0x11c] ss:$20 sps:$4 sm:$0xff]  }
  0x13   : > { %724 = vmatpush1.bf16.msra.mxu0 %v5546_v3  ;;  %4637 = vmatprep.mubr.msk.bf16.mxu0 %vm8838_vm0, %v6156_v11  ;;  %v5561_v14 = vld [vmem:[%s8796_s1 + $0xf0] ss:$20 sps:$4 sm:$0xff]   ;;  %v5564_v16 = vld [vmem:[%s8796_s1 + $0x118] ss:$20 sps:$4 sm:$0xff]   ;;  %v5603_v19 = vld [vmem:[%s8796_s1 + $0x8] ss:$20 sps:$4 sm:$0xff]  }
  0x14   : > { %725 = vmatprep.subr.bf16.mxu0 %v5547_v4  ;;  %4645 = vmatprep.mubr.msk.bf16.mxu1 %vm8838_vm0, %v6156_v11  ;;  %v5565_v17 = vld [vmem:[%s8796_s1 + $0x144] ss:$20 sps:$4 sm:$0xff]   ;;  %v5601_v18 = vld [vmem:[%s8796_s1 + $0xc] ss:$20 sps:$4 sm:$0xff]   ;;  %v5604_v20 = vld [vmem:[%s8796_s1 + $0x34] ss:$20 sps:$4 sm:$0xff]  }
  0x15   : > { %834 = vmatprep.subr.bf16.mxu1 %v5601_v18  ;;  %v5606_v21 = vld [vmem:[%s8796_s1 + $0x30] ss:$20 sps:$4 sm:$0xff]   ;;  %v5567_v22 = vld [vmem:[%s8796_s1 + $0x140] ss:$20 sps:$4 sm:$0xff]   ;;  %v5609_v25 = vld [vmem:[%s8796_s1 + $0x58] ss:$20 sps:$4 sm:$0xff]  }
  0x16   : > { %835 = vmatpush1.bf16.msra.mxu1 %v5603_v19  ;;  %v5607_v23 = vld [vmem:[%s8796_s1 + $0x5c] ss:$20 sps:$4 sm:$0xff]   ;;  %v5568_v24 = vld [vmem:[%s8796_s1 + $0x16c] ss:$20 sps:$4 sm:$0xff]   ;;  %v5610_v27 = vld [vmem:[%s8796_s1 + $0x84] ss:$20 sps:$4 sm:$0xff]  }
  0x17   : > { %726 = vmatpush1.bf16.msra.mxu0 %v5549_v5  ;;  %836 = vmatprep.subr.bf16.mxu1 %v5604_v20  ;;  %v5570_v26 = vld [vmem:[%s8796_s1 + $0x168] ss:$20 sps:$4 sm:$0xff]   ;;  %v5612_v29 = vld [vmem:[%s8796_s1 + $0x80] ss:$20 sps:$4 sm:$0xff]   ;;  %v5573_v30 = vld [vmem:[%s8796_s1 + $0x190] ss:$20 sps:$4 sm:$0xff]  }
  0x18   : > { %727 = vmatprep.subr.bf16.mxu0 %v5550_v6  ;;  %v5571_v28 = vld [vmem:[%s8796_s1 + $0x194] ss:$20 sps:$4 sm:$0xff]   ;;  %v5613_v31 = vld [vmem:[%s8796_s1 + $0xac] ss:$20 sps:$4 sm:$0xff]   ;;  %v5574_v32 = vld [vmem:[%s8796_s1 + $0x1bc] ss:$20 sps:$4 sm:$0xff]  }
  0x19   : > { %v5576_v33 = vld [vmem:[%s8796_s1 + $0x1b8] ss:$20 sps:$4 sm:$0xff]   ;;  %v5615_v34 = vld [vmem:[%s8796_s1 + $0xa8] ss:$20 sps:$4 sm:$0xff]   ;;  %v5618_v37 = vld [vmem:[%s8796_s1 + $0xd0] ss:$20 sps:$4 sm:$0xff]  }
  0x1a   : > { %837 = vmatpush1.bf16.msra.mxu1 %v5606_v21  ;;  %v5616_v35 = vld [vmem:[%s8796_s1 + $0xd4] ss:$20 sps:$4 sm:$0xff]   ;;  %v5619_v39 = vld [vmem:[%s8796_s1 + $0xfc] ss:$20 sps:$4 sm:$0xff]   ;;  %v5621_v40 = vld [vmem:[%s8796_s1 + $0xf8] ss:$20 sps:$4 sm:$0xff]  }
  0x1b   : > { %728 = vmatpush1.bf16.msra.mxu0 %v5552_v7  ;;  %838 = vmatprep.subr.bf16.mxu1 %v5607_v23  ;;  %v6235_v36 = vld [vmem:[%s6147_s12] ss:$8 sps:$4 sm:$0xff]   ;;  %v6241_v38 = vld [vmem:[%s6147_s12 + $0x14] ss:$8 sps:$4 sm:$0xff]   ;;  %v5622_v41 = vld [vmem:[%s8796_s1 + $0x124] ss:$20 sps:$4 sm:$0xff]  }
  0x1c   : > { %729 = vmatprep.subr.bf16.mxu0 %v5553_v8  ;;  %v6256_v42 = vld [vmem:[%s6147_s12 + $0x10] ss:$8 sps:$4 sm:$0xff]   ;;  %v5624_v43 = vld [vmem:[%s8796_s1 + $0x120] ss:$20 sps:$4 sm:$0xff]   ;;  %v6262_v44 = vld [vmem:[%s6147_s12 + $0x24] ss:$8 sps:$4 sm:$0xff]  }
  0x1d   : > { %v5625_v45 = vld [vmem:[%s8796_s1 + $0x14c] ss:$20 sps:$4 sm:$0xff]   ;;  %v5627_v46 = vld [vmem:[%s8796_s1 + $0x148] ss:$20 sps:$4 sm:$0xff]   ;;  %v5630_v49 = vld [vmem:[%s8796_s1 + $0x170] ss:$20 sps:$4 sm:$0xff]  }
  0x1e   : > { %839 = vmatpush1.bf16.msra.mxu1 %v5609_v25  ;;  %v5628_v47 = vld [vmem:[%s8796_s1 + $0x174] ss:$20 sps:$4 sm:$0xff]   ;;  %v5631_v51 = vld [vmem:[%s8796_s1 + $0x19c] ss:$20 sps:$4 sm:$0xff]   ;;  %v5633_v52 = vld [vmem:[%s8796_s1 + $0x198] ss:$20 sps:$4 sm:$0xff]  }
  0x1f   : > { %730 = vmatpush1.bf16.msra.mxu0 %v5555_v9  ;;  %840 = vmatprep.subr.bf16.mxu1 %v5610_v27  ;;  %v6277_v48 = vld [vmem:[%s6147_s12 + $0x20] ss:$8 sps:$4 sm:$0xff]   ;;  %v6283_v50 = vld [vmem:[%s6147_s12 + $0x34] ss:$8 sps:$4 sm:$0xff]   ;;  %v5634_v53 = vld [vmem:[%s8796_s1 + $0x1c4] ss:$20 sps:$4 sm:$0xff]  }
  0x20   : > { %731 = vmatprep.subr.bf16.mxu0 %v5556_v10  ;;  %v6298_v54 = vld [vmem:[%s6147_s12 + $0x30] ss:$8 sps:$4 sm:$0xff]   ;;  %v5636_v55 = vld [vmem:[%s8796_s1 + $0x1c0] ss:$20 sps:$4 sm:$0xff]   ;;  %v6304_v56 = vld [vmem:[%s6147_s12 + $0x44] ss:$8 sps:$4 sm:$0xff]  }
  0x21   : > { %v6311_v57 = vld [vmem:[%s6147_s12 + $0x40] ss:$8 sps:$4 sm:$0xff]   ;;  %v6316_v58 = vld [vmem:[%s6147_s12 + $0x54] ss:$8 sps:$4 sm:$0xff]   ;;  %v6323_v59 = vld [vmem:[%s6147_s12 + $0x50] ss:$8 sps:$4 sm:$0xff]  }
  0x22   : > { %841 = vmatpush1.bf16.msra.mxu1 %v5612_v29  ;;  %v6328_v60 = vld [vmem:[%s6147_s12 + $0x64] ss:$8 sps:$4 sm:$0xff]   ;;  %v6335_v61 = vld [vmem:[%s6147_s12 + $0x60] ss:$8 sps:$4 sm:$0xff]   ;;  %v6340_v62 = vld [vmem:[%s6147_s12 + $0x74] ss:$8 sps:$4 sm:$0xff]  }
  0x23   : > { %732 = vmatpush1.bf16.msra.mxu0 %v5558_v12  ;;  %842 = vmatprep.subr.bf16.mxu1 %v5613_v31  ;;  %v6347_v63 = vld [vmem:[%s6147_s12 + $0x70] ss:$8 sps:$4 sm:$0xff]   ;;  %v5639_v3 = vld [vmem:[%s8796_s1 + $0x60] ss:$20 sps:$4 sm:$0xff]   ;;  %v5640_v4 = vld [vmem:[%s8796_s1 + $0x88] ss:$20 sps:$4 sm:$0xff]  }
  0x24   : > { %733 = vmatprep.subr.bf16.mxu0 %v5559_v13  ;;  %v5637_v0 = vld [vmem:[%s8796_s1 + $0x10] ss:$20 sps:$4 sm:$0xff]   ;;  %v5638_v2 = vld [vmem:[%s8796_s1 + $0x38] ss:$20 sps:$4 sm:$0xff]   ;;  %v5643_v7 = vld [vmem:[%s8796_s1 + $0x100] ss:$20 sps:$4 sm:$0xff]  }
  0x25   : > { %v5641_v5 = vld [vmem:[%s8796_s1 + $0xb0] ss:$20 sps:$4 sm:$0xff]   ;;  %v5642_v6 = vld [vmem:[%s8796_s1 + $0xd8] ss:$20 sps:$4 sm:$0xff]   ;;  %v5644_v8 = vld [vmem:[%s8796_s1 + $0x128] ss:$20 sps:$4 sm:$0xff]  }
  0x26   : > { %843 = vmatpush1.bf16.msra.mxu1 %v5615_v34  ;;  %v5645_v9 = vld [vmem:[%s8796_s1 + $0x150] ss:$20 sps:$4 sm:$0xff]   ;;  %v5646_v10 = vld [vmem:[%s8796_s1 + $0x178] ss:$20 sps:$4 sm:$0xff]   ;;  %v5648_v12 = vld [vmem:[%s8796_s1 + $0x1c8] ss:$20 sps:$4 sm:$0xff]  }
  0x27   : > { %734 = vmatpush1.bf16.msra.mxu0 %v5561_v14  ;;  %844 = vmatprep.subr.bf16.mxu1 %v5616_v35  ;;  %s6078_s12 = smov 64   ;;  %s6079_s24 = smov 32  }
  0x28   : > { %735 = vmatprep.subr.bf16.mxu0 %v5562_v15  ;;  %s6080_s25 = smov 96   ;;  %s4744_s29 = sshll.u32 %s9493_s16, 8 }
  0x29   : > { %s8710_s6 = scalar_lea.vmem %s8799_s4, %s4744_s29 }
  0x2a   : > { %845 = vmatpush1.bf16.msra.mxu1 %v5618_v37 }
  0x2b   : > { %736 = vmatpush1.bf16.msra.mxu0 %v5564_v16  ;;  %846 = vmatprep.subr.bf16.mxu1 %v5619_v39 }
  0x2c   : > { %737 = vmatprep.subr.bf16.mxu0 %v5565_v17 }
  0x2e   : > { %847 = vmatpush1.bf16.msra.mxu1 %v5621_v40 }
  0x2f   : > { %738 = vmatpush1.bf16.msra.mxu0 %v5567_v22  ;;  %848 = vmatprep.subr.bf16.mxu1 %v5622_v41 }
  0x30   : > { %739 = vmatprep.subr.bf16.mxu0 %v5568_v24 }
  0x32   : > { %849 = vmatpush1.bf16.msra.mxu1 %v5624_v43 }
  0x33   : > { %740 = vmatpush1.bf16.msra.mxu0 %v5570_v26  ;;  %850 = vmatprep.subr.bf16.mxu1 %v5625_v45 }
  0x34   : > { %741 = vmatprep.subr.bf16.mxu0 %v5571_v28 }
  0x36   : > { %851 = vmatpush1.bf16.msra.mxu1 %v5627_v46 }
  0x37   : > { %742 = vmatpush1.bf16.msra.mxu0 %v5573_v30  ;;  %852 = vmatprep.subr.bf16.mxu1 %v5628_v47 }
  0x38   : > { %743 = vmatprep.subr.bf16.mxu0 %v5574_v32 }
  0x3a   : > { %853 = vmatpush1.bf16.msra.mxu1 %v5630_v49 }
  0x3b   : > { %744 = vmatpush1.bf16.msra.mxu0 %v5576_v33  ;;  %854 = vmatprep.subr.bf16.mxu1 %v5631_v51 }
  0x3c   : > { %947 = vmatprep.subr.bf16.mxu0 %v6077_v1 }
  0x3e   : > { %754 = vmatmul.mubr.bf16.vlgmr.msra.gmra.mrb[0].mxu0 %v6235_v36  ;;  %855 = vmatpush1.bf16.msra.mxu1 %v5633_v52 }
  0x3f   : > { %4638 = vmatprep.mubr.msk.bf16.mxu0 %vm8838_vm0, %v6241_v38  ;;  %856 = vmatprep.subr.bf16.mxu1 %v5634_v53 }
  0x40   : > { %948 = vmatpush1.bf16.msra.mxu0 %v5637_v0 }
  0x41   : > { %949 = vmatprep.subr.bf16.mxu0 %v6077_v1 }
  0x42   : > { %857 = vmatpush1.bf16.msra.mxu1 %v5636_v55 }
  0x44   : > { %950 = vmatpush1.bf16.msra.mxu0 %v5638_v2 }
  0x45   : > { %867 = vmatmul.mubr.bf16.vlgmr.msra.gmra.mrb[0].mxu1 %v6235_v36  ;;  %951 = vmatprep.subr.bf16.mxu0 %v6077_v1 }
  0x46   : > { %764 = vmatmul.mubr.bf16.gmra.mrb[4].mxu0 %v6256_v42  ;;  %4646 = vmatprep.mubr.msk.bf16.mxu1 %vm8838_vm0, %v6241_v38 }
  0x47   : > { %4639 = vmatprep.mubr.msk.bf16.mxu0 %vm8838_vm0, %v6262_v44 }
  0x48   : > { %952 = vmatpush1.bf16.msra.mxu0 %v5639_v3 }
  0x49   : > { %953 = vmatprep.subr.bf16.mxu0 %v6077_v1 }
  0x4c   : > { %954 = vmatpush1.bf16.msra.mxu0 %v5640_v4 }
  0x4d   : > { %877 = vmatmul.mubr.bf16.gmra.mrb[4].mxu1 %v6256_v42  ;;  %955 = vmatprep.subr.bf16.mxu0 %v6077_v1 }
  0x4e   : > { %774 = vmatmul.mubr.bf16.gmra.mrb[8].mxu0 %v6277_v48  ;;  %4647 = vmatprep.mubr.msk.bf16.mxu1 %vm8838_vm0, %v6262_v44 }
  0x4f   : > { %4640 = vmatprep.mubr.msk.bf16.mxu0 %vm8838_vm0, %v6283_v50 }
  0x50   : > { %956 = vmatpush1.bf16.msra.mxu0 %v5641_v5 }
  0x51   : > { %957 = vmatprep.subr.bf16.mxu0 %v6077_v1 }
  0x54   : > { %958 = vmatpush1.bf16.msra.mxu0 %v5642_v6 }
  0x55   : > { %887 = vmatmul.mubr.bf16.gmra.mrb[8].mxu1 %v6277_v48  ;;  %959 = vmatprep.subr.bf16.mxu0 %v6077_v1 }
  0x56   : > { %784 = vmatmul.mubr.bf16.gmra.mrb[12].mxu0 %v6298_v54  ;;  %4648 = vmatprep.mubr.msk.bf16.mxu1 %vm8838_vm0, %v6283_v50 }
  0x57   : > { %4641 = vmatprep.mubr.msk.bf16.mxu0 %vm8838_vm0, %v6304_v56 }
  0x58   : > { %960 = vmatpush1.bf16.msra.mxu0 %v5643_v7 }
  0x59   : > { %961 = vmatprep.subr.bf16.mxu0 %v6077_v1 }
  0x5c   : > { %962 = vmatpush1.bf16.msra.mxu0 %v5644_v8 }
  0x5d   : > { %897 = vmatmul.mubr.bf16.gmra.mrb[12].mxu1 %v6298_v54  ;;  %963 = vmatprep.subr.bf16.mxu0 %v6077_v1 }
  0x5e   : > { %794 = vmatmul.mubr.bf16.gmra.mrb[16].mxu0 %v6311_v57  ;;  %4649 = vmatprep.mubr.msk.bf16.mxu1 %vm8838_vm0, %v6304_v56 }
  0x5f   : > { %4642 = vmatprep.mubr.msk.bf16.mxu0 %vm8838_vm0, %v6316_v58 }
  0x60   : > { %964 = vmatpush1.bf16.msra.mxu0 %v5645_v9 }
  0x61   : > { %965 = vmatprep.subr.bf16.mxu0 %v6077_v1 }
  0x64   : > { %966 = vmatpush1.bf16.msra.mxu0 %v5646_v10 }
  0x65   : > { %907 = vmatmul.mubr.bf16.gmra.mrb[16].mxu1 %v6311_v57  ;;  %967 = vmatprep.subr.bf16.mxu0 %v6077_v1 }
  0x66   : > { %804 = vmatmul.mubr.bf16.gmra.mrb[20].mxu0 %v6323_v59  ;;  %4650 = vmatprep.mubr.msk.bf16.mxu1 %vm8838_vm0, %v6316_v58 }
  0x67   : > { %4643 = vmatprep.mubr.msk.bf16.mxu0 %vm8838_vm0, %v6328_v60 }
  0x6d   : > { %917 = vmatmul.mubr.bf16.gmra.mrb[20].mxu1 %v6323_v59 }
  0x6e   : > { %814 = vmatmul.mubr.bf16.gmra.mrb[24].mxu0 %v6335_v61  ;;  %4651 = vmatprep.mubr.msk.bf16.mxu1 %vm8838_vm0, %v6328_v60 }
  0x6f   : > { %4644 = vmatprep.mubr.msk.bf16.mxu0 %vm8838_vm0, %v6340_v62 }
  0x75   : > { %927 = vmatmul.mubr.bf16.gmra.mrb[24].mxu1 %v6335_v61 }
  0x76   : > { %824 = vmatmul.mubr.bf16.gmra.mrb[28].mxu0 %v6347_v63  ;;  %4652 = vmatprep.mubr.msk.bf16.mxu1 %vm8838_vm0, %v6340_v62 }
  0x77   : > { %4653 = vmatprep.mubr.msk.bf16.mxu0 %vm8838_vm0, %v6156_v11  ;;  %v5647_v11 = vld [vmem:[%s8796_s1 + $0x1a0] ss:$20 sps:$4 sm:$0xff]  }
  0x78   : > { %968 = vmatpush1.bf16.msra.mxu0 %v5647_v11 }
  0x79   : > { %969 = vmatprep.subr.bf16.mxu0 %v6077_v1 }
  0x7c   : > { %970 = vmatpush1.bf16.msra.mxu0 %v5648_v12 }
  0x7d   : > { %937 = vmatmul.mubr.bf16.gmra.mrb[28].mxu1 %v6347_v63 }
  0x7f   : > { %980 = vmatmul.mubr.bf16.vlgmr.msra.gmra.mrb[32].mxu0 %v6235_v36 }
  0x80   : > { %4654 = vmatprep.mubr.msk.bf16.mxu0 %vm8838_vm0, %v6241_v38 }
  0x87   : > { %988 = vmatmul.mubr.bf16.gmra.mrb[36].mxu0 %v6256_v42 }
  0x88   : > { %4655 = vmatprep.mubr.msk.bf16.mxu0 %vm8838_vm0, %v6262_v44 }
  0x8f   : > { %996 = vmatmul.mubr.bf16.gmra.mrb[40].mxu0 %v6277_v48 }
  0x90   : > { %4656 = vmatprep.mubr.msk.bf16.mxu0 %vm8838_vm0, %v6283_v50 }
  0x97   : > { %1004 = vmatmul.mubr.bf16.gmra.mrb[44].mxu0 %v6298_v54 }
  0x98   : > { %4657 = vmatprep.mubr.msk.bf16.mxu0 %vm8838_vm0, %v6304_v56 }
  0x9f   : > { %1012 = vmatmul.mubr.bf16.gmra.mrb[48].mxu0 %v6311_v57 }
  0xa0   : > { %4658 = vmatprep.mubr.msk.bf16.mxu0 %vm8838_vm0, %v6316_v58 }
  0xa7   : > { %1020 = vmatmul.mubr.bf16.gmra.mrb[52].mxu0 %v6323_v59 }
  0xa8   : > { %4659 = vmatprep.mubr.msk.bf16.mxu0 %vm8838_vm0, %v6328_v60 }
  0xaf   : > { %1028 = vmatmul.mubr.bf16.gmra.mrb[56].mxu0 %v6335_v61 }
  0xb0   : > { %4660 = vmatprep.mubr.msk.bf16.mxu0 %vm8838_vm0, %v6340_v62 }
  0xb7   : > { %1036 = vmatmul.mubr.bf16.gmra.mrb[60].mxu0 %v6347_v63 }
 0x111   : > { %v755_v13 = vpop.f32.mrb[0].mxu0 }
 0x112   : > { %v757_v14 = vpop.f32.mrb[1].mxu0 }
 0x113   : > { %v759_v15 = vpop.f32.mrb[2].mxu0 }
 0x114   : > { %v6406_v16 = vpack.c.bf16 %v759_v15, %v755_v13  ;;  %v761_v17 = vpop.f32.mrb[3].mxu0 }
 0x115   : > { %v6409_v18 = vpack.c.bf16 %v761_v17, %v757_v14 }
 0x116   : > { %8990 = vst [vmem:[#allocation2_spill] sm:$0xff] %v6406_v16  ;;  %4953 = vmatprep.mubr.msk.bf16.mxu1 %vm8841_vm1, %v6406_v16 }
 0x117   : > { %8991 = vst [vmem:[#allocation3_spill] sm:$0xff] %v6409_v18  ;;  %1127 = vrot.lane.b32.xlu0 %v6409_v18, %s6078_s12 }
 0x118   : > { %v868_v36 = vpop.f32.mrb[0].mxu1 }
 0x119   : > { %v765_v19 = vpop.f32.mrb[4].mxu0  ;;  %v870_v38 = vpop.f32.mrb[1].mxu1 }
 0x11a   : > { %v767_v20 = vpop.f32.mrb[5].mxu0  ;;  %v872_v39 = vpop.f32.mrb[2].mxu1 }
 0x11b   : > { %1578 = vrot.lane.b32.xlu0 %v6409_v18, %s6079_s24  ;;  %v769_v21 = vpop.f32.mrb[6].mxu0  ;;  %v6452_v40 = vpack.c.bf16 %v872_v39, %v868_v36  ;;  %v874_v41 = vpop.f32.mrb[3].mxu1 }
 0x11c   : > { %v6419_v22 = vpack.c.bf16 %v769_v21, %v765_v19  ;;  %v771_v23 = vpop.f32.mrb[7].mxu0  ;;  %v6454_v42 = vpack.c.bf16 %v874_v41, %v870_v38 }
 0x11d   : > { %v6422_v24 = vpack.c.bf16 %v771_v23, %v767_v20  ;;  %8998 = vst [vmem:[#allocation10_spill] sm:$0xff] %v6452_v40 }
 0x11e   : > { %8992 = vst [vmem:[#allocation4_spill] sm:$0xff] %v6419_v22  ;;  %8999 = vst [vmem:[#allocation11_spill] sm:$0xff] %v6454_v42 }
 0x11f   : > { %8993 = vst [vmem:[#allocation5_spill] sm:$0xff] %v6422_v24  ;;  %1129 = vrot.lane.b32.xlu1 %v6422_v24, %s6078_s12 }
 0x120   : > { %v878_v48 = vpop.f32.mrb[4].mxu1 }
 0x121   : > { %v775_v25 = vpop.f32.mrb[8].mxu0  ;;  %v880_v50 = vpop.f32.mrb[5].mxu1 }
 0x122   : > { %v777_v26 = vpop.f32.mrb[9].mxu0  ;;  %v882_v51 = vpop.f32.mrb[6].mxu1 }
 0x123   : > { %1580 = vrot.lane.b32.xlu1 %v6422_v24, %s6079_s24  ;;  %v779_v27 = vpop.f32.mrb[10].mxu0  ;;  %v6467_v52 = vpack.c.bf16 %v882_v51, %v878_v48  ;;  %v884_v53 = vpop.f32.mrb[7].mxu1 }
 0x124   : > { %v6430_v28 = vpack.c.bf16 %v779_v27, %v775_v25  ;;  %v781_v29 = vpop.f32.mrb[11].mxu0  ;;  %v6469_v54 = vpack.c.bf16 %v884_v53, %v880_v50 }
 0x125   : > { %v6433_v30 = vpack.c.bf16 %v781_v29, %v777_v26  ;;  %9002 = vst [vmem:[#allocation14_spill] sm:$0xff] %v6467_v52 }
 0x126   : > { %8994 = vst [vmem:[#allocation6_spill] sm:$0xff] %v6430_v28  ;;  %9003 = vst [vmem:[#allocation15_spill] sm:$0xff] %v6469_v54 }
 0x127   : > { %8995 = vst [vmem:[#allocation7_spill] sm:$0xff] %v6433_v30  ;;  %1582 = vrot.lane.b32.xlu1 %v6433_v30, %s6079_s24  ;;  %1131 = vrot.lane.b32.xlu0 %v6433_v30, %s6078_s12 }
 0x128   : > { %v888_v60 = vpop.f32.mrb[8].mxu1 }
 0x129   : > { %v785_v31 = vpop.f32.mrb[12].mxu0  ;;  %v890_v62 = vpop.f32.mrb[9].mxu1 }
 0x12a   : > { %v787_v32 = vpop.f32.mrb[13].mxu0  ;;  %v892_v0 = vpop.f32.mrb[10].mxu1 }
 0x12b   : > { %v789_v33 = vpop.f32.mrb[14].mxu0  ;;  %v6480_v1 = vpack.c.bf16 %v892_v0, %v888_v60  ;;  %v894_v2 = vpop.f32.mrb[11].mxu1 }
 0x12c   : > { %v6441_v34 = vpack.c.bf16 %v789_v33, %v785_v31  ;;  %v791_v35 = vpop.f32.mrb[15].mxu0  ;;  %v6482_v3 = vpack.c.bf16 %v894_v2, %v890_v62 }
 0x12d   : > { %v6444_v37 = vpack.c.bf16 %v791_v35, %v787_v32  ;;  %9006 = vst [vmem:[#allocation18_spill] sm:$0xff] %v6480_v1 }
 0x12e   : > { %8996 = vst [vmem:[#allocation8_spill] sm:$0xff] %v6441_v34  ;;  %9007 = vst [vmem:[#allocation19_spill] sm:$0xff] %v6482_v3 }
 0x12f   : > { %8997 = vst [vmem:[#allocation9_spill] sm:$0xff] %v6444_v37  ;;  %1584 = vrot.lane.b32.xlu1 %v6444_v37, %s6079_s24  ;;  %1133 = vrot.lane.b32.xlu0 %v6444_v37, %s6078_s12  ;;  %v9055_v37 = vmov 0 }
 0x130   : > { %v898_v8 = vpop.f32.mrb[12].mxu1 }
 0x131   : > { %v795_v43 = vpop.f32.mrb[16].mxu0  ;;  %v900_v10 = vpop.f32.mrb[13].mxu1 }
 0x132   : > { %v797_v44 = vpop.f32.mrb[17].mxu0  ;;  %v902_v11 = vpop.f32.mrb[14].mxu1 }
 0x133   : > { %v799_v45 = vpop.f32.mrb[18].mxu0  ;;  %v6492_v12 = vpack.c.bf16 %v902_v11, %v898_v8  ;;  %v904_v13 = vpop.f32.mrb[15].mxu1 }
 0x134   : > { %v6456_v46 = vpack.c.bf16 %v799_v45, %v795_v43  ;;  %v801_v47 = vpop.f32.mrb[19].mxu0  ;;  %v6494_v14 = vpack.c.bf16 %v904_v13, %v900_v10 }
 0x135   : > { %v6459_v49 = vpack.c.bf16 %v801_v47, %v797_v44  ;;  %9010 = vst [vmem:[#allocation22_spill] sm:$0xff] %v6492_v12 }
 0x136   : > { %9000 = vst [vmem:[#allocation12_spill] sm:$0xff] %v6456_v46  ;;  %9011 = vst [vmem:[#allocation23_spill] sm:$0xff] %v6494_v14 }
 0x137   : > { %9001 = vst [vmem:[#allocation13_spill] sm:$0xff] %v6459_v49  ;;  %1586 = vrot.lane.b32.xlu1 %v6459_v49, %s6079_s24  ;;  %1135 = vrot.lane.b32.xlu0 %v6459_v49, %s6078_s12 }
 0x138   : > { %v908_v23 = vpop.f32.mrb[16].mxu1 }
 0x139   : > { %v805_v55 = vpop.f32.mrb[20].mxu0  ;;  %v910_v26 = vpop.f32.mrb[17].mxu1 }
 0x13a   : > { %v807_v56 = vpop.f32.mrb[21].mxu0  ;;  %v912_v27 = vpop.f32.mrb[18].mxu1 }
 0x13b   : > { %v809_v57 = vpop.f32.mrb[22].mxu0  ;;  %v6504_v29 = vpack.c.bf16 %v912_v27, %v908_v23  ;;  %v914_v31 = vpop.f32.mrb[19].mxu1 }
 0x13c   : > { %v6471_v58 = vpack.c.bf16 %v809_v57, %v805_v55  ;;  %v811_v59 = vpop.f32.mrb[23].mxu0  ;;  %v6506_v32 = vpack.c.bf16 %v914_v31, %v910_v26 }
 0x13d   : > { %v6474_v61 = vpack.c.bf16 %v811_v59, %v807_v56 }
 0x13e   : > { %9004 = vst [vmem:[#allocation16_spill] sm:$0xff] %v6471_v58  ;;  %9014 = vst [vmem:[#allocation26_spill] sm:$0xff] %v6506_v32 }
 0x13f   : > { %9005 = vst [vmem:[#allocation17_spill] sm:$0xff] %v6474_v61  ;;  %1588 = vrot.lane.b32.xlu1 %v6474_v61, %s6079_s24  ;;  %1137 = vrot.lane.b32.xlu0 %v6474_v61, %s6078_s12 }
 0x140   : > { %v918_v33 = vpop.f32.mrb[20].mxu1 }
 0x141   : > { %v815_v4 = vpop.f32.mrb[24].mxu0  ;;  %v920_v35 = vpop.f32.mrb[21].mxu1 }
 0x142   : > { %v817_v5 = vpop.f32.mrb[25].mxu0  ;;  %v922_v36 = vpop.f32.mrb[22].mxu1 }
 0x143   : > { %v819_v6 = vpop.f32.mrb[26].mxu0  ;;  %v6516_v38 = vpack.c.bf16 %v922_v36, %v918_v33  ;;  %v924_v39 = vpop.f32.mrb[23].mxu1 }
 0x144   : > { %v6484_v7 = vpack.c.bf16 %v819_v6, %v815_v4  ;;  %v821_v63 = vpop.f32.mrb[27].mxu0  ;;  %v6518_v41 = vpack.c.bf16 %v924_v39, %v920_v35 }
 0x145   : > { %v6486_v9 = vpack.c.bf16 %v821_v63, %v817_v5  ;;  %9015 = vst [vmem:[#allocation27_spill] sm:$0xff] %v6516_v38 }
 0x146   : > { %9008 = vst [vmem:[#allocation20_spill] sm:$0xff] %v6484_v7  ;;  %9016 = vst [vmem:[#allocation28_spill] sm:$0xff] %v6518_v41 }
 0x147   : > { %9009 = vst [vmem:[#allocation21_spill] sm:$0xff] %v6486_v9  ;;  %1590 = vrot.lane.b32.xlu1 %v6486_v9, %s6079_s24  ;;  %1139 = vrot.lane.b32.xlu0 %v6486_v9, %s6078_s12 }
 0x148   : > { %v928_v43 = vpop.f32.mrb[24].mxu1 }
 0x149   : > { %v825_v15 = vpop.f32.mrb[28].mxu0  ;;  %v930_v44 = vpop.f32.mrb[25].mxu1 }
 0x14a   : > { %v827_v17 = vpop.f32.mrb[29].mxu0  ;;  %v932_v45 = vpop.f32.mrb[26].mxu1 }
 0x14b   : > { %v829_v19 = vpop.f32.mrb[30].mxu0  ;;  %v6528_v47 = vpack.c.bf16 %v932_v45, %v928_v43  ;;  %v934_v48 = vpop.f32.mrb[27].mxu1 }
 0x14c   : > { %v6496_v20 = vpack.c.bf16 %v829_v19, %v825_v15  ;;  %v831_v21 = vpop.f32.mrb[31].mxu0  ;;  %v6530_v50 = vpack.c.bf16 %v934_v48, %v930_v44 }
 0x14d   : > { %v6498_v25 = vpack.c.bf16 %v831_v21, %v827_v17  ;;  %9017 = vst [vmem:[#allocation29_spill] sm:$0xff] %v6528_v47 }
 0x14e   : > { %9012 = vst [vmem:[#allocation24_spill] sm:$0xff] %v6496_v20  ;;  %9018 = vst [vmem:[#allocation30_spill] sm:$0xff] %v6530_v50 }
 0x14f   : > { %9013 = vst [vmem:[#allocation25_spill] sm:$0xff] %v6498_v25  ;;  %1592 = vrot.lane.b32.xlu1 %v6498_v25, %s6079_s24  ;;  %1141 = vrot.lane.b32.xlu0 %v6498_v25, %s6078_s12 }
 0x150   : > { %v938_v51 = vpop.f32.mrb[28].mxu1 }
 0x151   : > { %v940_v53 = vpop.f32.mrb[29].mxu1 }
 0x152   : > { %v942_v55 = vpop.f32.mrb[30].mxu1 }
 0x153   : > { %1564 = vrot.lane.b32.xlu1 %v6419_v22, %s6080_s25  ;;  %1562 = vrot.lane.b32.xlu0 %v6406_v16, %s6080_s25  ;;  %v6564_v56 = vpack.c.bf16 %v942_v55, %v938_v51  ;;  %v944_v57 = vpop.f32.mrb[31].mxu1 }
 0x154   : > { %v6566_v59 = vpack.c.bf16 %v944_v57, %v940_v53 }
 0x155   : > { %9019 = vst [vmem:[#allocation31_spill] sm:$0xff] %v6564_v56 }
 0x156   : > { %9020 = vst [vmem:[#allocation32_spill] sm:$0xff] %v6566_v59 }
 0x157   : > { %1568 = vrot.lane.b32.xlu1 %v6441_v34, %s6080_s25  ;;  %1566 = vrot.lane.b32.xlu0 %v6430_v28, %s6080_s25 }
 0x15b   : > { %1572 = vrot.lane.b32.xlu1 %v6471_v58, %s6080_s25  ;;  %1570 = vrot.lane.b32.xlu0 %v6456_v46, %s6080_s25 }
 0x15f   : > { %1576 = vrot.lane.b32.xlu1 %v6496_v20, %s6080_s25  ;;  %1574 = vrot.lane.b32.xlu0 %v6484_v7, %s6080_s25 }
 0x163   : > { %2038 = vrot.lane.b32.xlu1 %v6419_v22, %s6078_s12  ;;  %2036 = vrot.lane.b32.xlu0 %v6406_v16, %s6078_s12 }
 0x167   : > { %2042 = vrot.lane.b32.xlu1 %v6441_v34, %s6078_s12  ;;  %2040 = vrot.lane.b32.xlu0 %v6430_v28, %s6078_s12 }
 0x16b   : > { %2046 = vrot.lane.b32.xlu1 %v6471_v58, %s6078_s12  ;;  %2044 = vrot.lane.b32.xlu0 %v6456_v46, %s6078_s12 }
 0x16f   : > { %2050 = vrot.lane.b32.xlu1 %v6496_v20, %s6078_s12  ;;  %2048 = vrot.lane.b32.xlu0 %v6484_v7, %s6078_s12 }
 0x173   : > { %1915 = vrot.lane.b32.xlu1 %v6454_v42, %s6080_s25  ;;  %1917 = vrot.lane.b32.xlu0 %v6469_v54, %s6080_s25 }
 0x177   : > { %1921 = vrot.lane.b32.xlu1 %v6494_v14, %s6080_s25  ;;  %1919 = vrot.lane.b32.xlu0 %v6482_v3, %s6080_s25 }
 0x17b   : > { %1925 = vrot.lane.b32.xlu1 %v6518_v41, %s6080_s25  ;;  %1923 = vrot.lane.b32.xlu0 %v6506_v32, %s6080_s25 }
 0x17f   : > { %2367 = vrot.lane.b32.xlu1 %v6469_v54, %s6078_s12  ;;  %1927 = vrot.lane.b32.xlu0 %v6530_v50, %s6080_s25 }
 0x183   : > { %2371 = vrot.lane.b32.xlu1 %v6494_v14, %s6078_s12  ;;  %2365 = vrot.lane.b32.xlu0 %v6454_v42, %s6078_s12 }
 0x187   : > { %2373 = vrot.lane.b32.xlu1 %v6506_v32, %s6078_s12  ;;  %2369 = vrot.lane.b32.xlu0 %v6482_v3, %s6078_s12 }
 0x189   : > { %v1128_v60 = vpop.permute.xlu0 %1127 }
 0x18a   : > { %5321 = vmatprep.subr.msk.bf16.mxu1 %vm8841_vm1, %v1128_v60  ;;  %v1169_v62 = vsel %vm8841_vm1, %v1128_v60, 0 }
 0x18b   : > { %4938 = vmatpush3.bf16.xpose.msra.mxu1 %v1169_v62  ;;  %2375 = vrot.lane.b32.xlu1 %v6518_v41, %s6078_s12 }
 0x18c   : > { %2377 = vrot.lane.b32.xlu0 %v6530_v50, %s6078_s12 }
 0x18d   : > { %v1579_v0 = vpop.permute.xlu0 %1578 }
 0x18e   : > { %5329 = vmatprep.subr.msk.bf16.mxu0 %vm8841_vm1, %v1579_v0  ;;  %v1619_v2 = vsel %vm8841_vm1, %v1579_v0, 0 }
 0x18f   : > { %5002 = vmatpush3.bf16.xpose.msra.mxu0 %v1619_v2  ;;  %2510 = vrot.lane.b32.xlu1 %v6452_v40, %s6080_s25  ;;  %v2077_v2 = vsel %vm8841_vm1, %v6452_v40, 0 }
 0x191   : > { %v1130_v4 = vpop.permute.xlu1 %1129 }
 0x192   : > { %5322 = vmatprep.subr.msk.bf16.mxu1 %vm8841_vm1, %v1130_v4  ;;  %v1172_v5 = vsel %vm8841_vm1, %v1130_v4, 0 }
 0x193   : > { %4940 = vmatpush3.bf16.xpose.msra.mxu1 %v1172_v5  ;;  %2512 = vrot.lane.b32.xlu1 %v6467_v52, %s6080_s25 }
 0x195   : > { %v1581_v6 = vpop.permute.xlu1 %1580 }
 0x196   : > { %5330 = vmatprep.subr.msk.bf16.mxu0 %vm8841_vm1, %v1581_v6  ;;  %v1622_v63 = vsel %vm8841_vm1, %v1581_v6, 0 }
 0x197   : > { %5004 = vmatpush3.bf16.xpose.msra.mxu0 %v1622_v63  ;;  %1929 = vrot.lane.b32.xlu1 %v6566_v59, %s6080_s25  ;;  %v2080_v63 = vsel %vm8841_vm1, %v6467_v52, 0 }
 0x199   : > { %v1583_v8 = vpop.permute.xlu1 %1582  ;;  %v1132_v10 = vpop.permute.xlu0 %1131 }
 0x19a   : > { %5323 = vmatprep.subr.msk.bf16.mxu1 %vm8841_vm1, %v1132_v10  ;;  %5331 = vmatprep.subr.msk.bf16.mxu0 %vm8841_vm1, %v1583_v8  ;;  %v1175_v11 = vsel %vm8841_vm1, %v1132_v10, 0  ;;  %v1625_v13 = vsel %vm8841_vm1, %v1583_v8, 0 }
 0x19b   : > { %4942 = vmatpush3.bf16.xpose.msra.mxu1 %v1175_v11  ;;  %2379 = vrot.lane.b32.xlu1 %v6566_v59, %s6078_s12  ;;  %v981_v11 = vpop.f32.mrb[32].mxu0 }
 0x19f   : > { %5006 = vmatpush3.bf16.xpose.msra.mxu0 %v1625_v13  ;;  %v983_v13 = vpop.f32.mrb[33].mxu0 }
 0x1a1   : > { %v1585_v15 = vpop.permute.xlu1 %1584  ;;  %v1134_v17 = vpop.permute.xlu0 %1133 }
 0x1a2   : > { %5324 = vmatprep.subr.msk.bf16.mxu1 %vm8841_vm1, %v1134_v17  ;;  %5332 = vmatprep.subr.msk.bf16.mxu0 %vm8841_vm1, %v1585_v15  ;;  %v1178_v19 = vsel %vm8841_vm1, %v1134_v17, 0  ;;  %v1628_v21 = vsel %vm8841_vm1, %v1585_v15, 0  ;;  %v984_v17 = vpop.f32.mrb[34].mxu0 }
 0x1a3   : > { %4944 = vmatpush3.bf16.xpose.msra.mxu1 %v1178_v19  ;;  %v6660_v19 = vpack.c.bf16 %v984_v17, %v981_v11 }
 0x1a5   : > { %9021 = vst [vmem:[#allocation33_spill] sm:$0xff] %v6660_v19 }
 0x1a7   : > { %5008 = vmatpush3.bf16.xpose.msra.mxu0 %v1628_v21  ;;  %v986_v21 = vpop.f32.mrb[35].mxu0 }
 0x1a9   : > { %v1587_v23 = vpop.permute.xlu1 %1586  ;;  %v1136_v26 = vpop.permute.xlu0 %1135 }
 0x1aa   : > { %5325 = vmatprep.subr.msk.bf16.mxu1 %vm8841_vm1, %v1136_v26  ;;  %5333 = vmatprep.subr.msk.bf16.mxu0 %vm8841_vm1, %v1587_v23  ;;  %v1181_v27 = vsel %vm8841_vm1, %v1136_v26, 0  ;;  %v1631_v31 = vsel %vm8841_vm1, %v1587_v23, 0  ;;  %v2083_v23 = vsel %vm8841_vm1, %v6480_v1, 0 }
 0x1ab   : > { %4946 = vmatpush3.bf16.xpose.msra.mxu1 %v1181_v27 }
 0x1af   : > { %5010 = vmatpush3.bf16.xpose.msra.mxu0 %v1631_v31  ;;  %v989_v31 = vpop.f32.mrb[36].mxu0 }
 0x1b1   : > { %v1589_v33 = vpop.permute.xlu1 %1588  ;;  %v1138_v35 = vpop.permute.xlu0 %1137 }
 0x1b2   : > { %5326 = vmatprep.subr.msk.bf16.mxu1 %vm8841_vm1, %v1138_v35  ;;  %5334 = vmatprep.subr.msk.bf16.mxu0 %vm8841_vm1, %v1589_v33  ;;  %v1184_v36 = vsel %vm8841_vm1, %v1138_v35, 0  ;;  %v1634_v39 = vsel %vm8841_vm1, %v1589_v33, 0  ;;  %v991_v33 = vpop.f32.mrb[37].mxu0 }
 0x1b3   : > { %4948 = vmatpush3.bf16.xpose.msra.mxu1 %v1184_v36  ;;  %v992_v35 = vpop.f32.mrb[38].mxu0 }
 0x1b4   : > { %v6676_v36 = vpack.c.bf16 %v992_v35, %v989_v31 }
 0x1b6   : > { %9022 = vst [vmem:[#allocation34_spill] sm:$0xff] %v6676_v36 }
 0x1b7   : > { %5012 = vmatpush3.bf16.xpose.msra.mxu0 %v1634_v39  ;;  %v994_v39 = vpop.f32.mrb[39].mxu0 }
 0x1b9   : > { %v1591_v43 = vpop.permute.xlu1 %1590  ;;  %v1140_v44 = vpop.permute.xlu0 %1139 }
 0x1ba   : > { %5327 = vmatprep.subr.msk.bf16.mxu1 %vm8841_vm1, %v1140_v44  ;;  %5335 = vmatprep.subr.msk.bf16.mxu0 %vm8841_vm1, %v1591_v43  ;;  %v1187_v45 = vsel %vm8841_vm1, %v1140_v44, 0  ;;  %v1637_v48 = vsel %vm8841_vm1, %v1591_v43, 0  ;;  %v2086_v44 = vsel %vm8841_vm1, %v6492_v12, 0 }
 0x1bb   : > { %4950 = vmatpush3.bf16.xpose.msra.mxu1 %v1187_v45 }
 0x1bf   : > { %5014 = vmatpush3.bf16.xpose.msra.mxu0 %v1637_v48  ;;  %v997_v48 = vpop.f32.mrb[40].mxu0 }
 0x1c1   : > { %v1593_v51 = vpop.permute.xlu1 %1592  ;;  %v1142_v53 = vpop.permute.xlu0 %1141 }
 0x1c2   : > { %5328 = vmatprep.subr.msk.bf16.mxu1 %vm8841_vm1, %v1142_v53  ;;  %5336 = vmatprep.subr.msk.bf16.mxu0 %vm8841_vm1, %v1593_v51  ;;  %v1190_v55 = vsel %vm8841_vm1, %v1142_v53, 0  ;;  %v1640_v62 = vsel %vm8841_vm1, %v1593_v51, 0  ;;  %v999_v53 = vpop.f32.mrb[41].mxu0 }
 0x1c3   : > { %4952 = vmatpush3.bf16.xpose.msra.mxu1 %v1190_v55  ;;  %v1000_v55 = vpop.f32.mrb[42].mxu0 }
 0x1c4   : > { %4969 = vmatprep.subr.bf16.mxu1 %v6454_v42 }
 0x1c5   : > { %v1565_v57 = vpop.permute.xlu1 %1564  ;;  %v1563_v60 = vpop.permute.xlu0 %1562 }
 0x1c6   : > { %5017 = vmatprep.mubr.msk.bf16.mxu0 %vm8841_vm1, %v1563_v60  ;;  %v1002_v60 = vpop.f32.mrb[43].mxu0 }
 0x1c7   : > { %5016 = vmatpush3.bf16.xpose.msra.mxu0 %v1640_v62  ;;  %v2089_v62 = vsel %vm8841_vm1, %v6504_v29, 0 }
 0x1c8   : > { %5337 = vmatprep.subr.msk.bf16.mxu0 %vm8841_vm1, %v6452_v40 }
 0x1c9   : > { %v1569_v0 = vpop.permute.xlu1 %1568  ;;  %v1567_v5 = vpop.permute.xlu0 %1566 }
 0x1ca   : > { %4954 = vmatmul.mubr.msk.bf16.vlgmr.msra.gmra.mrb[32].mxu1 %vm8841_vm1, %v6419_v22 }
 0x1cb   : > { %4957 = vmatprep.mubr.msk.bf16.mxu1 %vm8841_vm1, %v6430_v28  ;;  %4970 = vmatpush3.bf16.msra.mxu1 %v6454_v42 }
 0x1cc   : > { %4971 = vmatprep.subr.bf16.mxu1 %v6469_v54 }
 0x1cd   : > { %v1573_v4 = vpop.permute.xlu1 %1572  ;;  %v1571_v10 = vpop.permute.xlu0 %1570 }
 0x1ce   : > { %5018 = vmatmul.mubr.msk.bf16.vlgmr.msra.gmra.mrb[64].mxu0 %vm8841_vm1, %v1565_v57  ;;  %v6690_v57 = vpack.c.bf16 %v1000_v55, %v997_v48 }
 0x1cf   : > { %5021 = vmatprep.mubr.msk.bf16.mxu0 %vm8841_vm1, %v1567_v5  ;;  %5066 = vmatpush3.bf16.xpose.msra.mxu0 %v2077_v2 }
 0x1d0   : > { %5338 = vmatprep.subr.msk.bf16.mxu0 %vm8841_vm1, %v6467_v52  ;;  %4972 = vmatpush3.bf16.msra.mxu1 %v6469_v54  ;;  %9024 = vst [vmem:[#allocation36_spill] sm:$0xff] %v6690_v57 }
 0x1d1   : > { %v1577_v6 = vpop.permute.xlu1 %1576  ;;  %4973 = vmatprep.subr.bf16.mxu1 %v6482_v3  ;;  %v1575_v26 = vpop.permute.xlu0 %1574 }
 0x1d2   : > { %4958 = vmatmul.mubr.msk.bf16.gmra.mrb[36].mxu1 %vm8841_vm1, %v6441_v34 }
 0x1d3   : > { %4961 = vmatprep.mubr.msk.bf16.mxu1 %vm8841_vm1, %v6456_v46 }
 0x1d4   : > { %4974 = vmatpush3.bf16.msra.mxu1 %v6482_v3 }
 0x1d5   : > { %v6645_v8 = vpop.permute.xlu1 %2038  ;;  %4975 = vmatprep.subr.bf16.mxu1 %v6494_v14  ;;  %v2037_v45 = vpop.permute.xlu0 %2036 }
 0x1d6   : > { %5022 = vmatmul.mubr.msk.bf16.gmra.mrb[68].mxu0 %vm8841_vm1, %v1569_v0  ;;  %v1005_v0 = vpop.f32.mrb[44].mxu0 }
 0x1d7   : > { %5025 = vmatprep.mubr.msk.bf16.mxu0 %vm8841_vm1, %v1571_v10  ;;  %5068 = vmatpush3.bf16.xpose.msra.mxu0 %v2080_v63  ;;  %v1007_v2 = vpop.f32.mrb[45].mxu0  ;;  %v2092_v63 = vsel %vm8841_vm1, %v6516_v38, 0 }
 0x1d8   : > { %5339 = vmatprep.subr.msk.bf16.mxu0 %vm8841_vm1, %v6480_v1  ;;  %4976 = vmatpush3.bf16.msra.mxu1 %v6494_v14 }
 0x1d9   : > { %v6653_v15 = vpop.permute.xlu1 %2042  ;;  %4977 = vmatprep.subr.bf16.mxu1 %v6506_v32 }
 0x1da   : > { %4962 = vmatmul.mubr.msk.bf16.gmra.mrb[40].mxu1 %vm8841_vm1, %v6471_v58 }
 0x1db   : > { %4965 = vmatprep.mubr.msk.bf16.mxu1 %vm8841_vm1, %v6484_v7 }
 0x1dc   : > { %4978 = vmatpush3.bf16.msra.mxu1 %v6506_v32  ;;  %v9049_v32 = vmov 0 }
 0x1dd   : > { %4979 = vmatprep.subr.bf16.mxu1 %v6518_v41  ;;  %v6666_v27 = vpop.permute.xlu1 %2046 }
 0x1de   : > { %5026 = vmatmul.mubr.msk.bf16.gmra.mrb[72].mxu0 %vm8841_vm1, %v1573_v4  ;;  %v1008_v4 = vpop.f32.mrb[46].mxu0 }
 0x1df   : > { %5029 = vmatprep.mubr.msk.bf16.mxu0 %vm8841_vm1, %v1575_v26  ;;  %5070 = vmatpush3.bf16.xpose.msra.mxu0 %v2083_v23  ;;  %v6696_v5 = vpack.c.bf16 %v1008_v4, %v1005_v0  ;;  %v2095_v23 = vsel %vm8841_vm1, %v6528_v47, 0 }
 0x1e0   : > { %5340 = vmatprep.subr.msk.bf16.mxu0 %vm8841_vm1, %v6492_v12  ;;  %4980 = vmatpush3.bf16.msra.mxu1 %v6518_v41 }
 0x1e1   : > { %4981 = vmatprep.subr.bf16.mxu1 %v6530_v50  ;;  %v2051_v43 = vpop.permute.xlu1 %2050  ;;  %9025 = vst [vmem:[#allocation37_spill] sm:$0xff] %v6696_v5 }
 0x1e2   : > { %4966 = vmatmul.mubr.msk.bf16.gmra.mrb[44].mxu1 %vm8841_vm1, %v6496_v20 }
 0x1e4   : > { %4982 = vmatpush3.bf16.msra.mxu1 %v6530_v50 }
 0x1e5   : > { %4983 = vmatprep.subr.bf16.mxu1 %v6566_v59  ;;  %v6687_v51 = vpop.permute.xlu1 %1915 }
 0x1e6   : > { %5030 = vmatmul.mubr.msk.bf16.gmra.mrb[76].mxu0 %vm8841_vm1, %v1577_v6  ;;  %9023 = vst [vmem:[#allocation35_spill] sm:$0xff] %v6687_v51  ;;  %v1010_v6 = vpop.f32.mrb[47].mxu0 }
 0x1e7   : > { %5072 = vmatpush3.bf16.xpose.msra.mxu0 %v2086_v44  ;;  %5081 = vmatprep.mubr.msk.bf16.mxu0 %vm8841_vm1, %v2037_v45  ;;  %v1013_v10 = vpop.f32.mrb[48].mxu0  ;;  %v2098_v44 = vsel %vm8841_vm1, %v6564_v56, 0 }
 0x1e8   : > { %5341 = vmatprep.subr.msk.bf16.mxu0 %vm8841_vm1, %v6504_v29  ;;  %4984 = vmatpush3.bf16.msra.mxu1 %v6566_v59  ;;  %v1015_v11 = vpop.f32.mrb[49].mxu0 }
 0x1e9   : > { %5033 = vmatprep.subr.bf16.mxu1 %v6687_v51  ;;  %v1016_v13 = vpop.f32.mrb[50].mxu0 }
 0x1ea   : > { %v6702_v17 = vpack.c.bf16 %v1016_v13, %v1013_v10  ;;  %v1018_v21 = vpop.f32.mrb[51].mxu0 }
 0x1eb   : > { %v1021_v26 = vpop.f32.mrb[52].mxu0 }
 0x1ec   : > { %9026 = vst [vmem:[#allocation38_spill] sm:$0xff] %v6702_v17  ;;  %v1023_v31 = vpop.f32.mrb[53].mxu0 }
 0x1ed   : > { %v1024_v33 = vpop.f32.mrb[54].mxu0 }
 0x1ee   : > { %v6708_v35 = vpack.c.bf16 %v1024_v33, %v1021_v26  ;;  %v1026_v39 = vpop.f32.mrb[55].mxu0  ;;  %v9034_v33 = vmov 0 }
 0x1ef   : > { %5074 = vmatpush3.bf16.xpose.msra.mxu0 %v2089_v62  ;;  %v1029_v45 = vpop.f32.mrb[56].mxu0  ;;  %v2041_v62 = vpop.permute.xlu0 %2040 }
 0x1f0   : > { %5342 = vmatprep.subr.msk.bf16.mxu0 %vm8841_vm1, %v6516_v38  ;;  %9027 = vst [vmem:[#allocation39_spill] sm:$0xff] %v6708_v35  ;;  %v1031_v48 = vpop.f32.mrb[57].mxu0 }
 0x1f1   : > { %v1032_v53 = vpop.f32.mrb[58].mxu0 }
 0x1f2   : > { %v6712_v55 = vpack.c.bf16 %v1032_v53, %v1029_v45  ;;  %v1034_v60 = vpop.f32.mrb[59].mxu0 }
 0x1f3   : > { %v1037_v0 = vpop.f32.mrb[60].mxu0  ;;  %v2045_v10 = vpop.permute.xlu0 %2044 }
 0x1f4   : > { %9028 = vst [vmem:[#allocation40_spill] sm:$0xff] %v6712_v55  ;;  %v1039_v2 = vpop.f32.mrb[61].mxu0  ;;  %v9043_v55 = vmov 0 }
 0x1f5   : > { %v1040_v4 = vpop.f32.mrb[62].mxu0 }
 0x1f6   : > { %v6717_v6 = vpack.c.bf16 %v1040_v4, %v1037_v0  ;;  %v9037_v0 = vmov 0 }
 0x1f7   : > { %5076 = vmatpush3.bf16.xpose.msra.mxu0 %v2092_v63  ;;  %v1042_v63 = vpop.f32.mrb[63].mxu0  ;;  %v2049_v11 = vpop.permute.xlu0 %2048 }
 0x1f8   : > { %5343 = vmatprep.subr.msk.bf16.mxu0 %vm8841_vm1, %v6528_v47  ;;  %9029 = vst [vmem:[#allocation41_spill] sm:$0xff] %v6717_v6 }
 0x1ff   : > { %5078 = vmatpush3.bf16.xpose.msra.mxu0 %v2095_v23 }
 0x200   : > { %5344 = vmatprep.subr.msk.bf16.mxu0 %vm8841_vm1, %v6564_v56 }
 0x207   : > { %5080 = vmatpush3.bf16.xpose.msra.mxu0 %v2098_v44 }
 0x20e   : > { %5082 = vmatmul.mubr.msk.bf16.vlgmr.msra.gmra.mrb[80].mxu0 %vm8841_vm1, %v6645_v8  ;;  %v1084_v8 = vlaneseq }
 0x20f   : > { %5085 = vmatprep.mubr.msk.bf16.mxu0 %vm8841_vm1, %v2041_v62 }
 0x210   : > { %v6728_v13 = vshrl.u32 %v1084_v8, 7  ;;  %v6731_v23 = vand.u32 127, %v1084_v8 }
 0x212   : > { %9030 = vst [vmem:[#allocation42_spill] sm:$0xff] %v6728_v13  ;;  %v1087_v21 = vadd.s32 16, %v6728_v13  ;;  %vm6745_vm3 = vcmp.le.s32.totalorder %v6731_v23, %v6728_v13  ;;  %v1088_v39 = vadd.s32 24, %v6728_v13  ;;  %v1086_v2 = vadd.s32 8, %v6728_v13 }
 0x213   : > { %v9035_v33 = vsel %vm6745_vm3, 4294967295, %v9034_v33  ;;  %v1092_v35 = vadd.s32 56, %v6728_v13  ;;  %v1089_v36 = vadd.s32 32, %v6728_v13  ;;  %v1090_v41 = vadd.s32 40, %v6728_v13 }
 0x214   : > { %vm6734_vm2 = vcmp.le.s32.totalorder %v6731_v23, %v1087_v21  ;;  %9036 = vst [vmem:[#allocation44_spill] sm:$0xff] %v9035_v33  ;;  %vm6761_vm4 = vcmp.le.s32.totalorder %v6731_v23, %v1088_v39  ;;  %vm6777_vm5 = vcmp.le.s32.totalorder %v6731_v23, %v1086_v2  ;;  %v1095_v25 = vadd.s32 80, %v6728_v13 }
 0x215   : > { %v9038_v0 = vsel %vm6761_vm4, 4294967295, %v9037_v0  ;;  %vm6809_vm7 = vcmp.le.s32.totalorder %v6731_v23, %v1092_v35  ;;  %vm6825_vm8 = vcmp.le.s32.totalorder %v6731_v23, %v1089_v36  ;;  %vm6841_vm9 = vcmp.le.s32.totalorder %v6731_v23, %v1090_v41 }
 0x216   : > { %5086 = vmatmul.mubr.msk.bf16.gmra.mrb[84].mxu0 %vm8841_vm1, %v6653_v15  ;;  %v9031_v15 = vmov 0  ;;  %9039 = vst [vmem:[#allocation45_spill] sm:$0xff] %v9038_v0  ;;  %v9050_v32 = vsel %vm6825_vm8, 4294967295, %v9049_v32  ;;  %v9052_v36 = vmov 0  ;;  %vm6857_vm10 = vcmp.le.s32.totalorder %v6731_v23, %v1095_v25 }
 0x217   : > { %5089 = vmatprep.mubr.msk.bf16.mxu0 %vm8841_vm1, %v2045_v10  ;;  %v9032_v15 = vsel %vm6734_vm2, 4294967295, %v9031_v15  ;;  %9051 = vst [vmem:[#allocation49_spill] sm:$0xff] %v9050_v32  ;;  %v9053_v36 = vsel %vm6841_vm9, 4294967295, %v9052_v36  ;;  %v9056_v37 = vsel %vm6857_vm10, 4294967295, %v9055_v37  ;;  %v1096_v30 = vadd.s32 88, %v6728_v13 }
 0x218   : > { %9033 = vst [vmem:[#allocation43_spill] sm:$0xff] %v9032_v15  ;;  %9054 = vst [vmem:[#allocation50_spill] sm:$0xff] %v9053_v36  ;;  %v9058_v25 = vmov 0  ;;  %v1093_v7 = vadd.s32 64, %v6728_v13 }
 0x219   : > { %9057 = vst [vmem:[#allocation51_spill] sm:$0xff] %v9056_v37  ;;  %vm6873_vm11 = vcmp.le.s32.totalorder %v6731_v23, %v1096_v30  ;;  %v9061_v30 = vmov 0 }
 0x21a   : > { %v9059_v25 = vsel %vm6873_vm11, 4294967295, %v9058_v25  ;;  %vm6889_vm12 = vcmp.le.s32.totalorder %v6731_v23, %v1093_v7  ;;  %v9064_v7 = vmov 0 }
 0x21b   : > { %9060 = vst [vmem:[#allocation52_spill] sm:$0xff] %v9059_v25  ;;  %v9062_v30 = vsel %vm6889_vm12, 4294967295, %v9061_v30 }
 0x21c   : > { %9063 = vst [vmem:[#allocation53_spill] sm:$0xff] %v9062_v30 }
 0x21e   : > { %5090 = vmatmul.mubr.msk.bf16.gmra.mrb[88].mxu0 %vm8841_vm1, %v6666_v27 }
 0x21f   : > { %5093 = vmatprep.mubr.msk.bf16.mxu0 %vm8841_vm1, %v2049_v11 }
 0x226   : > { %5094 = vmatmul.mubr.msk.bf16.gmra.mrb[92].mxu0 %vm8841_vm1, %v2051_v43 }
 0x227   : > { %5209 = vmatprep.mubr.msk.bf16.mxu0 %vm8841_vm1, %v6409_v18 }
 0x29d   : > { %v4955_v27 = vpop.f32.mrb[32].mxu1 }
 0x29e   : > { %v1226_v26 = vpop.f32.mrb[33].mxu1  ;;  %v6740_v43 = vsel %vm6734_vm2, %v4955_v27, -1e+30  ;;  %v9040_v27 = vmov 0 }
 0x29f   : > { %1309 = vmax.xlane.f32.xlu0 %v6740_v43  ;;  %v4956_v31 = vpop.f32.mrb[34].mxu1  ;;  %v6752_v53 = vsel %vm6745_vm3, %v1226_v26, -1e+30  ;;  %v9041_v27 = vsel %vm6777_vm5, 4294967295, %v9040_v27  ;;  %v1091_v26 = vadd.s32 48, %v6728_v13 }
 0x2a0   : > { %v1229_v44 = vpop.f32.mrb[35].mxu1  ;;  %v6768_v11 = vsel %vm6761_vm4, %v4956_v31, -1e+30  ;;  %9042 = vst [vmem:[#allocation46_spill] sm:$0xff] %v9041_v27 }
 0x2a1   : > { %v5019_v45 = vpop.f32.mrb[64].mxu0  ;;  %v6784_v6 = vsel %vm6777_vm5, %v1229_v44, -1e+30  ;;  %vm6793_vm6 = vcmp.le.s32.totalorder %v6731_v23, %v1091_v26  ;;  %v9046_v26 = vmov 0 }
 0x2a2   : > { %v1676_v48 = vpop.f32.mrb[65].mxu0  ;;  %v6756_v60 = vsel %vm6734_vm2, %v5019_v45, -1e+30  ;;  %v9044_v55 = vsel %vm6793_vm6, 4294967295, %v9043_v55  ;;  %v9047_v26 = vsel %vm6809_vm7, 4294967295, %v9046_v26 }
 0x2a3   : > { %1305 = vmax.xlane.f32.xlu0 %v6752_v53  ;;  %1759 = vmax.xlane.f32.xlu1 %v6756_v60  ;;  %v5020_v62 = vpop.f32.mrb[66].mxu0  ;;  %v6772_v8 = vsel %vm6745_vm3, %v1676_v48, -1e+30  ;;  %9045 = vst [vmem:[#allocation47_spill] sm:$0xff] %v9044_v55  ;;  %9048 = vst [vmem:[#allocation48_spill] sm:$0xff] %v9047_v26 }
 0x2a4   : > { %v1679_v4 = vpop.f32.mrb[67].mxu0  ;;  %v6788_v48 = vsel %vm6761_vm4, %v5020_v62, -1e+30 }
 0x2a5   : > { %v4959_v63 = vpop.f32.mrb[36].mxu1  ;;  %v6804_v62 = vsel %vm6777_vm5, %v1679_v4, -1e+30 }
 0x2a6   : > { %v1242_v10 = vpop.f32.mrb[37].mxu1  ;;  %v6800_v57 = vsel %vm6793_vm6, %v4959_v63, -1e+30 }
 0x2a7   : > { %1311 = vmax.xlane.f32.xlu0 %v6768_v11  ;;  %v4960_v21 = vpop.f32.mrb[38].mxu1  ;;  %1755 = vmax.xlane.f32.xlu1 %v6772_v8  ;;  %v6832_v54 = vsel %vm6825_vm8, %v1242_v10, -1e+30 }
 0x2a8   : > { %v1245_v39 = vpop.f32.mrb[39].mxu1  ;;  %v6816_v50 = vsel %vm6809_vm7, %v4960_v21, -1e+30 }
 0x2a9   : > { %v5023_v45 = vpop.f32.mrb[68].mxu0 }
 0x2aa   : > { %v1692_v31 = vpop.f32.mrb[69].mxu0  ;;  %v6820_v4 = vsel %vm6793_vm6, %v5023_v45, -1e+30 }
 0x2ab   : > { %1307 = vmax.xlane.f32.xlu1 %v6784_v6  ;;  %1761 = vmax.xlane.f32.xlu0 %v6788_v48  ;;  %v5024_v2 = vpop.f32.mrb[70].mxu0  ;;  %v6848_v49 = vsel %vm6825_vm8, %v1692_v31, -1e+30 }
 0x2ac   : > { %v1695_v17 = vpop.f32.mrb[71].mxu0  ;;  %v6836_v45 = vsel %vm6809_vm7, %v5024_v2, -1e+30  ;;  %v6852_v2 = vsel %vm6841_vm9, %v1245_v39, -1e+30 }
 0x2ad   : > { %v4963_v5 = vpop.f32.mrb[40].mxu1  ;;  %v6868_v39 = vsel %vm6841_vm9, %v1695_v17, -1e+30  ;;  %v1094_v17 = vadd.s32 72, %v6728_v13 }
 0x2ae   : > { %v1258_v44 = vpop.f32.mrb[41].mxu1  ;;  %v6864_v31 = vsel %vm6857_vm10, %v4963_v5, -1e+30 }
 0x2af   : > { %v4964_v18 = vpop.f32.mrb[42].mxu1  ;;  %1317 = vmax.xlane.f32.xlu1 %v6800_v57  ;;  %1757 = vmax.xlane.f32.xlu0 %v6804_v62  ;;  %v6896_v28 = vsel %vm6889_vm12, %v1258_v44, -1e+30  ;;  %vm6905_vm13 = vcmp.le.s32.totalorder %v6731_v23, %v1094_v17  ;;  %v1100_v17 = vadd.s32 120, %v6728_v13 }
 0x2b0   : > { %v1261_v19 = vpop.f32.mrb[43].mxu1  ;;  %v6880_v58 = vsel %vm6873_vm11, %v4964_v18, -1e+30  ;;  %v9065_v7 = vsel %vm6905_vm13, 4294967295, %v9064_v7 }
 0x2b1   : > { %v5027_v59 = vpop.f32.mrb[72].mxu0  ;;  %9066 = vst [vmem:[#allocation54_spill] sm:$0xff] %v9065_v7  ;;  %v6916_v44 = vsel %vm6905_vm13, %v1261_v19, -1e+30  ;;  %vm6937_vm15 = vcmp.le.s32.totalorder %v6731_v23, %v1100_v17  ;;  %v9070_v19 = vmov 0  ;;  %v1098_v17 = vadd.s32 104, %v6728_v13 }
 0x2b2   : > { %v1708_v63 = vpop.f32.mrb[73].mxu0  ;;  %v6884_v5 = vsel %vm6857_vm10, %v5027_v59, -1e+30  ;;  %v1099_v59 = vadd.s32 112, %v6728_v13  ;;  %v9071_v19 = vsel %vm6937_vm15, 4294967295, %v9070_v19 }
 0x2b3   : > { %1319 = vmax.xlane.f32.xlu0 %v6816_v50  ;;  %1767 = vmax.xlane.f32.xlu1 %v6820_v4  ;;  %v5028_v35 = vpop.f32.mrb[74].mxu0  ;;  %v6912_v22 = vsel %vm6889_vm12, %v1708_v63, -1e+30  ;;  %9072 = vst [vmem:[#allocation56_spill] sm:$0xff] %v9071_v19  ;;  %vm6969_vm1 = vcmp.le.s32.totalorder %v6731_v23, %v1098_v17 }
 0x2b4   : > { %v1711_v14 = vpop.f32.mrb[75].mxu0  ;;  %v6900_v18 = vsel %vm6873_vm11, %v5028_v35, -1e+30  ;;  %vm6921_vm14 = vcmp.le.s32.totalorder %v6731_v23, %v1099_v59  ;;  %v9067_v35 = vmov 0  ;;  %v1097_v59 = vadd.s32 96, %v6728_v13 }
 0x2b5   : > { %v4967_v3 = vpop.f32.mrb[44].mxu1  ;;  %v9068_v35 = vsel %vm6921_vm14, 4294967295, %v9067_v35  ;;  %v6932_v63 = vsel %vm6905_vm13, %v1711_v14, -1e+30  ;;  %v9073_v14 = vmov 0 }
 0x2b6   : > { %v1274_v21 = vpop.f32.mrb[45].mxu1  ;;  %9069 = vst [vmem:[#allocation55_spill] sm:$0xff] %v9068_v35  ;;  %v6928_v56 = vsel %vm6921_vm14, %v4967_v3, -1e+30  ;;  %vm6953_vm0 = vcmp.le.s32.totalorder %v6731_v23, %v1097_v59  ;;  %v7074_v35 = vpop.permute.xlu0 %1917 }
 0x2b7   : > { %v4968_v42 = vpop.f32.mrb[46].mxu1  ;;  %1313 = vmax.xlane.f32.xlu1 %v6832_v54  ;;  %1769 = vmax.xlane.f32.xlu0 %v6836_v45  ;;  %v9074_v14 = vsel %vm6953_vm0, 4294967295, %v9073_v14  ;;  %v6960_v47 = vsel %vm6953_vm0, %v1274_v21, -1e+30 }
 0x2b8   : > { %v1277_v9 = vpop.f32.mrb[47].mxu1  ;;  %v6944_v20 = vsel %vm6937_vm15, %v4968_v42, -1e+30  ;;  %9075 = vst [vmem:[#allocation57_spill] sm:$0xff] %v9074_v14 }
 0x2b9   : > { %v5031_v61 = vpop.f32.mrb[76].mxu0  ;;  %v6979_v21 = vsel %vm6969_vm1, %v1277_v9, -1e+30 }
 0x2ba   : > { %v1724_v10 = vpop.f32.mrb[77].mxu0  ;;  %v6948_v3 = vsel %vm6921_vm14, %v5031_v61, -1e+30  ;;  %v9076_v61 = vmov 0  ;;  %v7078_v25 = vpop.permute.xlu0 %1919 }
 0x2bb   : > { %1763 = vmax.xlane.f32.xlu1 %v6848_v49  ;;  %1315 = vmax.xlane.f32.xlu0 %v6852_v2  ;;  %v5032_v41 = vpop.f32.mrb[78].mxu0  ;;  %v9077_v61 = vsel %vm6969_vm1, 4294967295, %v9076_v61  ;;  %v6975_v59 = vsel %vm6953_vm0, %v1724_v10, -1e+30  ;;  %9087 = vst [vmem:[#allocation67_spill] sm:$0xff] %v7078_v25 }
 0x2bc   : > { %v1727_v24 = vpop.f32.mrb[79].mxu0  ;;  %v6964_v42 = vsel %vm6937_vm15, %v5032_v41, -1e+30  ;;  %9078 = vst [vmem:[#allocation58_spill] sm:$0xff] %v9077_v61 }
 0x2bd   : > { %v6985_v41 = vsel %vm6969_vm1, %v1727_v24, -1e+30 }
 0x2bf   : > { %1325 = vmax.xlane.f32.xlu1 %v6864_v31  ;;  %1765 = vmax.xlane.f32.xlu0 %v6868_v39 }
 0x2c3   : > { %1327 = vmax.xlane.f32.xlu0 %v6880_v58  ;;  %1775 = vmax.xlane.f32.xlu1 %v6884_v5 }
 0x2c7   : > { %1321 = vmax.xlane.f32.xlu1 %v6896_v28  ;;  %1777 = vmax.xlane.f32.xlu0 %v6900_v18 }
 0x2cb   : > { %1771 = vmax.xlane.f32.xlu1 %v6912_v22  ;;  %1323 = vmax.xlane.f32.xlu0 %v6916_v44 }
 0x2cf   : > { %1333 = vmax.xlane.f32.xlu1 %v6928_v56  ;;  %1773 = vmax.xlane.f32.xlu0 %v6932_v63 }
 0x2d3   : > { %1335 = vmax.xlane.f32.xlu0 %v6944_v20  ;;  %1783 = vmax.xlane.f32.xlu1 %v6948_v3 }
 0x2d7   : > { %1329 = vmax.xlane.f32.xlu1 %v6960_v47  ;;  %1785 = vmax.xlane.f32.xlu0 %v6964_v42 }
 0x2db   : > { %1779 = vmax.xlane.f32.xlu1 %v6975_v59  ;;  %1331 = vmax.xlane.f32.xlu0 %v6979_v21 }
 0x2df   : > { %1781 = vmax.xlane.f32.xlu0 %v6985_v41 }
 0x2e1   : > { %v5083_v23 = vpop.f32.mrb[80].mxu0 }
 0x2e2   : > { %v2134_v17 = vpop.f32.mrb[81].mxu0  ;;  %v6990_v10 = vsel %vm6734_vm2, %v5083_v23, -1e+30 }
 0x2e3   : > { %2217 = vmax.xlane.f32.xlu1 %v6990_v10  ;;  %v5084_v9 = vpop.f32.mrb[82].mxu0  ;;  %v7000_v24 = vsel %vm6745_vm3, %v2134_v17, -1e+30 }
 0x2e4   : > { %v2137_v13 = vpop.f32.mrb[83].mxu0  ;;  %v6995_v46 = vsel %vm6761_vm4, %v5084_v9, -1e+30 }
 0x2e5   : > { %2219 = vmax.xlane.f32.xlu0 %v6995_v46  ;;  %v7005_v23 = vsel %vm6777_vm5, %v2137_v13, -1e+30 }
 0x2e7   : > { %2213 = vmax.xlane.f32.xlu1 %v7000_v24 }
 0x2e9   : > { %v5087_v15 = vpop.f32.mrb[84].mxu0  ;;  %2215 = vmax.xlane.f32.xlu0 %v7005_v23 }
 0x2ea   : > { %v2150_v34 = vpop.f32.mrb[85].mxu0  ;;  %v7010_v9 = vsel %vm6793_vm6, %v5087_v15, -1e+30 }
 0x2eb   : > { %2225 = vmax.xlane.f32.xlu1 %v7010_v9  ;;  %v5088_v0 = vpop.f32.mrb[86].mxu0  ;;  %v7020_v13 = vsel %vm6825_vm8, %v2150_v34, -1e+30 }
 0x2ec   : > { %v2153_v33 = vpop.f32.mrb[87].mxu0  ;;  %v7015_v17 = vsel %vm6809_vm7, %v5088_v0, -1e+30 }
 0x2ed   : > { %2227 = vmax.xlane.f32.xlu0 %v7015_v17  ;;  %v7025_v15 = vsel %vm6841_vm9, %v2153_v33, -1e+30  ;;  %v7038_v33 = vpop.permute.xlu1 %1921 }
 0x2ee   : > { %9079 = vst [vmem:[#allocation59_spill] sm:$0xff] %v7038_v33 }
 0x2ef   : > { %2221 = vmax.xlane.f32.xlu1 %v7020_v13 }
 0x2f1   : > { %v5091_v55 = vpop.f32.mrb[88].mxu0  ;;  %2223 = vmax.xlane.f32.xlu0 %v7025_v15  ;;  %v7055_v30 = vpop.permute.xlu1 %1925 }
 0x2f2   : > { %v2166_v27 = vpop.f32.mrb[89].mxu0  ;;  %v7030_v0 = vsel %vm6857_vm10, %v5091_v55, -1e+30  ;;  %9082 = vst [vmem:[#allocation62_spill] sm:$0xff] %v7055_v30 }
 0x2f3   : > { %v5092_v16 = vpop.f32.mrb[90].mxu0  ;;  %v7035_v34 = vsel %vm6889_vm12, %v2166_v27, -1e+30 }
 0x2f4   : > { %v2169_v26 = vpop.f32.mrb[91].mxu0  ;;  %v7047_v51 = vsel %vm6873_vm11, %v5092_v16, -1e+30 }
 0x2f5   : > { %2233 = vmax.xlane.f32.xlu0 %v7030_v0  ;;  %v7072_v14 = vpop.permute.xlu1 %2367 }
 0x2f6   : > { %9085 = vst [vmem:[#allocation65_spill] sm:$0xff] %v7072_v14 }
 0x2f9   : > { %v5095_v32 = vpop.f32.mrb[92].mxu0  ;;  %2229 = vmax.xlane.f32.xlu0 %v7035_v34 }
 0x2fa   : > { %v2182_v36 = vpop.f32.mrb[93].mxu0  ;;  %v7042_v52 = vsel %vm6921_vm14, %v5095_v32, -1e+30  ;;  %v7059_v32 = vsel %vm6905_vm13, %v2169_v26, -1e+30  ;;  %v7076_v26 = vpop.permute.xlu1 %2371 }
 0x2fb   : > { %9080 = vst [vmem:[#allocation60_spill] sm:$0xff] %v7042_v52  ;;  %2241 = vmax.xlane.f32.xlu1 %v7042_v52  ;;  %v5096_v55 = vpop.f32.mrb[94].mxu0  ;;  %v7052_v27 = vsel %vm6953_vm0, %v2182_v36, -1e+30  ;;  %9083 = vst [vmem:[#allocation63_spill] sm:$0xff] %v7059_v32  ;;  %vm9126_vm0 = vcmask 261120  }
 0x2fc   : > { %v2185_v37 = vpop.f32.mrb[95].mxu0  ;;  %9081 = vst [vmem:[#allocation61_spill] sm:$0xff] %v7052_v27  ;;  %v7064_v16 = vsel %vm6937_vm15, %v5096_v55, -1e+30  ;;  %9086 = vst [vmem:[#allocation66_spill] sm:$0xff] %v7076_v26  ;;  %v7082_v55 = vpop.permute.xlu0 %1923 }
 0x2fd   : > { %2235 = vmax.xlane.f32.xlu0 %v7047_v51  ;;  %9084 = vst [vmem:[#allocation64_spill] sm:$0xff] %v7064_v16  ;;  %v7069_v36 = vsel %vm6969_vm1, %v2185_v37, -1e+30  ;;  %9089 = vst [vmem:[#allocation69_spill] sm:$0xff] %v7082_v55 }
 0x2fe   : > { %v7080_v7 = vpop.permute.xlu1 %2373  ;;  %vm9127_vm15 = vmmov %vm9126_vm0 }
 0x2ff   : > { %2237 = vmax.xlane.f32.xlu1 %v7052_v27  ;;  %9088 = vst [vmem:[#allocation68_spill] sm:$0xff] %v7080_v7  ;;  %vm9157_vm14 = vmmov %vm9126_vm0 }
 0x300   : > { %v7086_v30 = vpop.permute.xlu0 %1927  ;;  %vm9158_vm1 = vmmov %vm9126_vm0 }
 0x301   : > { %2231 = vmax.xlane.f32.xlu0 %v7059_v32  ;;  %9091 = vst [vmem:[#allocation71_spill] sm:$0xff] %v7086_v30  ;;  %vm9159_vm11 = vmmov %vm9126_vm0 }
 0x302   : > { %v7084_v19 = vpop.permute.xlu1 %2375  ;;  %vm9160_vm10 = vmmov %vm9126_vm0 }
 0x303   : > { %2243 = vmax.xlane.f32.xlu1 %v7064_v16  ;;  %9090 = vst [vmem:[#allocation70_spill] sm:$0xff] %v7084_v19  ;;  %vm9161_vm13 = vmmov %vm9126_vm0 }
 0x304   : > { %v7090_v61 = vpop.permute.xlu0 %2365 }
 0x305   : > { %2239 = vmax.xlane.f32.xlu0 %v7069_v36  ;;  %9093 = vst [vmem:[#allocation73_spill] sm:$0xff] %v7090_v61 }
 0x306   : > { %v7088_v37 = vpop.permute.xlu1 %2510 }
 0x307   : > { %9092 = vst [vmem:[#allocation72_spill] sm:$0xff] %v7088_v37 }
 0x308   : > { %v7094_v14 = vpop.permute.xlu0 %2369 }
 0x309   : > { %9095 = vst [vmem:[#allocation75_spill] sm:$0xff] %v7094_v14 }
 0x30a   : > { %v7092_v16 = vpop.permute.xlu1 %2512 }
 0x30b   : > { %9094 = vst [vmem:[#allocation74_spill] sm:$0xff] %v7092_v16 }
 0x30c   : > { %v7098_v26 = vpop.permute.xlu0 %2377 }
 0x30d   : > { %9097 = vst [vmem:[#allocation77_spill] sm:$0xff] %v7098_v26 }
 0x30e   : > { %v7096_v27 = vpop.permute.xlu1 %1929 }
 0x30f   : > { %9096 = vst [vmem:[#allocation76_spill] sm:$0xff] %v7096_v27 }
 0x312   : > { %v7100_v52 = vpop.permute.xlu1 %2379 }
 0x313   : > { %9098 = vst [vmem:[#allocation78_spill] sm:$0xff] %v7100_v52 }
 0x32c   : > { %v1310_v7 = vpop.xlane.xlu0 %1309 }
 0x32d   : > { %v1339_v55 = vsub.f32 %v6740_v43, %v1310_v7 }
 0x32f   : > { %v1357_v19 = vmul.f32 1.442695, %v1339_v55 }
 0x330   : > { %v1306_v33 = vpop.xlane.xlu0 %1305  ;;  %v1760_v30 = vpop.xlane.xlu1 %1759 }
 0x331   : > { %5685 = vpow2.f32 %v1357_v19  ;;  %v1337_v37 = vsub.f32 %v6752_v53, %v1306_v33  ;;  %v1789_v61 = vsub.f32 %v6756_v60, %v1760_v30 }
 0x333   : > { %v1353_v16 = vmul.f32 1.442695, %v1337_v37  ;;  %v1807_v32 = vmul.f32 1.442695, %v1789_v61 }
 0x334   : > { %v1312_v14 = vpop.xlane.xlu0 %1311  ;;  %v1756_v25 = vpop.xlane.xlu1 %1755 }
 0x335   : > { %5687 = vpow2.f32 %v1353_v16  ;;  %v1340_v26 = vsub.f32 %v6768_v11, %v1312_v14  ;;  %v1787_v52 = vsub.f32 %v6772_v8, %v1756_v25 }
 0x336   : > { %5689 = vpow2.f32 %v1807_v32 }
 0x337   : > { %v1359_v27 = vmul.f32 1.442695, %v1340_v26  ;;  %v1803_v43 = vmul.f32 1.442695, %v1787_v52 }
 0x338   : > { %v1308_v7 = vpop.xlane.xlu1 %1307  ;;  %v1762_v55 = vpop.xlane.xlu0 %1761 }
 0x339   : > { %5691 = vpow2.f32 %v1359_v27  ;;  %v1790_v19 = vsub.f32 %v6788_v48, %v1762_v55  ;;  %v1338_v53 = vsub.f32 %v6784_v6, %v1308_v7 }
 0x33a   : > { %5693 = vpow2.f32 %v1803_v43 }
 0x33b   : > { %v7109_v60 = vpop.eup %5685  ;;  %v1809_v30 = vmul.f32 1.442695, %v1790_v19  ;;  %v1355_v8 = vmul.f32 1.442695, %v1338_v53 }
 0x33c   : > { %v1318_v61 = vpop.xlane.xlu1 %1317  ;;  %v1758_v33 = vpop.xlane.xlu0 %1757  ;;  %1389 = vadd.xlane.f32.xlu1 %v7109_v60 }
 0x33d   : > { %v1343_v11 = vsub.f32 %v6800_v57, %v1318_v61  ;;  %5695 = vpow2.f32 %v1809_v30  ;;  %v1788_v52 = vsub.f32 %v6804_v62, %v1758_v33 }
 0x33f   : > { %v7114_v25 = vpop.eup %5687  ;;  %v1365_v14 = vmul.f32 1.442695, %v1343_v11  ;;  %v1805_v32 = vmul.f32 1.442695, %v1788_v52 }
 0x340   : > { %v7116_v48 = vpop.eup %5689  ;;  %v1320_v27 = vpop.xlane.xlu0 %1319  ;;  %1385 = vadd.xlane.f32.xlu1 %v7114_v25 }
 0x341   : > { %v1768_v6 = vpop.xlane.xlu1 %1767  ;;  %5697 = vpow2.f32 %v1365_v14  ;;  %1839 = vadd.xlane.f32.xlu0 %v7116_v48  ;;  %v1344_v7 = vsub.f32 %v6816_v50, %v1320_v27 }
 0x342   : > { %5699 = vpow2.f32 %v1355_v8  ;;  %v1793_v57 = vsub.f32 %v6820_v4, %v1768_v6 }
 0x343   : > { %v7121_v16 = vpop.eup %5691  ;;  %5701 = vpow2.f32 %v1805_v32 }
 0x344   : > { %v7123_v26 = vpop.eup %5693  ;;  %v1770_v37 = vpop.xlane.xlu0 %1769  ;;  %v1815_v55 = vmul.f32 1.442695, %v1793_v57 }
 0x345   : > { %v1314_v62 = vpop.xlane.xlu1 %1313  ;;  %1835 = vadd.xlane.f32.xlu1 %v7123_v26  ;;  %1391 = vadd.xlane.f32.xlu0 %v7121_v16  ;;  %v1794_v61 = vsub.f32 %v6836_v45, %v1770_v37 }
 0x346   : > { %v1341_v43 = vsub.f32 %v6832_v54, %v1314_v62  ;;  %v1367_v54 = vmul.f32 1.442695, %v1344_v7 }
 0x347   : > { %v7129_v53 = vpop.eup %5695  ;;  %v1817_v6 = vmul.f32 1.442695, %v1794_v61 }
 0x348   : > { %v1361_v19 = vmul.f32 1.442695, %v1341_v43  ;;  %v1316_v30 = vpop.xlane.xlu0 %1315 }
 0x349   : > { %v1764_v4 = vpop.xlane.xlu1 %1763  ;;  %1841 = vadd.xlane.f32.xlu0 %v7129_v53  ;;  %v1342_v11 = vsub.f32 %v6852_v2, %v1316_v30 }
 0x34a   : > { %5703 = vpow2.f32 %v1361_v19  ;;  %v1791_v33 = vsub.f32 %v6848_v49, %v1764_v4 }
 0x34b   : > { %5705 = vpow2.f32 %v1815_v55  ;;  %v7135_v8 = vpop.eup %5697  ;;  %v1363_v49 = vmul.f32 1.442695, %v1342_v11 }
 0x34c   : > { %v1811_v50 = vmul.f32 1.442695, %v1791_v33  ;;  %v7137_v52 = vpop.eup %5699  ;;  %v1766_v27 = vpop.xlane.xlu0 %1765  ;;  %1397 = vadd.xlane.f32.xlu1 %v7135_v8 }
 0x34d   : > { %v1326_v14 = vpop.xlane.xlu1 %1325  ;;  %1387 = vadd.xlane.f32.xlu0 %v7137_v52  ;;  %v1792_v32 = vsub.f32 %v6868_v39, %v1766_v27  ;;  %v7143_v2 = vpop.eup %5701 }
 0x34e   : > { %5707 = vpow2.f32 %v1811_v50  ;;  %v1347_v45 = vsub.f32 %v6864_v31, %v1326_v14 }
 0x34f   : > { %5709 = vpow2.f32 %v1367_v54  ;;  %v1813_v43 = vmul.f32 1.442695, %v1792_v32 }
 0x350   : > { %v1328_v57 = vpop.xlane.xlu0 %1327  ;;  %5711 = vpow2.f32 %v1817_v6  ;;  %v1373_v37 = vmul.f32 1.442695, %v1347_v45 }
 0x351   : > { %v1776_v62 = vpop.xlane.xlu1 %1775  ;;  %1837 = vadd.xlane.f32.xlu0 %v7143_v2  ;;  %5713 = vpow2.f32 %v1363_v49  ;;  %v1348_v30 = vsub.f32 %v6880_v58, %v1328_v57 }
 0x352   : > { %v1797_v7 = vsub.f32 %v6884_v5, %v1776_v62  ;;  %5715 = vpow2.f32 %v1373_v37 }
 0x353   : > { %5717 = vpow2.f32 %v1813_v43  ;;  %v1375_v27 = vmul.f32 1.442695, %v1348_v30 }
 0x354   : > { %v7147_v55 = vpop.eup %5703  ;;  %v1778_v4 = vpop.xlane.xlu0 %1777  ;;  %v1823_v61 = vmul.f32 1.442695, %v1797_v7 }
 0x355   : > { %v7149_v31 = vpop.eup %5705  ;;  %v1322_v19 = vpop.xlane.xlu1 %1321  ;;  %1393 = vadd.xlane.f32.xlu1 %v7147_v55  ;;  %v1798_v14 = vsub.f32 %v6900_v18, %v1778_v4 }
 0x356   : > { %v1345_v39 = vsub.f32 %v6896_v28, %v1322_v19  ;;  %1847 = vadd.xlane.f32.xlu0 %v7149_v31 }
 0x357   : > { %v1825_v62 = vmul.f32 1.442695, %v1798_v14 }
 0x358   : > { %v7155_v33 = vpop.eup %5707  ;;  %v1369_v5 = vmul.f32 1.442695, %v1345_v39  ;;  %v1324_v50 = vpop.xlane.xlu0 %1323 }
 0x359   : > { %v7157_v54 = vpop.eup %5709  ;;  %v1772_v11 = vpop.xlane.xlu1 %1771  ;;  %1843 = vadd.xlane.f32.xlu1 %v7155_v33  ;;  %v1346_v58 = vsub.f32 %v6916_v44, %v1324_v50 }
 0x35a   : > { %5719 = vpow2.f32 %v1369_v5  ;;  %v1795_v28 = vsub.f32 %v6912_v22, %v1772_v11  ;;  %1399 = vadd.xlane.f32.xlu0 %v7157_v54  ;;  %v7164_v6 = vpop.eup %5711 }
 0x35b   : > { %5721 = vpow2.f32 %v1823_v61  ;;  %v7166_v49 = vpop.eup %5713  ;;  %v1371_v22 = vmul.f32 1.442695, %v1346_v58 }
 0x35c   : > { %v1819_v45 = vmul.f32 1.442695, %v1795_v28  ;;  %v1774_v57 = vpop.xlane.xlu0 %1773  ;;  %v7172_v44 = vpop.eup %5715 }
 0x35d   : > { %v1334_v32 = vpop.xlane.xlu1 %1333  ;;  %1849 = vadd.xlane.f32.xlu1 %v7164_v6  ;;  %v1796_v37 = vsub.f32 %v6932_v63, %v1774_v57  ;;  %v7174_v43 = vpop.eup %5717 }
 0x35e   : > { %5723 = vpow2.f32 %v1819_v45  ;;  %v1351_v18 = vsub.f32 %v6928_v56, %v1334_v32  ;;  %1395 = vadd.xlane.f32.xlu0 %v7166_v49 }
 0x35f   : > { %5725 = vpow2.f32 %v1375_v27  ;;  %v1821_v56 = vmul.f32 1.442695, %v1796_v37 }
 0x360   : > { %v1336_v7 = vpop.xlane.xlu0 %1335  ;;  %5727 = vpow2.f32 %v1825_v62  ;;  %v1381_v4 = vmul.f32 1.442695, %v1351_v18 }
 0x361   : > { %v1784_v19 = vpop.xlane.xlu1 %1783  ;;  %1405 = vadd.xlane.f32.xlu1 %v7172_v44  ;;  %5729 = vpow2.f32 %v1371_v22  ;;  %v1352_v50 = vsub.f32 %v6944_v20, %v1336_v7 }
 0x362   : > { %1845 = vadd.xlane.f32.xlu0 %v7174_v43  ;;  %v1801_v39 = vsub.f32 %v6948_v3, %v1784_v19  ;;  %5731 = vpow2.f32 %v1381_v4 }
 0x363   : > { %5733 = vpow2.f32 %v1821_v56  ;;  %v1383_v45 = vmul.f32 1.442695, %v1352_v50 }
 0x364   : > { %v7179_v30 = vpop.eup %5719  ;;  %v1786_v5 = vpop.xlane.xlu0 %1785  ;;  %v1831_v14 = vmul.f32 1.442695, %v1801_v39 }
 0x365   : > { %v7181_v61 = vpop.eup %5721  ;;  %v1330_v63 = vpop.xlane.xlu1 %1329  ;;  %1401 = vadd.xlane.f32.xlu1 %v7179_v30 }
 0x366   : > { %9099 = vst [vmem:[#allocation79_spill] sm:$0xff] %v7181_v61  ;;  %v1349_v11 = vsub.f32 %v6960_v47, %v1330_v63  ;;  %1855 = vadd.xlane.f32.xlu0 %v7181_v61 }
 0x368   : > { %v7187_v28 = vpop.eup %5723  ;;  %v1377_v3 = vmul.f32 1.442695, %v1349_v11  ;;  %v1332_v58 = vpop.xlane.xlu0 %1331 }
 0x369   : > { %v7189_v27 = vpop.eup %5725  ;;  %1851 = vadd.xlane.f32.xlu1 %v7187_v28  ;;  %v1350_v47 = vsub.f32 %v6979_v21, %v1332_v58  ;;  %v1780_v20 = vpop.xlane.xlu1 %1779 }
 0x36a   : > { %5735 = vpow2.f32 %v1377_v3  ;;  %1407 = vadd.xlane.f32.xlu0 %v7189_v27  ;;  %v7194_v32 = vpop.eup %5727  ;;  %v1802_v3 = vsub.f32 %v6964_v42, %v1786_v5 }
 0x36b   : > { %5737 = vpow2.f32 %v1831_v14  ;;  %9100 = vst [vmem:[#allocation80_spill] sm:$0xff] %v7194_v32  ;;  %v7196_v57 = vpop.eup %5729  ;;  %v1379_v18 = vmul.f32 1.442695, %v1350_v47  ;;  %v1799_v14 = vsub.f32 %v6975_v59, %v1780_v20 }
 0x36c   : > { %v1782_v62 = vpop.xlane.xlu0 %1781  ;;  %5739 = vpow2.f32 %v1383_v45  ;;  %v7201_v37 = vpop.eup %5731 }
 0x36d   : > { %1857 = vadd.xlane.f32.xlu1 %v7194_v32  ;;  %v1800_v22 = vsub.f32 %v6985_v41, %v1782_v62  ;;  %v7203_v7 = vpop.eup %5733  ;;  %5741 = vpow2.f32 %v1379_v18  ;;  %v1827_v58 = vmul.f32 1.442695, %v1799_v14  ;;  %v1833_v62 = vmul.f32 1.442695, %v1802_v3 }
 0x36e   : > { %1403 = vadd.xlane.f32.xlu0 %v7196_v57 }
 0x36f   : > { %v1829_v21 = vmul.f32 1.442695, %v1800_v22 }
 0x370   : > { %v2218_v19 = vpop.xlane.xlu1 %2217 }
 0x371   : > { %1413 = vadd.xlane.f32.xlu1 %v7201_v37  ;;  %v2247_v4 = vsub.f32 %v6990_v10, %v2218_v19  ;;  %5743 = vpow2.f32 %v1829_v21 }
 0x372   : > { %1853 = vadd.xlane.f32.xlu0 %v7203_v7  ;;  %v2220_v45 = vpop.xlane.xlu0 %2219 }
 0x373   : > { %v2265_v41 = vmul.f32 1.442695, %v2247_v4  ;;  %v2248_v19 = vsub.f32 %v6995_v46, %v2220_v45 }
 0x374   : > { %v7208_v56 = vpop.eup %5735  ;;  %v2214_v47 = vpop.xlane.xlu1 %2213 }
 0x375   : > { %v7210_v39 = vpop.eup %5737  ;;  %1409 = vadd.xlane.f32.xlu1 %v7208_v56  ;;  %5745 = vpow2.f32 %v2265_v41  ;;  %v2245_v18 = vsub.f32 %v7000_v24, %v2214_v47  ;;  %v2267_v20 = vmul.f32 1.442695, %v2248_v19 }
 0x376   : > { %9101 = vst [vmem:[#allocation81_spill] sm:$0xff] %v7210_v39  ;;  %1863 = vadd.xlane.f32.xlu0 %v7210_v39  ;;  %v7214_v63 = vpop.eup %5739  ;;  %5747 = vpow2.f32 %v1827_v58  ;;  %v2216_v22 = vpop.xlane.xlu0 %2215 }
 0x377   : > { %v7217_v11 = vpop.eup %5741  ;;  %5749 = vpow2.f32 %v1833_v62  ;;  %v2261_v59 = vmul.f32 1.442695, %v2245_v18  ;;  %v2246_v21 = vsub.f32 %v7005_v23, %v2216_v22 }
 0x378   : > { %v2226_v3 = vpop.xlane.xlu1 %2225 }
 0x379   : > { %5751 = vpow2.f32 %v2261_v59  ;;  %v2263_v41 = vmul.f32 1.442695, %v2246_v21 }
 0x37a   : > { %1415 = vadd.xlane.f32.xlu0 %v7214_v63  ;;  %v2228_v42 = vpop.xlane.xlu0 %2227  ;;  %5753 = vpow2.f32 %v2267_v20 }
 0x37b   : > { %v7220_v10 = vpop.eup %5743  ;;  %5755 = vpow2.f32 %v2263_v41 }
 0x37c   : > { %9102 = vst [vmem:[#allocation82_spill] sm:$0xff] %v7220_v10  ;;  %v2222_v23 = vpop.xlane.xlu1 %2221 }
 0x37e   : > { %1411 = vadd.xlane.f32.xlu0 %v7217_v11  ;;  %v2224_v24 = vpop.xlane.xlu0 %2223 }
 0x37f   : > { %v7223_v50 = vpop.eup %5745 }
 0x380   : > { %9103 = vst [vmem:[#allocation83_spill] sm:$0xff] %v7223_v50  ;;  %v7236_v5 = vpop.eup %5747 }
 0x381   : > { %9104 = vst [vmem:[#allocation84_spill] sm:$0xff] %v7236_v5  ;;  %v7240_v4 = vpop.eup %5749 }
 0x382   : > { %1861 = vadd.xlane.f32.xlu0 %v7220_v10  ;;  %9105 = vst [vmem:[#allocation85_spill] sm:$0xff] %v7240_v4  ;;  %v7246_v46 = vpop.xlane.xlu0 %2233  ;;  %v2249_v10 = vsub.f32 %v7020_v13, %v2222_v23  ;;  %v2250_v13 = vsub.f32 %v7025_v15, %v2224_v24 }
 0x383   : > { %v7243_v14 = vpop.eup %5751 }
 0x384   : > { %9106 = vst [vmem:[#allocation86_spill] sm:$0xff] %v7243_v14  ;;  %v7248_v58 = vpop.eup %5753  ;;  %v2271_v23 = vmul.f32 1.442695, %v2250_v13 }
 0x385   : > { %9107 = vst [vmem:[#allocation87_spill] sm:$0xff] %v7248_v58  ;;  %v7253_v47 = vpop.eup %5755 }
 0x386   : > { %2297 = vadd.xlane.f32.xlu0 %v7223_v50  ;;  %2514 = vrot.lane.b32.xlu1 %v6480_v1, %s6080_s25  ;;  %v7251_v45 = vpop.xlane.xlu0 %2229  ;;  %9108 = vst [vmem:[#allocation88_spill] sm:$0xff] %v7253_v47 }
 0x388   : > { %v7255_v62 = vpop.xlane.xlu1 %2241 }
 0x38a   : > { %v7257_v18 = vpop.xlane.xlu0 %2235 }
 0x38c   : > { %v7260_v22 = vpop.xlane.xlu1 %2237 }
 0x38e   : > { %v7262_v19 = vpop.xlane.xlu0 %2231 }
 0x390   : > { %v7266_v59 = vpop.xlane.xlu1 %2243 }
 0x392   : > { %v2240_v20 = vpop.xlane.xlu0 %2239 }
 0x393   : > { %v2258_v32 = vsub.f32 %v7069_v36, %v2240_v20 }
 0x39c   : > { %2518 = vrot.lane.b32.xlu0 %v6504_v29, %s6080_s25 }
 0x3a0   : > { %2960 = vrot.lane.b32.xlu0 %v6452_v40, %s6078_s12 }
 0x3aa   : > { %1859 = vadd.xlane.f32.xlu1 %v7236_v5 }
 0x3ae   : > { %1865 = vadd.xlane.f32.xlu1 %v7240_v4 }
 0x3b2   : > { %2293 = vadd.xlane.f32.xlu1 %v7243_v14 }
 0x3b6   : > { %2299 = vadd.xlane.f32.xlu1 %v7248_v58 }
 0x3bf   : > { %2295 = vadd.xlane.f32.xlu0 %v7253_v47  ;;  %v2251_v47 = vsub.f32 %v7010_v9, %v2226_v3 }
 0x3c1   : > { %v2273_v39 = vmul.f32 1.442695, %v2251_v47  ;;  %v2287_v47 = vmul.f32 1.442695, %v2258_v32 }
 0x3c7   : > { %2516 = vrot.lane.b32.xlu1 %v6492_v12, %s6080_s25  ;;  %v2252_v12 = vsub.f32 %v7015_v17, %v2228_v42 }
 0x3c9   : > { %v1390_v21 = vpop.xlane.xlu1 %1389 }
 0x3cd   : > { %v1386_v50 = vpop.xlane.xlu1 %1385 }
 0x3ce   : > { %v7268_v41 = vpop.xlane.xlu0 %1839 }
 0x3d2   : > { %v1392_v40 = vpop.xlane.xlu0 %1391  ;;  %v7275_v58 = vpop.xlane.xlu1 %1835 }
 0x3d3   : > { %5757 = vrcp.f32 %v1392_v40 }
 0x3d4   : > { %5759 = vrcp.f32 %v1386_v50  ;;  %v2275_v50 = vmul.f32 1.442695, %v2252_v12 }
 0x3d5   : > { %2520 = vrot.lane.b32.xlu0 %v6516_v38, %s6080_s25  ;;  %5761 = vrcp.f32 %v1390_v21  ;;  %v2269_v38 = vmul.f32 1.442695, %v2249_v10 }
 0x3d6   : > { %v7272_v14 = vpop.xlane.xlu0 %1841 }
 0x3d9   : > { %v1398_v5 = vpop.xlane.xlu1 %1397 }
 0x3da   : > { %v1388_v4 = vpop.xlane.xlu0 %1387 }
 0x3db   : > { %5763 = vrcp.f32 %v1388_v4 }
 0x3dc   : > { %5765 = vpow2.f32 %v2273_v39 }
 0x3dd   : > { %v5758_v40 = vpop.eup %5757  ;;  %5767 = vpow2.f32 %v2269_v38  ;;  %v2255_v38 = vsub.f32 %v7030_v0, %v7246_v46  ;;  %v2253_v0 = vsub.f32 %v7035_v34, %v7251_v45  ;;  %v9110_v45 = vld [vmem:[#allocation67_spill] sm:$0xff] }
 0x3de   : > { %v7279_v61 = vpop.xlane.xlu0 %1837  ;;  %v5760_v21 = vpop.eup %5759  ;;  %v1436_v17 = vmul.f32 %v5758_v40, %v7121_v16  ;;  %5769 = vpow2.f32 %v2275_v50 }
 0x3df   : > { %v5762_v1 = vpop.eup %5761  ;;  %v1433_v36 = vmul.f32 %v5760_v21, %v7114_v25  ;;  %5771 = vpow2.f32 %v2287_v47  ;;  %v2277_v40 = vmul.f32 1.442695, %v2253_v0  ;;  %v9114_v0 = vld [vmem:[#allocation69_spill] sm:$0xff] }
 0x3e0   : > { %v1435_v12 = vmul.f32 %v5762_v1, %v7109_v60  ;;  %v2281_v1 = vmul.f32 1.442695, %v2255_v38  ;;  %v9109_v60 = vld [vmem:[#allocation35_spill] sm:$0xff] }
 0x3e2   : > { %v1394_v9 = vpop.xlane.xlu1 %1393  ;;  %v1450_v24 = vpack.c.bf16 %v1436_v17, %v1435_v12 }
 0x3e3   : > { %v7282_v3 = vpop.xlane.xlu0 %1847 }
 0x3e5   : > { %v5764_v4 = vpop.eup %5763 }
 0x3e6   : > { %v7286_v42 = vpop.xlane.xlu1 %1843  ;;  %v1434_v10 = vmul.f32 %v5764_v4, %v7137_v52  ;;  %v7293_v32 = vpop.eup %5765 }
 0x3e7   : > { %v1400_v39 = vpop.xlane.xlu0 %1399  ;;  %v7301_v52 = vpop.eup %5767 }
 0x3e8   : > { %5773 = vrcp.f32 %v1400_v39  ;;  %v1449_v15 = vpack.c.bf16 %v1434_v10, %v1433_v36  ;;  %v9112_v39 = vld [vmem:[#allocation59_spill] sm:$0xff] }
 0x3e9   : > { %5775 = vrcp.f32 %v1394_v9  ;;  %v7309_v9 = vpop.eup %5769 }
 0x3ea   : > { %v7295_v16 = vpop.xlane.xlu1 %1849  ;;  %5777 = vrcp.f32 %v1398_v5  ;;  %4985 = vmatprep.mubr.bf16.mxu1 %v1449_v15  ;;  %v2256_v5 = vsub.f32 %v7047_v51, %v7257_v18  ;;  %v7312_v34 = vpop.eup %5771  ;;  %v9111_v18 = vld [vmem:[#allocation63_spill] sm:$0xff] }
 0x3eb   : > { %v1396_v25 = vpop.xlane.xlu0 %1395  ;;  %2305 = vadd.xlane.f32.xlu1 %v7293_v32  ;;  %4986 = vmatmul.mubr.bf16.vlgmr.msra.gmra.mrb[48].mxu1 %v1450_v24  ;;  %v2254_v17 = vsub.f32 %v9111_v18, %v7262_v19  ;;  %v9113_v24 = vld [vmem:[#allocation60_spill] sm:$0xff] }
 0x3ec   : > { %5779 = vrcp.f32 %v1396_v25  ;;  %5034 = vmatpush3.bf16.msra.mxu1 %v9109_v60  ;;  %v2283_v4 = vmul.f32 1.442695, %v2256_v5  ;;  %v2259_v25 = vsub.f32 %v9113_v24, %v7255_v62  ;;  %v9115_v62 = vld [vmem:[#allocation61_spill] sm:$0xff] }
 0x3ed   : > { %5781 = vpow2.f32 %v2271_v23  ;;  %5035 = vmatprep.subr.bf16.mxu1 %v7074_v35 }
 0x3ee   : > { %v1406_v46 = vpop.xlane.xlu1 %1405  ;;  %5783 = vpow2.f32 %v2281_v1  ;;  %v2279_v1 = vmul.f32 1.442695, %v2254_v17  ;;  %v9118_v17 = vld [vmem:[#allocation71_spill] sm:$0xff] }
 0x3ef   : > { %v7304_v20 = vpop.xlane.xlu0 %1845  ;;  %2301 = vadd.xlane.f32.xlu1 %v7301_v52  ;;  %5785 = vpow2.f32 %v2277_v40  ;;  %v2257_v40 = vsub.f32 %v9115_v62, %v7260_v22 }
 0x3f0   : > { %5036 = vmatpush3.bf16.msra.mxu1 %v7074_v35  ;;  %5787 = vpow2.f32 %v2283_v4 }
 0x3f1   : > { %5037 = vmatprep.subr.bf16.mxu1 %v9110_v45  ;;  %v2285_v4 = vmul.f32 1.442695, %v2257_v40 }
 0x3f2   : > { %v1402_v50 = vpop.xlane.xlu1 %1401  ;;  %v5774_v21 = vpop.eup %5773 }
 0x3f3   : > { %v7315_v47 = vpop.xlane.xlu0 %1855  ;;  %2319 = vadd.xlane.f32.xlu1 %v7312_v34  ;;  %v5776_v13 = vpop.eup %5775  ;;  %v1440_v10 = vmul.f32 %v5774_v21, %v7157_v54  ;;  %v9117_v21 = vld [vmem:[#allocation62_spill] sm:$0xff] }
 0x3f4   : > { %2307 = vadd.xlane.f32.xlu0 %v7309_v9  ;;  %v5778_v51 = vpop.eup %5777  ;;  %5038 = vmatpush3.bf16.msra.mxu1 %v9110_v45  ;;  %v1437_v38 = vmul.f32 %v5776_v13, %v7147_v55  ;;  %v9116_v45 = vld [vmem:[#allocation64_spill] sm:$0xff] }
 0x3f5   : > { %5039 = vmatprep.subr.bf16.mxu1 %v9112_v39  ;;  %v1439_v19 = vmul.f32 %v5778_v51, %v7135_v8  ;;  %v2289_v8 = vmul.f32 1.442695, %v2259_v25 }
 0x3f6   : > { %v5780_v35 = vpop.eup %5779  ;;  %v7323_v36 = vpop.xlane.xlu1 %1851 }
 0x3f7   : > { %v7326_v12 = vpop.eup %5781  ;;  %v1408_v23 = vpop.xlane.xlu0 %1407  ;;  %v1438_v15 = vmul.f32 %v5780_v35, %v7166_v49  ;;  %v1452_v60 = vpack.c.bf16 %v1440_v10, %v1439_v19  ;;  %v9119_v10 = vld [vmem:[#allocation14_spill] sm:$0xff] }
 0x3f8   : > { %2303 = vadd.xlane.f32.xlu0 %v7326_v12  ;;  %5789 = vrcp.f32 %v1408_v23  ;;  %5040 = vmatpush3.bf16.msra.mxu1 %v9112_v39  ;;  %v7336_v55 = vpop.eup %5783 }
 0x3f9   : > { %v1451_v54 = vpack.c.bf16 %v1438_v15, %v1437_v38  ;;  %5791 = vrcp.f32 %v1402_v50  ;;  %5041 = vmatprep.subr.bf16.mxu1 %v9114_v0  ;;  %v2260_v50 = vsub.f32 %v9116_v45, %v7266_v59  ;;  %v9120_v15 = vld [vmem:[#allocation76_spill] sm:$0xff] }
 0x3fa   : > { %5793 = vrcp.f32 %v1406_v46  ;;  %v7338_v49 = vpop.xlane.xlu1 %1857  ;;  %v7347_v46 = vpop.eup %5785  ;;  %v9123_v45 = vld [vmem:[#allocation8_spill] sm:$0xff] }
 0x3fb   : > { %4989 = vmatprep.mubr.bf16.mxu1 %v1451_v54  ;;  %v1404_v5 = vpop.xlane.xlu0 %1403  ;;  %v7353_v22 = vpop.eup %5787  ;;  %v2291_v18 = vmul.f32 1.442695, %v2260_v50 }
 0x3fc   : > { %5795 = vrcp.f32 %v1404_v5  ;;  %2313 = vadd.xlane.f32.xlu0 %v7336_v55  ;;  %4990 = vmatmul.mubr.bf16.gmra.mrb[52].mxu1 %v1452_v60  ;;  %v9121_v60 = vld [vmem:[#allocation2_spill] sm:$0xff] }
 0x3fd   : > { %5797 = vpow2.f32 %v2279_v1  ;;  %5042 = vmatpush3.bf16.msra.mxu1 %v9114_v0 }
 0x3fe   : > { %5043 = vmatprep.subr.bf16.mxu1 %v9117_v21  ;;  %5799 = vpow2.f32 %v2289_v8  ;;  %v1414_v51 = vpop.xlane.xlu1 %1413 }
 0x3ff   : > { %v7349_v13 = vpop.xlane.xlu0 %1853  ;;  %5801 = vpow2.f32 %v2285_v4 }
 0x400   : > { %2309 = vadd.xlane.f32.xlu0 %v7347_v46  ;;  %5803 = vpow2.f32 %v2291_v18 }
 0x401   : > { %5044 = vmatpush3.bf16.msra.mxu1 %v9117_v21  ;;  %5805 = vrcp.f32 %v7275_v58  ;;  %v9122_v58 = vld [vmem:[#allocation73_spill] sm:$0xff] }
 0x402   : > { %5045 = vmatprep.subr.bf16.mxu1 %v9118_v17  ;;  %v5790_v35 = vpop.eup %5789  ;;  %v1410_v25 = vpop.xlane.xlu1 %1409  ;;  %5807 = vrcp.f32 %v7279_v61 }
 0x403   : > { %v7356_v59 = vpop.xlane.xlu0 %1863  ;;  %v5792_v39 = vpop.eup %5791  ;;  %v1444_v19 = vmul.f32 %v5790_v35, %v7189_v27 }
 0x404   : > { %2315 = vadd.xlane.f32.xlu0 %v7353_v22  ;;  %2962 = vrot.lane.b32.xlu1 %v9119_v10, %s6078_s12  ;;  %v5794_v23 = vpop.eup %5793  ;;  %v1441_v54 = vmul.f32 %v5792_v39, %v7179_v30 }
 0x405   : > { %5046 = vmatpush3.bf16.msra.mxu1 %v9118_v17  ;;  %v1443_v5 = vmul.f32 %v5794_v23, %v7172_v44  ;;  %v9124_v17 = vld [vmem:[#allocation12_spill] sm:$0xff] }
 0x406   : > { %v5796_v38 = vpop.eup %5795  ;;  %5047 = vmatprep.subr.bf16.mxu1 %v9120_v15 }
 0x407   : > { %v7364_v24 = vpop.eup %5797  ;;  %v1416_v1 = vpop.xlane.xlu0 %1415  ;;  %v1442_v0 = vmul.f32 %v5796_v38, %v7196_v57  ;;  %v1454_v8 = vpack.c.bf16 %v1444_v19, %v1443_v5 }
 0x408   : > { %2311 = vadd.xlane.f32.xlu0 %v7364_v24  ;;  %2486 = vrot.lane.b32.xlu1 %v9121_v60, %s6079_s24  ;;  %5809 = vrcp.f32 %v1416_v1  ;;  %v7376_v30 = vpop.eup %5799 }
 0x409   : > { %5048 = vmatpush3.bf16.msra.mxu1 %v9120_v15  ;;  %v1453_v27 = vpack.c.bf16 %v1442_v0, %v1441_v54  ;;  %5811 = vrcp.f32 %v1410_v25  ;;  %v7381_v44 = vpop.eup %5801 }
 0x40a   : > { %5097 = vmatprep.subr.bf16.mxu1 %v9122_v58  ;;  %5813 = vrcp.f32 %v1414_v51  ;;  %v7385_v62 = vpop.eup %5803 }
 0x40b   : > { %4993 = vmatprep.mubr.bf16.mxu1 %v1453_v27  ;;  %v1412_v61 = vpop.xlane.xlu0 %1411  ;;  %v5806_v40 = vpop.eup %5805 }
 0x40c   : > { %5815 = vrcp.f32 %v1412_v61  ;;  %2321 = vadd.xlane.f32.xlu0 %v7376_v30  ;;  %4994 = vmatmul.mubr.bf16.gmra.mrb[56].mxu1 %v1454_v8  ;;  %v5808_v50 = vpop.eup %5807  ;;  %v1883_v19 = vmul.f32 %v5806_v40, %v7123_v26  ;;  %v9128_v26 = vld [vmem:[#allocation24_spill] sm:$0xff]  ;;  %v9129_v61 = vld [vmem:[#allocation65_spill] sm:$0xff] }
 0x40d   : > { %2968 = vrot.lane.b32.xlu1 %v6504_v29, %s6078_s12  ;;  %5817 = vrcp.f32 %v7272_v14  ;;  %v1884_v23 = vmul.f32 %v5808_v50, %v7143_v2 }
 0x40e   : > { %5819 = vrcp.f32 %v7304_v20 }
 0x40f   : > { %v7383_v57 = vpop.xlane.xlu0 %1861  ;;  %5821 = vrcp.f32 %v7268_v41 }
 0x410   : > { %2317 = vadd.xlane.f32.xlu0 %v7381_v44  ;;  %5823 = vrcp.f32 %v7286_v42  ;;  %v9125_v42 = vld [vmem:[#allocation29_spill] sm:$0xff] }
 0x411   : > { %2492 = vrot.lane.b32.xlu1 %v9123_v45, %s6079_s24  ;;  %5825 = vrcp.f32 %v7295_v16 }
 0x412   : > { %v5810_v21 = vpop.eup %5809  ;;  %5827 = vrcp.f32 %v7349_v13 }
 0x413   : > { %v7393_v4 = vpop.xlane.xlu0 %2297  ;;  %v5812_v51 = vpop.eup %5811  ;;  %v1448_v35 = vmul.f32 %v5810_v21, %v7214_v63  ;;  %5829 = vrcp.f32 %v7282_v3  ;;  %v9134_v21 = vld [vmem:[#allocation79_spill] sm:$0xff] }
 0x414   : > { %2323 = vadd.xlane.f32.xlu0 %v7385_v62  ;;  %v5814_v18 = vpop.eup %5813  ;;  %v1445_v20 = vmul.f32 %v5812_v51, %v7208_v56  ;;  %5831 = vrcp.f32 %v7323_v36 }
 0x415   : > { %2494 = vrot.lane.b32.xlu1 %v9124_v17, %s6079_s24  ;;  %v1447_v38 = vmul.f32 %v5814_v18, %v7201_v37  ;;  %5833 = vrcp.f32 %v7338_v49  ;;  %v9130_v49 = vld [vmem:[#allocation75_spill] sm:$0xff]  ;;  %v9135_v18 = vld [vmem:[#allocation68_spill] sm:$0xff] }
 0x416   : > { %v5816_v14 = vpop.eup %5815  ;;  %5835 = vrcp.f32 %v7315_v47  ;;  %v9136_v17 = vld [vmem:[#allocation31_spill] sm:$0xff] }
 0x417   : > { %v7400_v39 = vpop.permute.xlu0 %2518  ;;  %v1446_v41 = vmul.f32 %v5816_v14, %v7217_v11  ;;  %v1456_v63 = vpack.c.bf16 %v1448_v35, %v1447_v38  ;;  %v5818_v25 = vpop.eup %5817  ;;  %v1899_v11 = vpack.c.bf16 %v1884_v23, %v1883_v19  ;;  %5837 = vrcp.f32 %v7383_v57  ;;  %v9139_v38 = vld [vmem:[#allocation77_spill] sm:$0xff]  ;;  %v9141_v57 = vld [vmem:[#allocation78_spill] sm:$0xff] }
 0x418   : > { %v5820_v2 = vpop.eup %5819  ;;  %v1886_v1 = vmul.f32 %v5818_v25, %v7129_v53  ;;  %v2515_v35 = vpop.permute.xlu1 %2514 }
 0x419   : > { %2972 = vrot.lane.b32.xlu1 %v9125_v42, %s6078_s12  ;;  %v1455_v15 = vpack.c.bf16 %v1446_v41, %v1445_v20  ;;  %v5822_v16 = vpop.eup %5821  ;;  %v1888_v3 = vmul.f32 %v5820_v2, %v7174_v43  ;;  %v9137_v20 = vld [vmem:[#allocation70_spill] sm:$0xff]  ;;  %v9144_v2 = vld [vmem:[#allocation27_spill] sm:$0xff] }
 0x41a   : > { %v5824_v13 = vpop.eup %5823  ;;  %v1885_v54 = vmul.f32 %v5822_v16, %v7116_v48  ;;  %v9138_v41 = vld [vmem:[#allocation22_spill] sm:$0xff] }
 0x41b   : > { %4997 = vmatprep.mubr.bf16.mxu1 %v1455_v15  ;;  %v2961_v56 = vpop.permute.xlu0 %2960  ;;  %v1887_v36 = vmul.f32 %v5824_v13, %v7155_v33  ;;  %v5826_v60 = vpop.eup %5825  ;;  %v9140_v15 = vld [vmem:[#allocation4_spill] sm:$0xff] }
 0x41c   : > { %4998 = vmatmul.mubr.bf16.gmra.mrb[60].mxu1 %v1456_v63  ;;  %5353 = vmatprep.subr.msk.bf16.mxu0 %vm9126_vm0, %v2961_v56  ;;  %v3001_v37 = vsel %vm9127_vm15, %v2961_v56, 0  ;;  %v1900_v0 = vpack.c.bf16 %v1886_v1, %v1885_v54  ;;  %v5828_v27 = vpop.eup %5827  ;;  %v1890_v48 = vmul.f32 %v5826_v60, %v7164_v6  ;;  %v9131_v6 = vld [vmem:[#allocation66_spill] sm:$0xff]  ;;  %v9148_v60 = vld [vmem:[#allocation81_spill] sm:$0xff]  ;;  %vm9155_vm15 = vmmov %vm9126_vm0 }
 0x41d   : > { %2500 = vrot.lane.b32.xlu1 %v9128_v26, %s6079_s24  ;;  %5049 = vmatprep.mubr.bf16.mxu1 %v1899_v11  ;;  %v1901_v5 = vpack.c.bf16 %v1888_v3, %v1887_v36  ;;  %v5830_v8 = vpop.eup %5829  ;;  %v1892_v43 = vmul.f32 %v5828_v27, %v7203_v7  ;;  %v9133_v7 = vld [vmem:[#allocation80_spill] sm:$0xff]  ;;  %v9142_v63 = vld [vmem:[#allocation6_spill] sm:$0xff]  ;;  %v9149_v27 = vld [vmem:[#allocation85_spill] sm:$0xff] }
 0x41e   : > { %5194 = vmatpush3.bf16.xpose.msra.mxu0 %v3001_v37  ;;  %v5832_v53 = vpop.eup %5831  ;;  %v1889_v33 = vmul.f32 %v5830_v8, %v7149_v31  ;;  %v9132_v31 = vld [vmem:[#allocation18_spill] sm:$0xff]  ;;  %v9145_v37 = vld [vmem:[#allocation84_spill] sm:$0xff] }
 0x41f   : > { %v1891_v47 = vmul.f32 %v5832_v53, %v7187_v28  ;;  %v5834_v40 = vpop.eup %5833  ;;  %v9146_v26 = vld [vmem:[#allocation82_spill] sm:$0xff]  ;;  %v9147_v36 = vld [vmem:[#allocation16_spill] sm:$0xff] }
 0x420   : > { %v5836_v50 = vpop.eup %5835  ;;  %v1894_v28 = vmul.f32 %v5834_v40, %v9133_v7 }
 0x421   : > { %v1903_v45 = vpack.c.bf16 %v1892_v43, %v1891_v47  ;;  %v1893_v51 = vmul.f32 %v5836_v50, %v9134_v21  ;;  %v5838_v25 = vpop.eup %5837 }
 0x422   : > { %v1896_v13 = vmul.f32 %v5838_v25, %v9146_v26 }
 0x423   : > { %v1904_v14 = vpack.c.bf16 %v1894_v28, %v1893_v51  ;;  %v9154_v28 = vld [vmem:[#allocation83_spill] sm:$0xff] }
 0x424   : > { %5050 = vmatmul.mubr.bf16.vlgmr.msra.gmra.mrb[64].mxu1 %v1900_v0 }
 0x425   : > { %5098 = vmatpush3.bf16.msra.mxu1 %v9122_v58  ;;  %5053 = vmatprep.mubr.bf16.mxu1 %v1901_v5  ;;  %v1902_v58 = vpack.c.bf16 %v1890_v48, %v1889_v33 }
 0x426   : > { %5099 = vmatprep.subr.bf16.mxu1 %v9129_v61 }
 0x429   : > { %5100 = vmatpush3.bf16.msra.mxu1 %v9129_v61  ;;  %v9150_v61 = vld [vmem:[#allocation20_spill] sm:$0xff] }
 0x42a   : > { %5101 = vmatprep.subr.bf16.mxu1 %v9130_v49  ;;  %2522 = vrot.lane.b32.xlu0 %v9125_v42, %s6080_s25 }
 0x42c   : > { %5054 = vmatmul.mubr.bf16.gmra.mrb[68].mxu1 %v1902_v58  ;;  %v9151_v58 = vld [vmem:[#allocation87_spill] sm:$0xff] }
 0x42d   : > { %5102 = vmatpush3.bf16.msra.mxu1 %v9130_v49  ;;  %5057 = vmatprep.mubr.bf16.mxu1 %v1903_v45  ;;  %v9152_v45 = vld [vmem:[#allocation86_spill] sm:$0xff] }
 0x42e   : > { %5103 = vmatprep.subr.bf16.mxu1 %v9131_v6  ;;  %2964 = vrot.lane.b32.xlu0 %v9132_v31, %s6078_s12 }
 0x431   : > { %5104 = vmatpush3.bf16.msra.mxu1 %v9131_v6  ;;  %v9153_v6 = vld [vmem:[#allocation88_spill] sm:$0xff] }
 0x432   : > { %5105 = vmatprep.subr.bf16.mxu1 %v9135_v18  ;;  %2524 = vrot.lane.b32.xlu0 %v9136_v17, %s6080_s25 }
 0x434   : > { %5058 = vmatmul.mubr.bf16.gmra.mrb[72].mxu1 %v1904_v14  ;;  %v9156_v14 = vld [vmem:[#allocation74_spill] sm:$0xff] }
 0x435   : > { %5106 = vmatpush3.bf16.msra.mxu1 %v9135_v18 }
 0x436   : > { %5107 = vmatprep.subr.bf16.mxu1 %v9137_v20  ;;  %2966 = vrot.lane.b32.xlu0 %v9138_v41, %s6078_s12 }
 0x437   : > { %v1860_v23 = vpop.xlane.xlu1 %1859 }
 0x438   : > { %5839 = vrcp.f32 %v1860_v23  ;;  %v2557_v23 = vsel %vm9159_vm11, %v2515_v35, 0  ;;  %vm9166_vm11 = vmmov %vm9126_vm0 }
 0x439   : > { %5108 = vmatpush3.bf16.msra.mxu1 %v9137_v20  ;;  %5841 = vrcp.f32 %v7356_v59  ;;  %v9143_v59 = vld [vmem:[#allocation72_spill] sm:$0xff]  ;;  %v2554_v20 = vsel %vm9157_vm14, %v9156_v14, 0  ;;  %vm9163_vm14 = vmmov %vm9126_vm0 }
 0x43a   : > { %5109 = vmatprep.subr.bf16.mxu1 %v9139_v38  ;;  %2488 = vrot.lane.b32.xlu0 %v9140_v15, %s6079_s24  ;;  %v2563_v25 = vsel %vm9163_vm14, %v7400_v39, 0  ;;  %vm9169_vm14 = vmmov %vm9126_vm0 }
 0x43b   : > { %v1866_v19 = vpop.xlane.xlu1 %1865 }
 0x43c   : > { %5843 = vrcp.f32 %v1866_v19 }
 0x43d   : > { %5110 = vmatpush3.bf16.msra.mxu1 %v9139_v38 }
 0x43e   : > { %5111 = vmatprep.subr.bf16.mxu1 %v9141_v57  ;;  %2490 = vrot.lane.b32.xlu0 %v9142_v63, %s6079_s24 }
 0x43f   : > { %v2294_v56 = vpop.xlane.xlu1 %2293 }
 0x441   : > { %5112 = vmatpush3.bf16.msra.mxu1 %v9141_v57 }
 0x442   : > { %v5840_v11 = vpop.eup %5839  ;;  %5345 = vmatprep.subr.msk.bf16.mxu1 %vm9126_vm0, %v9143_v59  ;;  %2970 = vrot.lane.b32.xlu0 %v9144_v2, %s6078_s12 }
 0x443   : > { %v1895_v16 = vmul.f32 %v5840_v11, %v9145_v37  ;;  %v5842_v1 = vpop.eup %5841  ;;  %v2300_v0 = vpop.xlane.xlu1 %2299 }
 0x444   : > { %v1897_v5 = vmul.f32 %v5842_v1, %v9148_v60  ;;  %5845 = vrcp.f32 %v2300_v0 }
 0x445   : > { %v1905_v3 = vpack.c.bf16 %v1896_v13, %v1895_v16  ;;  %5847 = vrcp.f32 %v2294_v56 }
 0x446   : > { %v5844_v54 = vpop.eup %5843  ;;  %2496 = vrot.lane.b32.xlu0 %v9147_v36, %s6079_s24  ;;  %5849 = vrcp.f32 %v7393_v4  ;;  %v2551_v4 = vsel %vm9155_vm15, %v9143_v59, 0  ;;  %vm9162_vm15 = vmmov %vm9126_vm0 }
 0x447   : > { %5061 = vmatprep.mubr.bf16.mxu1 %v1905_v3  ;;  %v1898_v8 = vmul.f32 %v5844_v54, %v9149_v27  ;;  %v2517_v38 = vpop.permute.xlu1 %2516 }
 0x448   : > { %v2560_v15 = vsel %vm9161_vm13, %v2517_v38, 0  ;;  %vm9167_vm13 = vmmov %vm9126_vm0 }
 0x449   : > { %v1906_v53 = vpack.c.bf16 %v1898_v8, %v1897_v5 }
 0x44a   : > { %2498 = vrot.lane.b32.xlu0 %v9150_v61, %s6079_s24 }
 0x44b   : > { %5062 = vmatmul.mubr.bf16.gmra.mrb[76].mxu1 %v1906_v53 }
 0x44c   : > { %v2296_v48 = vpop.xlane.xlu0 %2295 }
 0x44d   : > { %5851 = vrcp.f32 %v2296_v48 }
 0x44e   : > { %2974 = vrot.lane.b32.xlu0 %v9136_v17, %s6078_s12  ;;  %v5846_v43 = vpop.eup %5845 }
 0x44f   : > { %v5848_v33 = vpop.eup %5847  ;;  %v2344_v40 = vmul.f32 %v5846_v43, %v9151_v58 }
 0x450   : > { %v5850_v47 = vpop.eup %5849  ;;  %v2341_v50 = vmul.f32 %v5848_v33, %v9152_v45  ;;  %v2521_v63 = vpop.permute.xlu0 %2520 }
 0x451   : > { %v2343_v21 = vmul.f32 %v5850_v47, %v9154_v28 }
 0x453   : > { %v2358_v18 = vpack.c.bf16 %v2344_v40, %v2343_v21 }
 0x457   : > { %v5852_v49 = vpop.eup %5851 }
 0x458   : > { %v2342_v7 = vmul.f32 %v5852_v49, %v9153_v6 }
 0x45a   : > { %v2357_v51 = vpack.c.bf16 %v2342_v7, %v2341_v50 }
 0x45c   : > { %5113 = vmatprep.mubr.bf16.mxu1 %v2357_v51 }
 0x45d   : > { %5114 = vmatmul.mubr.bf16.vlgmr.msra.gmra.mrb[80].mxu1 %v2358_v18 }
 0x45e   : > { %5130 = vmatpush3.bf16.xpose.msra.mxu1 %v2551_v4 }
 0x45f   : > { %5346 = vmatprep.subr.msk.bf16.mxu1 %vm9126_vm0, %v9156_v14 }
 0x466   : > { %5132 = vmatpush3.bf16.xpose.msra.mxu1 %v2554_v20 }
 0x467   : > { %5347 = vmatprep.subr.msk.bf16.mxu1 %vm9158_vm1, %v2515_v35  ;;  %vm9164_vm1 = vmmov %vm9126_vm0 }
 0x46e   : > { %5134 = vmatpush3.bf16.xpose.msra.mxu1 %v2557_v23 }
 0x46f   : > { %5348 = vmatprep.subr.msk.bf16.mxu1 %vm9160_vm10, %v2517_v38  ;;  %vm9165_vm10 = vmmov %vm9126_vm0 }
 0x470   : > { %v2566_v59 = vsel %vm9165_vm10, %v2521_v63, 0  ;;  %vm9171_vm10 = vmmov %vm9126_vm0 }
 0x476   : > { %5136 = vmatpush3.bf16.xpose.msra.mxu1 %v2560_v15 }
 0x477   : > { %5349 = vmatprep.subr.msk.bf16.mxu1 %vm9162_vm15, %v7400_v39  ;;  %vm9168_vm15 = vmmov %vm9126_vm0 }
 0x478   : > { %v2306_v19 = vpop.xlane.xlu1 %2305 }
 0x47c   : > { %v2302_v57 = vpop.xlane.xlu1 %2301 }
 0x47e   : > { %5138 = vmatpush3.bf16.xpose.msra.mxu1 %v2563_v25 }
 0x47f   : > { %5350 = vmatprep.subr.msk.bf16.mxu1 %vm9164_vm1, %v2521_v63  ;;  %vm9170_vm1 = vmmov %vm9126_vm0 }
 0x480   : > { %v2320_v35 = vpop.xlane.xlu1 %2319 }
 0x481   : > { %v2308_v56 = vpop.xlane.xlu0 %2307 }
 0x482   : > { %5853 = vrcp.f32 %v2308_v56 }
 0x483   : > { %5855 = vrcp.f32 %v2302_v57 }
 0x484   : > { %v2963_v11 = vpop.permute.xlu1 %2962  ;;  %5857 = vrcp.f32 %v2306_v19 }
 0x485   : > { %v2304_v37 = vpop.xlane.xlu0 %2303  ;;  %5354 = vmatprep.subr.msk.bf16.mxu0 %vm9166_vm11, %v2963_v11  ;;  %v3004_v16 = vsel %vm9167_vm13, %v2963_v11, 0  ;;  %vm9172_vm11 = vmmov %vm9126_vm0 }
 0x486   : > { %5140 = vmatpush3.bf16.xpose.msra.mxu1 %v2566_v59  ;;  %5859 = vrcp.f32 %v2304_v37  ;;  %5196 = vmatpush3.bf16.xpose.msra.mxu0 %v3004_v16  ;;  %vm9173_vm13 = vmmov %vm9126_vm0 }
 0x488   : > { %v2487_v18 = vpop.permute.xlu1 %2486 }
 0x489   : > { %v2314_v39 = vpop.xlane.xlu0 %2313 }
 0x48c   : > { %v5854_v26 = vpop.eup %5853  ;;  %v2969_v15 = vpop.permute.xlu1 %2968 }
 0x48d   : > { %v2310_v13 = vpop.xlane.xlu0 %2309  ;;  %v5856_v1 = vpop.eup %5855  ;;  %v2348_v36 = vmul.f32 %v5854_v26, %v7309_v9 }
 0x48e   : > { %v5858_v3 = vpop.eup %5857  ;;  %v2345_v60 = vmul.f32 %v5856_v1, %v7301_v52 }
 0x48f   : > { %v2347_v27 = vmul.f32 %v5858_v3, %v7293_v32 }
 0x490   : > { %v5860_v54 = vpop.eup %5859 }
 0x491   : > { %v2316_v0 = vpop.xlane.xlu0 %2315  ;;  %v2346_v5 = vmul.f32 %v5860_v54, %v7326_v12  ;;  %v2360_v53 = vpack.c.bf16 %v2348_v36, %v2347_v27 }
 0x492   : > { %5861 = vrcp.f32 %v2316_v0 }
 0x493   : > { %v2359_v8 = vpack.c.bf16 %v2346_v5, %v2345_v60  ;;  %5863 = vrcp.f32 %v2310_v13 }
 0x494   : > { %5865 = vrcp.f32 %v2314_v39 }
 0x495   : > { %5117 = vmatprep.mubr.bf16.mxu1 %v2359_v8  ;;  %v2312_v61 = vpop.xlane.xlu0 %2311 }
 0x496   : > { %5867 = vrcp.f32 %v2312_v61  ;;  %5118 = vmatmul.mubr.bf16.gmra.mrb[84].mxu1 %v2360_v53  ;;  %v9196_v53 = vld [vmem:[#allocation5_spill] sm:$0xff]  ;;  %v9198_v61 = vld [vmem:[#allocation7_spill] sm:$0xff] }
 0x497   : > { %5869 = vrcp.f32 %v2320_v35 }
 0x499   : > { %v2322_v48 = vpop.xlane.xlu0 %2321 }
 0x49c   : > { %v5862_v43 = vpop.eup %5861 }
 0x49d   : > { %v2318_v9 = vpop.xlane.xlu0 %2317  ;;  %v5864_v33 = vpop.eup %5863  ;;  %v2352_v32 = vmul.f32 %v5862_v43, %v7353_v22 }
 0x49e   : > { %5871 = vrcp.f32 %v2318_v9  ;;  %v5866_v52 = vpop.eup %5865  ;;  %v2349_v49 = vmul.f32 %v5864_v33, %v7347_v46 }
 0x49f   : > { %5873 = vrcp.f32 %v2322_v48  ;;  %v2351_v40 = vmul.f32 %v5866_v52, %v7336_v55  ;;  %v9204_v52 = vld [vmem:[#allocation9_spill] sm:$0xff] }
 0x4a0   : > { %v5868_v47 = vpop.eup %5867 }
 0x4a1   : > { %v2324_v12 = vpop.xlane.xlu0 %2323  ;;  %v2350_v58 = vmul.f32 %v5868_v47, %v7364_v24  ;;  %v2362_v50 = vpack.c.bf16 %v2352_v32, %v2351_v40  ;;  %v5870_v7 = vpop.eup %5869  ;;  %v9206_v47 = vld [vmem:[#allocation13_spill] sm:$0xff] }
 0x4a2   : > { %5875 = vrcp.f32 %v2324_v12  ;;  %v2354_v24 = vmul.f32 %v5870_v7, %v7312_v34  ;;  %v9208_v32 = vld [vmem:[#allocation17_spill] sm:$0xff] }
 0x4a3   : > { %v2361_v45 = vpack.c.bf16 %v2350_v58, %v2349_v49  ;;  %v9209_v12 = vld [vmem:[#allocation21_spill] sm:$0xff] }
 0x4a5   : > { %5121 = vmatprep.mubr.bf16.mxu1 %v2361_v45  ;;  %v2523_v6 = vpop.permute.xlu0 %2522 }
 0x4a6   : > { %5122 = vmatmul.mubr.bf16.gmra.mrb[88].mxu1 %v2362_v50  ;;  %5351 = vmatprep.subr.msk.bf16.mxu1 %vm9126_vm0, %v2523_v6  ;;  %v2569_v28 = vsel %vm9168_vm15, %v2523_v6, 0  ;;  %vm9174_vm15 = vmmov %vm9126_vm0  ;;  %v9215_v50 = vld [vmem:[#allocation25_spill] sm:$0xff] }
 0x4a7   : > { %5142 = vmatpush3.bf16.xpose.msra.mxu1 %v2569_v28 }
 0x4a8   : > { %v5872_v22 = vpop.eup %5871 }
 0x4a9   : > { %v2965_v21 = vpop.permute.xlu0 %2964  ;;  %v2353_v46 = vmul.f32 %v5872_v22, %v7381_v44  ;;  %v5874_v51 = vpop.eup %5873 }
 0x4aa   : > { %5355 = vmatprep.subr.msk.bf16.mxu0 %vm9169_vm14, %v2965_v21  ;;  %v3007_v55 = vsel %vm9170_vm1, %v2965_v21, 0  ;;  %v2355_v23 = vmul.f32 %v5874_v51, %v7376_v30  ;;  %vm9175_vm14 = vmmov %vm9126_vm0 }
 0x4ab   : > { %5198 = vmatpush3.bf16.xpose.msra.mxu0 %v3007_v55  ;;  %v2363_v4 = vpack.c.bf16 %v2354_v24, %v2353_v46  ;;  %vm9176_vm1 = vmmov %vm9126_vm0 }
 0x4ac   : > { %v5876_v14 = vpop.eup %5875 }
 0x4ad   : > { %5125 = vmatprep.mubr.bf16.mxu1 %v2363_v4  ;;  %v2525_v20 = vpop.permute.xlu0 %2524  ;;  %v2356_v38 = vmul.f32 %v5876_v14, %v7385_v62  ;;  %v2493_v62 = vpop.permute.xlu1 %2492 }
 0x4ae   : > { %5352 = vmatprep.subr.msk.bf16.mxu1 %vm9171_vm10, %v2525_v20  ;;  %v2572_v44 = vsel %vm9172_vm11, %v2525_v20, 0  ;;  %vm9177_vm10 = vmmov %vm9126_vm0 }
 0x4af   : > { %5144 = vmatpush3.bf16.xpose.msra.mxu1 %v2572_v44  ;;  %v2364_v34 = vpack.c.bf16 %v2356_v38, %v2355_v23  ;;  %vm9178_vm11 = vmmov %vm9126_vm0 }
 0x4b0   : > { %v3013_v25 = vsel %vm9178_vm11, %v2969_v15, 0  ;;  %vm9188_vm11 = vmmov %vm9126_vm0 }
 0x4b1   : > { %5126 = vmatmul.mubr.bf16.gmra.mrb[92].mxu1 %v2364_v34  ;;  %v2967_v19 = vpop.permute.xlu0 %2966  ;;  %v2495_v35 = vpop.permute.xlu1 %2494 }
 0x4b2   : > { %5145 = vmatprep.mubr.msk.bf16.mxu1 %vm9173_vm13, %v2487_v18  ;;  %5356 = vmatprep.subr.msk.bf16.mxu0 %vm9126_vm0, %v2967_v19  ;;  %v3010_v57 = vsel %vm9174_vm15, %v2967_v19, 0  ;;  %vm9179_vm13 = vmmov %vm9126_vm0 }
 0x4b3   : > { %5200 = vmatpush3.bf16.xpose.msra.mxu0 %v3010_v57  ;;  %vm9184_vm15 = vmmov %vm9126_vm0 }
 0x4b4   : > { %5357 = vmatprep.subr.msk.bf16.mxu0 %vm9175_vm14, %v2969_v15  ;;  %vm9185_vm14 = vmmov %vm9126_vm0 }
 0x4b5   : > { %v2489_v30 = vpop.permute.xlu0 %2488  ;;  %v2973_v13 = vpop.permute.xlu1 %2972 }
 0x4b9   : > { %5146 = vmatmul.mubr.msk.bf16.vlgmr.msra.gmra.mrb[96].mxu1 %vm9176_vm1, %v2489_v30  ;;  %v2491_v63 = vpop.permute.xlu0 %2490  ;;  %vm9186_vm1 = vmmov %vm9126_vm0  ;;  %v2501_v0 = vpop.permute.xlu1 %2500 }
 0x4ba   : > { %5149 = vmatprep.mubr.msk.bf16.mxu1 %vm9177_vm10, %v2491_v63  ;;  %vm9187_vm10 = vmmov %vm9126_vm0 }
 0x4bb   : > { %5202 = vmatpush3.bf16.xpose.msra.mxu0 %v3013_v25 }
 0x4bd   : > { %v2971_v56 = vpop.permute.xlu0 %2970 }
 0x4be   : > { %5358 = vmatprep.subr.msk.bf16.mxu0 %vm9179_vm13, %v2971_v56  ;;  %v7521_v11 = vpop.f32.mrb[48].mxu1  ;;  %v3016_v26 = vsel %vm9185_vm14, %v2971_v56, 0  ;;  %vm9189_vm13 = vmmov %vm9126_vm0 }
 0x4bf   : > { %9180 = vst [vmem:[#allocation35_spill] sm:$0xff] %v7521_v11  ;;  %v7523_v59 = vpop.f32.mrb[49].mxu1  ;;  %v3019_v3 = vsel %vm9189_vm13, %v2973_v13, 0  ;;  %vm9195_vm14 = vmmov %vm9126_vm0 }
 0x4c0   : > { %9181 = vst [vmem:[#allocation67_spill] sm:$0xff] %v7523_v59  ;;  %v7525_v37 = vpop.f32.mrb[50].mxu1  ;;  %vm9207_vm13 = vmmov %vm9126_vm0 }
 0x4c1   : > { %9182 = vst [vmem:[#allocation63_spill] sm:$0xff] %v7525_v37  ;;  %5150 = vmatmul.mubr.msk.bf16.gmra.mrb[100].mxu1 %vm9126_vm0, %v2493_v62  ;;  %v2497_v16 = vpop.permute.xlu0 %2496  ;;  %v7528_v39 = vpop.f32.mrb[51].mxu1 }
 0x4c2   : > { %9183 = vst [vmem:[#allocation59_spill] sm:$0xff] %v7528_v39  ;;  %5153 = vmatprep.mubr.msk.bf16.mxu1 %vm9184_vm15, %v2495_v35  ;;  %vm9193_vm15 = vmmov %vm9126_vm0 }
 0x4c3   : > { %5204 = vmatpush3.bf16.xpose.msra.mxu0 %v3016_v26 }
 0x4c4   : > { %5359 = vmatprep.subr.msk.bf16.mxu0 %vm9186_vm1, %v2973_v13  ;;  %vm9197_vm1 = vmmov %vm9126_vm0 }
 0x4c5   : > { %v2499_v1 = vpop.permute.xlu0 %2498 }
 0x4c9   : > { %5154 = vmatmul.mubr.msk.bf16.gmra.mrb[104].mxu1 %vm9187_vm10, %v2497_v16  ;;  %v2975_v54 = vpop.permute.xlu0 %2974  ;;  %vm9199_vm10 = vmmov %vm9126_vm0 }
 0x4ca   : > { %5157 = vmatprep.mubr.msk.bf16.mxu1 %vm9188_vm11, %v2499_v1  ;;  %v3022_v8 = vsel %vm9195_vm14, %v2975_v54, 0  ;;  %vm9205_vm11 = vmmov %vm9126_vm0 }
 0x4cb   : > { %5206 = vmatpush3.bf16.xpose.msra.mxu0 %v3019_v3  ;;  %vm9216_vm14 = vmmov %vm9126_vm0 }
 0x4cc   : > { %5360 = vmatprep.subr.msk.bf16.mxu0 %vm9126_vm0, %v2975_v54 }
 0x4cf   : > { %v7537_v36 = vpop.f32.mrb[52].mxu1 }
 0x4d0   : > { %9190 = vst [vmem:[#allocation60_spill] sm:$0xff] %v7537_v36  ;;  %v7539_v60 = vpop.f32.mrb[53].mxu1 }
 0x4d1   : > { %9191 = vst [vmem:[#allocation69_spill] sm:$0xff] %v7539_v60  ;;  %v7541_v5 = vpop.f32.mrb[54].mxu1  ;;  %5158 = vmatmul.mubr.msk.bf16.gmra.mrb[108].mxu1 %vm9193_vm15, %v2501_v0  ;;  %vm9210_vm15 = vmmov %vm9126_vm0 }
 0x4d2   : > { %9192 = vst [vmem:[#allocation61_spill] sm:$0xff] %v7541_v5  ;;  %v7544_v27 = vpop.f32.mrb[55].mxu1 }
 0x4d3   : > { %9194 = vst [vmem:[#allocation64_spill] sm:$0xff] %v7544_v27  ;;  %5208 = vmatpush3.bf16.xpose.msra.mxu0 %v3022_v8 }
 0x4da   : > { %5210 = vmatmul.mubr.msk.bf16.vlgmr.msra.gmra.mrb[96].mxu0 %vm9197_vm1, %v9196_v53 }
 0x4db   : > { %5213 = vmatprep.mubr.msk.bf16.mxu0 %vm9199_vm10, %v9198_v61 }
 0x4df   : > { %v7551_v48 = vpop.f32.mrb[56].mxu1 }
 0x4e0   : > { %9200 = vst [vmem:[#allocation62_spill] sm:$0xff] %v7551_v48  ;;  %v7553_v43 = vpop.f32.mrb[57].mxu1 }
 0x4e1   : > { %9201 = vst [vmem:[#allocation71_spill] sm:$0xff] %v7553_v43  ;;  %v7555_v9 = vpop.f32.mrb[58].mxu1 }
 0x4e2   : > { %9202 = vst [vmem:[#allocation14_spill] sm:$0xff] %v7555_v9  ;;  %v7557_v33 = vpop.f32.mrb[59].mxu1  ;;  %5214 = vmatmul.mubr.msk.bf16.gmra.mrb[100].mxu0 %vm9205_vm11, %v9204_v52  ;;  %v9277_v52 = vld [vmem:[#allocation26_spill] sm:$0xff] }
 0x4e3   : > { %9203 = vst [vmem:[#allocation76_spill] sm:$0xff] %v7557_v33  ;;  %5217 = vmatprep.mubr.msk.bf16.mxu0 %vm9207_vm13, %v9206_v47 }
 0x4ea   : > { %5218 = vmatmul.mubr.msk.bf16.gmra.mrb[104].mxu0 %vm9126_vm0, %v9208_v32  ;;  %v9271_v32 = vld [vmem:[#allocation56_spill] sm:$0xff] }
 0x4eb   : > { %5221 = vmatprep.mubr.msk.bf16.mxu0 %vm9210_vm15, %v9209_v12  ;;  %vm9272_vm15 = vnez %v9271_v32 }
 0x4ef   : > { %v7567_v49 = vpop.f32.mrb[60].mxu1 }
 0x4f0   : > { %9211 = vst [vmem:[#allocation2_spill] sm:$0xff] %v7567_v49  ;;  %v7569_v58 = vpop.f32.mrb[61].mxu1 }
 0x4f1   : > { %9212 = vst [vmem:[#allocation73_spill] sm:$0xff] %v7569_v58  ;;  %v7571_v40 = vpop.f32.mrb[62].mxu1 }
 0x4f2   : > { %9213 = vst [vmem:[#allocation8_spill] sm:$0xff] %v7571_v40  ;;  %v7573_v45 = vpop.f32.mrb[63].mxu1  ;;  %5222 = vmatmul.mubr.msk.bf16.gmra.mrb[108].mxu0 %vm9216_vm14, %v9215_v50  ;;  %v9269_v50 = vld [vmem:[#allocation55_spill] sm:$0xff] }
 0x4f3   : > { %9214 = vst [vmem:[#allocation12_spill] sm:$0xff] %v7573_v45  ;;  %vm9270_vm0 = vnez %v9269_v50 }
 0x4f7   : > { %v7577_v6 = vpop.f32.mrb[64].mxu1 }
 0x4f8   : > { %9217 = vst [vmem:[#allocation29_spill] sm:$0xff] %v7577_v6  ;;  %v7579_v7 = vpop.f32.mrb[65].mxu1 }
 0x4f9   : > { %9218 = vst [vmem:[#allocation24_spill] sm:$0xff] %v7579_v7  ;;  %v7581_v28 = vpop.f32.mrb[66].mxu1 }
 0x4fa   : > { %9219 = vst [vmem:[#allocation65_spill] sm:$0xff] %v7581_v28  ;;  %v7585_v21 = vpop.f32.mrb[67].mxu1 }
 0x4fb   : > { %9220 = vst [vmem:[#allocation75_spill] sm:$0xff] %v7585_v21  ;;  %v9265_v21 = vld [vmem:[#allocation15_spill] sm:$0xff] }
 0x4ff   : > { %v7589_v24 = vpop.f32.mrb[68].mxu1 }
 0x500   : > { %9221 = vst [vmem:[#allocation66_spill] sm:$0xff] %v7589_v24  ;;  %v7591_v51 = vpop.f32.mrb[69].mxu1 }
 0x501   : > { %9222 = vst [vmem:[#allocation18_spill] sm:$0xff] %v7591_v51  ;;  %v7593_v55 = vpop.f32.mrb[70].mxu1 }
 0x502   : > { %9223 = vst [vmem:[#allocation80_spill] sm:$0xff] %v7593_v55  ;;  %v7597_v4 = vpop.f32.mrb[71].mxu1 }
 0x503   : > { %9224 = vst [vmem:[#allocation79_spill] sm:$0xff] %v7597_v4 }
 0x507   : > { %v7601_v20 = vpop.f32.mrb[72].mxu1 }
 0x508   : > { %9225 = vst [vmem:[#allocation68_spill] sm:$0xff] %v7601_v20  ;;  %v7603_v23 = vpop.f32.mrb[73].mxu1 }
 0x509   : > { %9226 = vst [vmem:[#allocation31_spill] sm:$0xff] %v7603_v23  ;;  %v7605_v38 = vpop.f32.mrb[74].mxu1 }
 0x50a   : > { %9227 = vst [vmem:[#allocation70_spill] sm:$0xff] %v7605_v38  ;;  %v7609_v34 = vpop.f32.mrb[75].mxu1 }
 0x50b   : > { %9228 = vst [vmem:[#allocation22_spill] sm:$0xff] %v7609_v34 }
 0x51e   : > { %v7613_v19 = vpop.f32.mrb[76].mxu1 }
 0x51f   : > { %9229 = vst [vmem:[#allocation77_spill] sm:$0xff] %v7613_v19  ;;  %v7615_v57 = vpop.f32.mrb[77].mxu1 }
 0x520   : > { %9230 = vst [vmem:[#allocation4_spill] sm:$0xff] %v7615_v57  ;;  %v7617_v30 = vpop.f32.mrb[78].mxu1 }
 0x521   : > { %9231 = vst [vmem:[#allocation78_spill] sm:$0xff] %v7617_v30  ;;  %v7621_v63 = vpop.f32.mrb[79].mxu1 }
 0x522   : > { %9232 = vst [vmem:[#allocation6_spill] sm:$0xff] %v7621_v63 }
 0x530   : > { %v7625_v35 = vpop.f32.mrb[80].mxu1 }
 0x531   : > { %9233 = vst [vmem:[#allocation72_spill] sm:$0xff] %v7625_v35  ;;  %v7627_v56 = vpop.f32.mrb[81].mxu1  ;;  %v9260_v35 = vld [vmem:[#allocation51_spill] sm:$0xff] }
 0x532   : > { %9234 = vst [vmem:[#allocation27_spill] sm:$0xff] %v7627_v56  ;;  %v7629_v16 = vpop.f32.mrb[82].mxu1  ;;  %vm9261_vm10 = vnez %v9260_v35  ;;  %v9266_v56 = vld [vmem:[#allocation19_spill] sm:$0xff] }
 0x533   : > { %9235 = vst [vmem:[#allocation84_spill] sm:$0xff] %v7629_v16  ;;  %v7633_v13 = vpop.f32.mrb[83].mxu1 }
 0x534   : > { %9236 = vst [vmem:[#allocation82_spill] sm:$0xff] %v7633_v13  ;;  %v9267_v13 = vld [vmem:[#allocation58_spill] sm:$0xff] }
 0x535   : > { %vm9268_vm13 = vnez %v9267_v13 }
 0x569   : > { %v7637_v3 = vpop.f32.mrb[84].mxu1 }
 0x56a   : > { %9237 = vst [vmem:[#allocation16_spill] sm:$0xff] %v7637_v3  ;;  %v7639_v54 = vpop.f32.mrb[85].mxu1 }
 0x56b   : > { %9238 = vst [vmem:[#allocation81_spill] sm:$0xff] %v7639_v54  ;;  %v7641_v0 = vpop.f32.mrb[86].mxu1 }
 0x56c   : > { %9239 = vst [vmem:[#allocation85_spill] sm:$0xff] %v7641_v0  ;;  %v7645_v62 = vpop.f32.mrb[87].mxu1 }
 0x56d   : > { %9240 = vst [vmem:[#allocation20_spill] sm:$0xff] %v7645_v62 }
 0x579   : > { %v7649_v44 = vpop.f32.mrb[88].mxu1 }
 0x57a   : > { %9241 = vst [vmem:[#allocation87_spill] sm:$0xff] %v7649_v44  ;;  %v7651_v15 = vpop.f32.mrb[89].mxu1 }
 0x57b   : > { %9242 = vst [vmem:[#allocation86_spill] sm:$0xff] %v7651_v15  ;;  %v7653_v18 = vpop.f32.mrb[90].mxu1 }
 0x57c   : > { %9243 = vst [vmem:[#allocation88_spill] sm:$0xff] %v7653_v18  ;;  %v7657_v22 = vpop.f32.mrb[91].mxu1 }
 0x57d   : > { %9244 = vst [vmem:[#allocation83_spill] sm:$0xff] %v7657_v22 }
 0x584   : > { %v7661_v8 = vpop.f32.mrb[92].mxu1 }
 0x585   : > { %9245 = vst [vmem:[#allocation74_spill] sm:$0xff] %v7661_v8  ;;  %v7663_v46 = vpop.f32.mrb[93].mxu1 }
 0x586   : > { %9246 = vst [vmem:[#allocation5_spill] sm:$0xff] %v7663_v46  ;;  %v7665_v1 = vpop.f32.mrb[94].mxu1 }
 0x587   : > { %9247 = vst [vmem:[#allocation13_spill] sm:$0xff] %v7665_v1  ;;  %v7669_v49 = vpop.f32.mrb[95].mxu1 }
 0x588   : > { %9248 = vst [vmem:[#allocation21_spill] sm:$0xff] %v7669_v49 }
 0x58c   : > { %v7673_v14 = vpop.f32.mrb[96].mxu1 }
 0x58d   : > { %v7675_v58 = vpop.f32.mrb[97].mxu1  ;;  %v7802_v61 = vsel %vm6734_vm2, %v7673_v14, -1e+30 }
 0x58e   : > { %v7677_v45 = vpop.f32.mrb[98].mxu1 }
 0x58f   : > { %v7679_v26 = vpop.f32.mrb[99].mxu1 }
 0x594   : > { %v7681_v48 = vpop.f32.mrb[100].mxu1 }
 0x595   : > { %v7683_v9 = vpop.f32.mrb[101].mxu1 }
 0x596   : > { %v7685_v43 = vpop.f32.mrb[102].mxu1  ;;  %v7820_v14 = vsel %vm6825_vm8, %v7683_v9, -1e+30  ;;  %v7838_v9 = vsel %vm6761_vm4, %v7677_v45, -1e+30 }
 0x597   : > { %v7687_v25 = vpop.f32.mrb[103].mxu1 }
 0x59c   : > { %v7689_v33 = vpop.f32.mrb[104].mxu1 }
 0x59d   : > { %v7691_v36 = vpop.f32.mrb[105].mxu1 }
 0x59e   : > { %v7693_v40 = vpop.f32.mrb[106].mxu1 }
 0x59f   : > { %v7695_v5 = vpop.f32.mrb[107].mxu1 }
 0x5a4   : > { %v7697_v60 = vpop.f32.mrb[108].mxu1 }
 0x5a5   : > { %v7699_v27 = vpop.f32.mrb[109].mxu1 }
 0x5a6   : > { %v7701_v11 = vpop.f32.mrb[110].mxu1 }
 0x5a7   : > { %v7703_v37 = vpop.f32.mrb[111].mxu1 }
 0x5ad   : > { %v5211_v19 = vpop.f32.mrb[96].mxu0 }
 0x5ae   : > { %v3058_v30 = vpop.f32.mrb[97].mxu0  ;;  %v7717_v55 = vsel %vm6734_vm2, %v5211_v19, -1e+30 }
 0x5af   : > { %v7707_v63 = vsel %vm6745_vm3, %v3058_v30, -1e+30  ;;  %v5212_v20 = vpop.f32.mrb[98].mxu0 }
 0x5b0   : > { %3137 = vmax.xlane.f32.xlu0 %v7707_v63  ;;  %v3061_v38 = vpop.f32.mrb[99].mxu0  ;;  %v7722_v30 = vsel %vm6761_vm4, %v5212_v20, -1e+30  ;;  %v7853_v20 = vsel %vm6809_vm7, %v7685_v43, -1e+30 }
 0x5b1   : > { %v7712_v34 = vsel %vm6777_vm5, %v3061_v38, -1e+30  ;;  %v7870_v43 = vsel %vm6841_vm9, %v7687_v25, -1e+30 }
 0x5b2   : > { %3139 = vmax.xlane.f32.xlu1 %v7712_v34 }
 0x5b4   : > { %3141 = vmax.xlane.f32.xlu0 %v7717_v55 }
 0x5b5   : > { %v5215_v4 = vpop.f32.mrb[100].mxu0 }
 0x5b6   : > { %3143 = vmax.xlane.f32.xlu1 %v7722_v30  ;;  %v3074_v6 = vpop.f32.mrb[101].mxu0  ;;  %v7737_v1 = vsel %vm6793_vm6, %v5215_v4, -1e+30  ;;  %v9258_v4 = vld [vmem:[#allocation54_spill] sm:$0xff] }
 0x5b7   : > { %v7727_v38 = vsel %vm6825_vm8, %v3074_v6, -1e+30  ;;  %v5216_v59 = vpop.f32.mrb[102].mxu0  ;;  %vm9259_vm1 = vnez %v9258_v4 }
 0x5b8   : > { %3145 = vmax.xlane.f32.xlu0 %v7727_v38  ;;  %v3077_v39 = vpop.f32.mrb[103].mxu0  ;;  %v7742_v6 = vsel %vm6809_vm7, %v5216_v59, -1e+30 }
 0x5b9   : > { %v7732_v8 = vsel %vm6841_vm9, %v3077_v39, -1e+30 }
 0x5ba   : > { %3147 = vmax.xlane.f32.xlu1 %v7732_v8 }
 0x5bc   : > { %3149 = vmax.xlane.f32.xlu0 %v7737_v1 }
 0x5bd   : > { %v5219_v49 = vpop.f32.mrb[104].mxu0 }
 0x5be   : > { %3151 = vmax.xlane.f32.xlu1 %v7742_v6  ;;  %v3090_v44 = vpop.f32.mrb[105].mxu0  ;;  %v7757_v16 = vsel %vm9261_vm10, %v5219_v49, -1e+30 }
 0x5bf   : > { %v5220_v18 = vpop.f32.mrb[106].mxu0  ;;  %v7747_v22 = vsel %vm6889_vm12, %v3090_v44, -1e+30  ;;  %v9262_v44 = vld [vmem:[#allocation52_spill] sm:$0xff] }
 0x5c0   : > { %v3093_v15 = vpop.f32.mrb[107].mxu0  ;;  %vm9263_vm11 = vnez %v9262_v44 }
 0x5c1   : > { %v7752_v3 = vsel %vm9259_vm1, %v3093_v15, -1e+30  ;;  %v7762_v7 = vsel %vm9263_vm11, %v5220_v18, -1e+30  ;;  %v9264_v15 = vld [vmem:[#allocation11_spill] sm:$0xff] }
 0x5c2   : > { %3153 = vmax.xlane.f32.xlu1 %v7747_v22  ;;  %v7885_v25 = vsel %vm9263_vm11, %v7693_v40, -1e+30 }
 0x5c5   : > { %v5223_v0 = vpop.f32.mrb[108].mxu0 }
 0x5c6   : > { %3155 = vmax.xlane.f32.xlu1 %v7752_v3  ;;  %v3106_v59 = vpop.f32.mrb[109].mxu0  ;;  %v7778_v18 = vsel %vm9270_vm0, %v5223_v0, -1e+30  ;;  %v9276_v0 = vld [vmem:[#allocation28_spill] sm:$0xff] }
 0x5c7   : > { %v5224_v54 = vpop.f32.mrb[110].mxu0 }
 0x5c8   : > { %v3109_v62 = vpop.f32.mrb[111].mxu0 }
 0x5c9   : > { %v7773_v49 = vsel %vm9268_vm13, %v3109_v62, -1e+30  ;;  %v9275_v62 = vld [vmem:[#allocation23_spill] sm:$0xff] }
 0x5ca   : > { %3157 = vmax.xlane.f32.xlu1 %v7757_v16 }
 0x5ce   : > { %3159 = vmax.xlane.f32.xlu1 %v7762_v7 }
 0x5d2   : > { %2839 = vrot.lane.b32.xlu0 %v9264_v15, %s6079_s24  ;;  %v7783_v15 = vsel %vm9272_vm15, %v5224_v54, -1e+30  ;;  %v9278_v54 = vld [vmem:[#allocation30_spill] sm:$0xff] }
 0x5df   : > { %2841 = vrot.lane.b32.xlu1 %v9265_v21, %s6079_s24  ;;  %v9273_v21 = vld [vmem:[#allocation57_spill] sm:$0xff] }
 0x5e0   : > { %vm9274_vm14 = vnez %v9273_v21  ;;  %v9283_v21 = vld [vmem:[#allocation10_spill] sm:$0xff] }
 0x5e3   : > { %2843 = vrot.lane.b32.xlu1 %v9266_v56, %s6079_s24  ;;  %v7788_v56 = vsel %vm9274_vm14, %v3106_v59, -1e+30  ;;  %v7808_v59 = vsel %vm6777_vm5, %v7679_v26, -1e+30  ;;  %v7826_v26 = vsel %vm6745_vm3, %v7675_v58, -1e+30 }
 0x5e4   : > { %v7844_v58 = vsel %vm6889_vm12, %v7691_v36, -1e+30  ;;  %v7861_v36 = vsel %vm9270_vm0, %v7697_v60, -1e+30  ;;  %v7878_v60 = vsel %vm9274_vm14, %v7699_v27, -1e+30 }
 0x5f1   : > { %3163 = vmax.xlane.f32.xlu0 %v7773_v49 }
 0x5f5   : > { %3165 = vmax.xlane.f32.xlu0 %v7778_v18 }
 0x5f9   : > { %3167 = vmax.xlane.f32.xlu0 %v7783_v15 }
 0x607   : > { %3161 = vmax.xlane.f32.xlu1 %v7788_v56 }
 0x60f   : > { %2845 = vrot.lane.b32.xlu0 %v9275_v62, %s6079_s24 }
 0x613   : > { %2849 = vrot.lane.b32.xlu0 %v9276_v0, %s6079_s24 }
 0x618   : > { %2847 = vrot.lane.b32.xlu1 %v9277_v52, %s6079_s24  ;;  %v7814_v52 = vsel %vm6793_vm6, %v7681_v48, -1e+30  ;;  %v7832_v48 = vsel %vm9261_vm10, %v7689_v33, -1e+30 }
 0x61c   : > { %2851 = vrot.lane.b32.xlu1 %v9278_v54, %s6079_s24 }
 0x632   : > { %2691 = vmax.xlane.f32.xlu0 %v7802_v61 }
 0x636   : > { %2689 = vmax.xlane.f32.xlu0 %v7808_v59 }
 0x63a   : > { %2699 = vmax.xlane.f32.xlu0 %v7814_v52 }
 0x63d   : > { %v3138_v62 = vpop.xlane.xlu0 %3137 }
 0x63e   : > { %2695 = vmax.xlane.f32.xlu0 %v7820_v14  ;;  %v3169_v35 = vsub.f32 %v7707_v63, %v3138_v62 }
 0x63f   : > { %v3140_v0 = vpop.xlane.xlu1 %3139 }
 0x640   : > { %2687 = vmax.xlane.f32.xlu1 %v7826_v26  ;;  %v3185_v39 = vmul.f32 1.442695, %v3169_v35  ;;  %v3170_v63 = vsub.f32 %v7712_v34, %v3140_v0 }
 0x641   : > { %v3142_v54 = vpop.xlane.xlu0 %3141 }
 0x642   : > { %2707 = vmax.xlane.f32.xlu0 %v7832_v48  ;;  %5877 = vpow2.f32 %v3185_v39  ;;  %v3187_v34 = vmul.f32 1.442695, %v3170_v63  ;;  %v3171_v35 = vsub.f32 %v7717_v55, %v3142_v54  ;;  %v7894_v55 = vsel %vm9259_vm1, %v7695_v5, -1e+30 }
 0x643   : > { %v3144_v28 = vpop.xlane.xlu1 %3143 }
 0x644   : > { %2693 = vmax.xlane.f32.xlu1 %v7838_v9  ;;  %5879 = vpow2.f32 %v3187_v34  ;;  %v3189_v27 = vmul.f32 1.442695, %v3171_v35  ;;  %v3172_v39 = vsub.f32 %v7722_v30, %v3144_v28 }
 0x645   : > { %v7847_v33 = vpop.xlane.xlu0 %3145 }
 0x646   : > { %2703 = vmax.xlane.f32.xlu0 %v7844_v58  ;;  %5881 = vpow2.f32 %v3189_v27  ;;  %v3191_v40 = vmul.f32 1.442695, %v3172_v39  ;;  %v9282_v39 = vld [vmem:[#allocation32_spill] sm:$0xff] }
 0x647   : > { %v7855_v45 = vpop.xlane.xlu1 %3147 }
 0x648   : > { %2701 = vmax.xlane.f32.xlu1 %v7853_v20  ;;  %5883 = vpow2.f32 %v3191_v40  ;;  %v7920_v40 = vsel %vm9272_vm15, %v7701_v11, -1e+30 }
 0x649   : > { %v7864_v62 = vpop.xlane.xlu0 %3149 }
 0x64a   : > { %2715 = vmax.xlane.f32.xlu0 %v7861_v36 }
 0x64b   : > { %v7872_v46 = vpop.xlane.xlu1 %3151 }
 0x64c   : > { %2697 = vmax.xlane.f32.xlu1 %v7870_v43  ;;  %v7899_v63 = vpop.eup %5877 }
 0x64d   : > { %v2840_v0 = vpop.permute.xlu0 %2839  ;;  %9279 = vst [vmem:[#allocation11_spill] sm:$0xff] %v7899_v63 }
 0x64e   : > { %5161 = vmatprep.subr.bf16.mxu1 %v2840_v0  ;;  %2711 = vmax.xlane.f32.xlu0 %v7878_v60  ;;  %v7904_v34 = vpop.eup %5879 }
 0x64f   : > { %5162 = vmatpush3.bf16.msra.mxu1 %v2840_v0  ;;  %v7887_v50 = vpop.xlane.xlu1 %3153 }
 0x650   : > { %2709 = vmax.xlane.f32.xlu1 %v7885_v25  ;;  %v7909_v5 = vpop.eup %5881 }
 0x651   : > { %9280 = vst [vmem:[#allocation15_spill] sm:$0xff] %v7909_v5 }
 0x652   : > { %v7912_v35 = vpop.eup %5883 }
 0x653   : > { %v7896_v54 = vpop.xlane.xlu1 %3155  ;;  %9281 = vst [vmem:[#allocation19_spill] sm:$0xff] %v7912_v35 }
 0x654   : > { %2705 = vmax.xlane.f32.xlu1 %v7894_v55 }
 0x657   : > { %v7901_v0 = vpop.xlane.xlu1 %3157 }
 0x658   : > { %3217 = vadd.xlane.f32.xlu1 %v7899_v63 }
 0x65b   : > { %v7906_v28 = vpop.xlane.xlu1 %3159 }
 0x65c   : > { %3219 = vadd.xlane.f32.xlu1 %v7904_v34 }
 0x65f   : > { %v2842_v30 = vpop.permute.xlu1 %2841 }
 0x660   : > { %5163 = vmatprep.subr.bf16.mxu1 %v2842_v30  ;;  %3221 = vadd.xlane.f32.xlu1 %v7909_v5 }
 0x661   : > { %5164 = vmatpush3.bf16.msra.mxu1 %v2842_v30  ;;  %v7926_v30 = vsel %vm9268_vm13, %v7703_v37, -1e+30  ;;  %vm9297_vm13 = vcmask 261120  }
 0x662   : > { %vm9301_vm15 = vmmov %vm9297_vm13 }
 0x663   : > { %v2844_v27 = vpop.permute.xlu1 %2843  ;;  %vm9302_vm14 = vmmov %vm9297_vm13 }
 0x664   : > { %5165 = vmatprep.subr.bf16.mxu1 %v2844_v27  ;;  %3223 = vadd.xlane.f32.xlu1 %v7912_v35  ;;  %vm9303_vm0 = vmmov %vm9297_vm13 }
 0x665   : > { %2853 = vrot.lane.b32.xlu0 %v9282_v39, %s6079_s24  ;;  %5166 = vmatpush3.bf16.msra.mxu1 %v2844_v27  ;;  %vm9312_vm1 = vmmov %vm9303_vm0 }
 0x666   : > { %vm9313_vm12 = vmmov %vm9303_vm0 }
 0x668   : > { %2717 = vmax.xlane.f32.xlu1 %v7920_v40 }
 0x66c   : > { %2713 = vmax.xlane.f32.xlu1 %v7926_v30 }
 0x67d   : > { %3402 = vrot.lane.b32.xlu1 %v9283_v21, %s6079_s24 }
 0x67e   : > { %v7931_v4 = vpop.xlane.xlu0 %3163 }
 0x682   : > { %v7933_v27 = vpop.xlane.xlu0 %3165 }
 0x686   : > { %v7935_v39 = vpop.xlane.xlu0 %3167 }
 0x68a   : > { %v2846_v11 = vpop.permute.xlu0 %2845 }
 0x68b   : > { %5167 = vmatprep.subr.bf16.mxu1 %v2846_v11 }
 0x68c   : > { %5168 = vmatpush3.bf16.msra.mxu1 %v2846_v11 }
 0x68e   : > { %v2850_v37 = vpop.permute.xlu0 %2849 }
 0x694   : > { %v7937_v32 = vpop.xlane.xlu1 %3161 }
 0x698   : > { %v2848_v44 = vpop.permute.xlu1 %2847 }
 0x699   : > { %5169 = vmatprep.subr.bf16.mxu1 %v2848_v44 }
 0x69a   : > { %5170 = vmatpush3.bf16.msra.mxu1 %v2848_v44 }
 0x69b   : > { %5171 = vmatprep.subr.bf16.mxu1 %v2850_v37 }
 0x69c   : > { %v2852_v13 = vpop.permute.xlu1 %2851 }
 0x69e   : > { %5172 = vmatpush3.bf16.msra.mxu1 %v2850_v37 }
 0x69f   : > { %5173 = vmatprep.subr.bf16.mxu1 %v2852_v13 }
 0x6a2   : > { %5174 = vmatpush3.bf16.msra.mxu1 %v2852_v13 }
 0x6bf   : > { %v2692_v21 = vpop.xlane.xlu0 %2691 }
 0x6c0   : > { %v2721_v19 = vsub.f32 %v7802_v61, %v2692_v21 }
 0x6c2   : > { %v2739_v51 = vmul.f32 1.442695, %v2721_v19 }
 0x6c3   : > { %v2690_v23 = vpop.xlane.xlu0 %2689 }
 0x6c4   : > { %5885 = vpow2.f32 %v2739_v51  ;;  %v2720_v57 = vsub.f32 %v7808_v59, %v2690_v23 }
 0x6c6   : > { %v2737_v11 = vmul.f32 1.442695, %v2720_v57 }
 0x6c7   : > { %v2700_v24 = vpop.xlane.xlu0 %2699 }
 0x6c8   : > { %5887 = vpow2.f32 %v2737_v11  ;;  %v2725_v51 = vsub.f32 %v7814_v52, %v2700_v24 }
 0x6cb   : > { %v2696_v5 = vpop.xlane.xlu0 %2695 }
 0x6cc   : > { %v2723_v35 = vsub.f32 %v7820_v14, %v2696_v5 }
 0x6cd   : > { %v2688_v44 = vpop.xlane.xlu1 %2687 }
 0x6ce   : > { %v7942_v63 = vpop.eup %5885  ;;  %v2743_v37 = vmul.f32 1.442695, %v2723_v35  ;;  %v2719_v13 = vsub.f32 %v7826_v26, %v2688_v44  ;;  %v2747_v35 = vmul.f32 1.442695, %v2725_v51 }
 0x6cf   : > { %2771 = vadd.xlane.f32.xlu1 %v7942_v63  ;;  %v2708_v61 = vpop.xlane.xlu0 %2707 }
 0x6d0   : > { %5889 = vpow2.f32 %v2743_v37  ;;  %v2735_v19 = vmul.f32 1.442695, %v2719_v13  ;;  %v2729_v24 = vsub.f32 %v7832_v48, %v2708_v61 }
 0x6d1   : > { %v2694_v23 = vpop.xlane.xlu1 %2693 }
 0x6d2   : > { %v7947_v57 = vpop.eup %5887  ;;  %5891 = vpow2.f32 %v2735_v19  ;;  %v2722_v59 = vsub.f32 %v7838_v9, %v2694_v23 }
 0x6d3   : > { %2769 = vadd.xlane.f32.xlu0 %v7947_v57  ;;  %v2704_v14 = vpop.xlane.xlu0 %2703 }
 0x6d4   : > { %v2741_v5 = vmul.f32 1.442695, %v2722_v59  ;;  %v2727_v26 = vsub.f32 %v7844_v58, %v2704_v14  ;;  %v2755_v59 = vmul.f32 1.442695, %v2729_v24 }
 0x6d5   : > { %v2702_v21 = vpop.xlane.xlu1 %2701 }
 0x6d6   : > { %5893 = vpow2.f32 %v2741_v5  ;;  %v2726_v11 = vsub.f32 %v7853_v20, %v2702_v21  ;;  %v2751_v52 = vmul.f32 1.442695, %v2727_v26 }
 0x6d7   : > { %v2716_v44 = vpop.xlane.xlu0 %2715  ;;  %5895 = vpow2.f32 %v2747_v35 }
 0x6d8   : > { %v2749_v37 = vmul.f32 1.442695, %v2726_v11  ;;  %v2733_v21 = vsub.f32 %v7861_v36, %v2716_v44  ;;  %v9284_v11 = vld [vmem:[#allocation33_spill] sm:$0xff]  ;;  %v3173_v36 = vsub.f32 %v7727_v38, %v7847_v33 }
 0x6d9   : > { %v2698_v13 = vpop.xlane.xlu1 %2697 }
 0x6da   : > { %v7954_v19 = vpop.eup %5889  ;;  %5897 = vpow2.f32 %v2749_v37  ;;  %v2724_v9 = vsub.f32 %v7870_v43, %v2698_v13  ;;  %v2763_v44 = vmul.f32 1.442695, %v2733_v21 }
 0x6db   : > { %2775 = vadd.xlane.f32.xlu0 %v7954_v19  ;;  %v2712_v51 = vpop.xlane.xlu0 %2711  ;;  %5899 = vpow2.f32 %v2751_v52 }
 0x6dc   : > { %v7958_v58 = vpop.eup %5891  ;;  %v2745_v23 = vmul.f32 1.442695, %v2724_v9  ;;  %v2731_v20 = vsub.f32 %v7878_v60, %v2712_v51  ;;  %v3193_v51 = vmul.f32 1.442695, %v3173_v36 }
 0x6dd   : > { %v2710_v14 = vpop.xlane.xlu1 %2709  ;;  %2767 = vadd.xlane.f32.xlu1 %v7958_v58 }
 0x6de   : > { %5901 = vpow2.f32 %v2745_v23  ;;  %v2730_v48 = vsub.f32 %v7885_v25, %v2710_v14  ;;  %v2759_v35 = vmul.f32 1.442695, %v2731_v20  ;;  %v3175_v23 = vsub.f32 %v7737_v1, %v7864_v62 }
 0x6df   : > { %v2854_v61 = vpop.permute.xlu0 %2853  ;;  %5903 = vpow2.f32 %v2755_v59 }
 0x6e0   : > { %v7963_v5 = vpop.eup %5893  ;;  %v2757_v43 = vmul.f32 1.442695, %v2730_v48  ;;  %5175 = vmatprep.subr.bf16.mxu1 %v2854_v61  ;;  %v3197_v20 = vmul.f32 1.442695, %v3175_v23  ;;  %v3176_v23 = vsub.f32 %v7742_v6, %v7872_v46  ;;  %v3179_v46 = vsub.f32 %v7757_v16, %v7901_v0 }
 0x6e1   : > { %v2706_v26 = vpop.xlane.xlu1 %2705  ;;  %2773 = vadd.xlane.f32.xlu1 %v7963_v5  ;;  %5176 = vmatpush3.bf16.msra.mxu1 %v2854_v61  ;;  %v7969_v37 = vpop.eup %5895  ;;  %v3182_v16 = vsub.f32 %v7773_v49, %v7931_v4 }
 0x6e2   : > { %5905 = vpow2.f32 %v2757_v43  ;;  %v2728_v60 = vsub.f32 %v7894_v55, %v2706_v26  ;;  %5225 = vmatprep.subr.bf16.mxu1 %v9284_v11 }
 0x6e3   : > { %5907 = vpow2.f32 %v2759_v35 }
 0x6e4   : > { %v7971_v25 = vpop.eup %5897  ;;  %v2753_v24 = vmul.f32 1.442695, %v2728_v60 }
 0x6e5   : > { %v7973_v52 = vpop.xlane.xlu1 %3217  ;;  %2779 = vadd.xlane.f32.xlu1 %v7969_v37  ;;  %2781 = vadd.xlane.f32.xlu0 %v7971_v25  ;;  %v7979_v55 = vpop.eup %5899 }
 0x6e6   : > { %5909 = vpow2.f32 %v2753_v24 }
 0x6e7   : > { %5911 = vpow2.f32 %v2763_v44 }
 0x6e8   : > { %v7981_v13 = vpop.eup %5901  ;;  %5913 = vpow2.f32 %v3193_v51 }
 0x6e9   : > { %v7983_v9 = vpop.xlane.xlu1 %3219  ;;  %2777 = vadd.xlane.f32.xlu1 %v7981_v13  ;;  %2783 = vadd.xlane.f32.xlu0 %v7979_v55  ;;  %v7989_v59 = vpop.eup %5903  ;;  %5915 = vpow2.f32 %v3197_v20  ;;  %v3199_v20 = vmul.f32 1.442695, %v3176_v23 }
 0x6ec   : > { %v7991_v38 = vpop.eup %5905 }
 0x6ed   : > { %v7993_v33 = vpop.xlane.xlu1 %3221  ;;  %2787 = vadd.xlane.f32.xlu1 %v7989_v59  ;;  %2789 = vadd.xlane.f32.xlu0 %v7991_v38  ;;  %v7997_v14 = vpop.eup %5907 }
 0x6f0   : > { %v7999_v48 = vpop.eup %5909 }
 0x6f1   : > { %v8001_v61 = vpop.xlane.xlu1 %3223  ;;  %2785 = vadd.xlane.f32.xlu1 %v7999_v48  ;;  %2791 = vadd.xlane.f32.xlu0 %v7997_v14  ;;  %v8005_v1 = vpop.eup %5911 }
 0x6f2   : > { %v8009_v35 = vpop.eup %5913 }
 0x6f3   : > { %v8013_v24 = vpop.eup %5915 }
 0x6f5   : > { %v2718_v62 = vpop.xlane.xlu1 %2717  ;;  %2795 = vadd.xlane.f32.xlu1 %v8005_v1 }
 0x6f6   : > { %v2734_v43 = vsub.f32 %v7920_v40, %v2718_v62  ;;  %v3177_v62 = vsub.f32 %v7747_v22, %v7887_v50  ;;  %v3180_v50 = vsub.f32 %v7762_v7, %v7906_v28  ;;  %v3183_v7 = vsub.f32 %v7778_v18, %v7933_v27 }
 0x6f8   : > { %v2765_v26 = vmul.f32 1.442695, %v2734_v43  ;;  %v3207_v22 = vmul.f32 1.442695, %v3180_v50  ;;  %v3211_v43 = vmul.f32 1.442695, %v3182_v16 }
 0x6f9   : > { %v2714_v21 = vpop.xlane.xlu1 %2713  ;;  %3225 = vadd.xlane.f32.xlu1 %v8009_v35 }
 0x6fa   : > { %5917 = vpow2.f32 %v2765_v26  ;;  %v2732_v60 = vsub.f32 %v7926_v30, %v2714_v21  ;;  %v3174_v30 = vsub.f32 %v7732_v8, %v7855_v45  ;;  %v3178_v8 = vsub.f32 %v7752_v3, %v7896_v54  ;;  %v9285_v21 = vld [vmem:[#allocation34_spill] sm:$0xff] }
 0x6fb   : > { %v3181_v3 = vsub.f32 %v7788_v56, %v7937_v32  ;;  %v3213_v26 = vmul.f32 1.442695, %v3183_v7  ;;  %v3184_v32 = vsub.f32 %v7783_v15, %v7935_v39 }
 0x6fc   : > { %v2761_v36 = vmul.f32 1.442695, %v2732_v60  ;;  %v3195_v51 = vmul.f32 1.442695, %v3174_v30  ;;  %v3203_v45 = vmul.f32 1.442695, %v3178_v8 }
 0x6fd   : > { %3229 = vadd.xlane.f32.xlu1 %v8013_v24  ;;  %v3209_v0 = vmul.f32 1.442695, %v3181_v3  ;;  %v3215_v4 = vmul.f32 1.442695, %v3184_v32  ;;  %v8090_v60 = vpop.permute.xlu1 %3402 }
 0x6fe   : > { %5919 = vpow2.f32 %v2761_v36 }
 0x6ff   : > { %5921 = vpow2.f32 %v3195_v51 }
 0x700   : > { %5923 = vpow2.f32 %v3199_v20  ;;  %v9288_v20 = vld [vmem:[#allocation9_spill] sm:$0xff] }
 0x704   : > { %v8016_v44 = vpop.eup %5917 }
 0x705   : > { %2797 = vadd.xlane.f32.xlu1 %v8016_v44 }
 0x707   : > { %3404 = vrot.lane.b32.xlu0 %v9119_v10, %s6079_s24  ;;  %v3201_v10 = vmul.f32 1.442695, %v3177_v62 }
 0x708   : > { %v8021_v40 = vpop.eup %5919 }
 0x709   : > { %2793 = vadd.xlane.f32.xlu1 %v8021_v40  ;;  %5925 = vpow2.f32 %v3201_v10  ;;  %v8038_v6 = vpop.eup %5921 }
 0x70a   : > { %5927 = vpow2.f32 %v3203_v45 }
 0x71a   : > { %3406 = vrot.lane.b32.xlu1 %v9132_v31, %s6079_s24  ;;  %v3205_v31 = vmul.f32 1.442695, %v3179_v46 }
 0x71c   : > { %5929 = vpow2.f32 %v3205_v31  ;;  %v9289_v31 = vld [vmem:[#allocation17_spill] sm:$0xff] }
 0x71d   : > { %5931 = vpow2.f32 %v3207_v22 }
 0x71e   : > { %3408 = vrot.lane.b32.xlu1 %v9138_v41, %s6079_s24  ;;  %v8043_v41 = vpop.eup %5923  ;;  %5933 = vpow2.f32 %v3209_v0 }
 0x71f   : > { %v8048_v54 = vpop.eup %5925  ;;  %5935 = vpow2.f32 %v3211_v43 }
 0x720   : > { %v8055_v28 = vpop.eup %5927  ;;  %5937 = vpow2.f32 %v3213_v26 }
 0x721   : > { %5939 = vpow2.f32 %v3215_v4 }
 0x726   : > { %3227 = vadd.xlane.f32.xlu0 %v8038_v6  ;;  %v8060_v56 = vpop.eup %5929 }
 0x727   : > { %v8063_v49 = vpop.eup %5931 }
 0x728   : > { %v8066_v18 = vpop.eup %5933 }
 0x729   : > { %v8069_v27 = vpop.eup %5935 }
 0x72a   : > { %3231 = vadd.xlane.f32.xlu0 %v8043_v41  ;;  %v8071_v15 = vpop.eup %5937 }
 0x72b   : > { %v8075_v39 = vpop.eup %5939 }
 0x72e   : > { %3233 = vadd.xlane.f32.xlu0 %v8048_v54 }
 0x732   : > { %3235 = vadd.xlane.f32.xlu0 %v8055_v28 }
 0x736   : > { %3237 = vadd.xlane.f32.xlu0 %v8060_v56 }
 0x73a   : > { %3239 = vadd.xlane.f32.xlu0 %v8063_v49 }
 0x73e   : > { %3241 = vadd.xlane.f32.xlu0 %v8066_v18 }
 0x742   : > { %3243 = vadd.xlane.f32.xlu1 %v8069_v27  ;;  %3245 = vadd.xlane.f32.xlu0 %v8071_v15 }
 0x746   : > { %3247 = vadd.xlane.f32.xlu0 %v8075_v39 }
 0x753   : > { %3416 = vrot.lane.b32.xlu1 %v9136_v17, %s6079_s24 }
 0x757   : > { %3394 = vrot.lane.b32.xlu1 %v9206_v47, %s6080_s25  ;;  %v9286_v47 = vld [vmem:[#allocation3_spill] sm:$0xff] }
 0x75b   : > { %3398 = vrot.lane.b32.xlu1 %v9209_v12, %s6080_s25 }
 0x75c   : > { %3410 = vrot.lane.b32.xlu0 %v6504_v29, %s6079_s24  ;;  %v2772_v17 = vpop.xlane.xlu1 %2771 }
 0x75f   : > { %3741 = vrot.lane.b32.xlu1 %v9285_v21, %s6080_s25 }
 0x760   : > { %3412 = vrot.lane.b32.xlu0 %v9144_v2, %s6079_s24  ;;  %v2770_v36 = vpop.xlane.xlu0 %2769  ;;  %v9287_v2 = vld [vmem:[#allocation7_spill] sm:$0xff] }
 0x761   : > { %5941 = vrcp.f32 %v2770_v36 }
 0x764   : > { %3414 = vrot.lane.b32.xlu0 %v9125_v42, %s6079_s24 }
 0x768   : > { %3386 = vrot.lane.b32.xlu0 %v9286_v47, %s6080_s25  ;;  %v2776_v29 = vpop.xlane.xlu0 %2775 }
 0x76a   : > { %v2768_v12 = vpop.xlane.xlu1 %2767 }
 0x76b   : > { %5943 = vrcp.f32 %v2768_v12  ;;  %v5942_v23 = vpop.eup %5941 }
 0x76c   : > { %3388 = vrot.lane.b32.xlu0 %v9196_v53, %s6080_s25  ;;  %5945 = vrcp.f32 %v2772_v17  ;;  %v2816_v45 = vmul.f32 %v5942_v23, %v7947_v57 }
 0x76e   : > { %v2774_v30 = vpop.xlane.xlu1 %2773 }
 0x76f   : > { %5947 = vrcp.f32 %v2774_v30 }
 0x770   : > { %3390 = vrot.lane.b32.xlu0 %v9287_v2, %s6080_s25  ;;  %5949 = vrcp.f32 %v2776_v29  ;;  %v9291_v29 = vld [vmem:[#allocation36_spill] sm:$0xff] }
 0x772   : > { %v2780_v51 = vpop.xlane.xlu1 %2779  ;;  %v2782_v42 = vpop.xlane.xlu0 %2781 }
 0x773   : > { %5951 = vrcp.f32 %v2780_v51 }
 0x774   : > { %3392 = vrot.lane.b32.xlu0 %v9288_v20, %s6080_s25  ;;  %5953 = vrcp.f32 %v2782_v42 }
 0x775   : > { %v5944_v62 = vpop.eup %5943 }
 0x776   : > { %v2778_v10 = vpop.xlane.xlu1 %2777  ;;  %v2784_v8 = vpop.xlane.xlu0 %2783  ;;  %v2815_v53 = vmul.f32 %v5944_v62, %v7958_v58  ;;  %v9290_v58 = vld [vmem:[#allocation25_spill] sm:$0xff]  ;;  %v9293_v62 = vld [vmem:[#allocation38_spill] sm:$0xff] }
 0x777   : > { %v5946_v46 = vpop.eup %5945  ;;  %5955 = vrcp.f32 %v2778_v10 }
 0x778   : > { %3396 = vrot.lane.b32.xlu0 %v9289_v31, %s6080_s25  ;;  %v2831_v50 = vpack.c.bf16 %v2816_v45, %v2815_v53  ;;  %v2817_v3 = vmul.f32 %v5946_v46, %v7942_v63  ;;  %5957 = vrcp.f32 %v2784_v8  ;;  %v9294_v45 = vld [vmem:[#allocation39_spill] sm:$0xff]  ;;  %v9296_v46 = vld [vmem:[#allocation41_spill] sm:$0xff] }
 0x779   : > { %v5948_v22 = vpop.eup %5947 }
 0x77a   : > { %v2818_v16 = vmul.f32 %v5948_v22, %v7963_v5  ;;  %v2788_v7 = vpop.xlane.xlu1 %2787  ;;  %5177 = vmatprep.mubr.bf16.mxu1 %v2831_v50  ;;  %v2790_v0 = vpop.xlane.xlu0 %2789 }
 0x77b   : > { %5959 = vrcp.f32 %v2788_v7  ;;  %v5950_v43 = vpop.eup %5949 }
 0x77c   : > { %3400 = vrot.lane.b32.xlu0 %v9290_v58, %s6080_s25  ;;  %v2832_v57 = vpack.c.bf16 %v2818_v16, %v2817_v3  ;;  %5961 = vrcp.f32 %v2790_v0  ;;  %v2819_v17 = vmul.f32 %v5950_v43, %v7954_v19  ;;  %v9298_v43 = vld [vmem:[#allocation11_spill] sm:$0xff] }
 0x77d   : > { %v5952_v26 = vpop.eup %5951 }
 0x77e   : > { %v2786_v32 = vpop.xlane.xlu1 %2785  ;;  %5178 = vmatmul.mubr.bf16.vlgmr.msra.gmra.mrb[112].mxu1 %v2832_v57  ;;  %v5954_v4 = vpop.eup %5953  ;;  %v2821_v47 = vmul.f32 %v5952_v26, %v7969_v37  ;;  %v9292_v37 = vld [vmem:[#allocation37_spill] sm:$0xff] }
 0x77f   : > { %5963 = vrcp.f32 %v2786_v32  ;;  %5226 = vmatpush3.bf16.msra.mxu1 %v9284_v11  ;;  %v2822_v12 = vmul.f32 %v5954_v4, %v7971_v25 }
 0x780   : > { %5227 = vmatprep.subr.bf16.mxu1 %v9285_v21  ;;  %3739 = vrot.lane.b32.xlu0 %v9284_v11, %s6080_s25  ;;  %5965 = vrcp.f32 %v7973_v52 }
 0x781   : > { %v5956_v63 = vpop.eup %5955  ;;  %v2834_v51 = vpack.c.bf16 %v2822_v12, %v2821_v47  ;;  %5967 = vrcp.f32 %v7983_v9 }
 0x782   : > { %v2796_v5 = vpop.xlane.xlu1 %2795  ;;  %v2820_v36 = vmul.f32 %v5956_v63, %v7981_v13  ;;  %v5958_v2 = vpop.eup %5957 }
 0x783   : > { %5228 = vmatpush3.bf16.msra.mxu1 %v9285_v21  ;;  %v2823_v13 = vmul.f32 %v5958_v2, %v7979_v55  ;;  %v2792_v55 = vpop.xlane.xlu0 %2791 }
 0x784   : > { %5229 = vmatprep.subr.bf16.mxu1 %v9291_v29  ;;  %3743 = vrot.lane.b32.xlu0 %v9291_v29, %s6080_s25  ;;  %v2833_v30 = vpack.c.bf16 %v2820_v36, %v2819_v17  ;;  %v9300_v17 = vld [vmem:[#allocation15_spill] sm:$0xff] }
 0x785   : > { %v5960_v11 = vpop.eup %5959 }
 0x786   : > { %5181 = vmatprep.mubr.bf16.mxu1 %v2833_v30  ;;  %v5962_v42 = vpop.eup %5961  ;;  %v8123_v19 = vpop.xlane.xlu1 %3225  ;;  %v2825_v23 = vmul.f32 %v5960_v11, %v7989_v59  ;;  %v9295_v59 = vld [vmem:[#allocation40_spill] sm:$0xff] }
 0x787   : > { %5230 = vmatpush3.bf16.msra.mxu1 %v9291_v29  ;;  %v2826_v20 = vmul.f32 %v5962_v42, %v7991_v38 }
 0x788   : > { %5182 = vmatmul.mubr.bf16.gmra.mrb[116].mxu1 %v2834_v51  ;;  %5231 = vmatprep.subr.bf16.mxu1 %v9292_v37 }
 0x789   : > { %v5964_v25 = vpop.eup %5963  ;;  %3745 = vrot.lane.b32.xlu0 %v9292_v37, %s6080_s25  ;;  %v2836_v53 = vpack.c.bf16 %v2826_v20, %v2825_v23 }
 0x78a   : > { %v2824_v21 = vmul.f32 %v5964_v25, %v7999_v48  ;;  %v3230_v8 = vpop.xlane.xlu1 %3229  ;;  %v5966_v52 = vpop.eup %5965 }
 0x78b   : > { %5232 = vmatpush3.bf16.msra.mxu1 %v9292_v37  ;;  %v5968_v9 = vpop.eup %5967  ;;  %v3265_v26 = vmul.f32 %v5966_v52, %v9298_v43 }
 0x78c   : > { %5233 = vmatprep.subr.bf16.mxu1 %v9293_v62  ;;  %v2835_v10 = vpack.c.bf16 %v2824_v21, %v2823_v13  ;;  %v3266_v58 = vmul.f32 %v5968_v9, %v7904_v34  ;;  %v3443_v34 = vsel %vm9297_vm13, %v8090_v60, 0 }
 0x78e   : > { %5185 = vmatprep.mubr.bf16.mxu1 %v2835_v10 }
 0x78f   : > { %5234 = vmatpush3.bf16.msra.mxu1 %v9293_v62 }
 0x790   : > { %5186 = vmatmul.mubr.bf16.gmra.mrb[120].mxu1 %v2836_v53  ;;  %5235 = vmatprep.subr.bf16.mxu1 %v9294_v45 }
 0x792   : > { %v2798_v48 = vpop.xlane.xlu1 %2797 }
 0x793   : > { %5236 = vmatpush3.bf16.msra.mxu1 %v9294_v45  ;;  %5969 = vrcp.f32 %v2798_v48 }
 0x794   : > { %5237 = vmatprep.subr.bf16.mxu1 %v9295_v59  ;;  %5971 = vrcp.f32 %v2792_v55 }
 0x795   : > { %5973 = vrcp.f32 %v2796_v5  ;;  %v9299_v5 = vld [vmem:[#allocation19_spill] sm:$0xff] }
 0x796   : > { %v2794_v38 = vpop.xlane.xlu1 %2793 }
 0x797   : > { %5975 = vrcp.f32 %v2794_v38  ;;  %5238 = vmatpush3.bf16.msra.mxu1 %v9295_v59 }
 0x798   : > { %5239 = vmatprep.subr.bf16.mxu1 %v9296_v46  ;;  %5977 = vrcp.f32 %v8001_v61 }
 0x799   : > { %5979 = vrcp.f32 %v7993_v33  ;;  %v3281_v33 = vpack.c.bf16 %v3266_v58, %v3265_v26 }
 0x79a   : > { %5981 = vrcp.f32 %v8123_v19  ;;  %v3407_v29 = vpop.permute.xlu1 %3406 }
 0x79b   : > { %5240 = vmatpush3.bf16.msra.mxu1 %v9296_v46 }
 0x79c   : > { %5361 = vmatprep.subr.msk.bf16.mxu1 %vm9297_vm13, %v8090_v60  ;;  %vm9304_vm13 = vmmov %vm9303_vm0 }
 0x79d   : > { %v5970_v31 = vpop.eup %5969  ;;  %v3449_v60 = vsel %vm9304_vm13, %v3407_v29, 0  ;;  %vm9307_vm13 = vmmov %vm9303_vm0 }
 0x79e   : > { %v5972_v50 = vpop.eup %5971  ;;  %v2830_v16 = vmul.f32 %v5970_v31, %v8016_v44  ;;  %v3409_v25 = vpop.permute.xlu1 %3408 }
 0x79f   : > { %v5974_v22 = vpop.eup %5973  ;;  %v2827_v7 = vmul.f32 %v5972_v50, %v7997_v14 }
 0x7a0   : > { %v2829_v61 = vmul.f32 %v5974_v22, %v8005_v1 }
 0x7a1   : > { %v5976_v3 = vpop.eup %5975 }
 0x7a2   : > { %v2828_v0 = vmul.f32 %v5976_v3, %v8021_v40  ;;  %v2838_v32 = vpack.c.bf16 %v2830_v16, %v2829_v61  ;;  %v5978_v4 = vpop.eup %5977  ;;  %v3405_v40 = vpop.permute.xlu0 %3404 }
 0x7a3   : > { %v5980_v63 = vpop.eup %5979  ;;  %v3268_v44 = vmul.f32 %v5978_v4, %v9299_v5  ;;  %v3446_v47 = vsel %vm9302_vm14, %v3405_v40, 0  ;;  %vm9306_vm14 = vmmov %vm9303_vm0 }
 0x7a4   : > { %v2837_v57 = vpack.c.bf16 %v2828_v0, %v2827_v7  ;;  %v3267_v14 = vmul.f32 %v5980_v63, %v9300_v17  ;;  %v5982_v2 = vpop.eup %5981 }
 0x7a5   : > { %v3269_v42 = vmul.f32 %v5982_v2, %v8009_v35  ;;  %v3452_v35 = vsel %vm9303_vm0, %v3409_v25, 0 }
 0x7a6   : > { %5189 = vmatprep.mubr.bf16.mxu1 %v2837_v57  ;;  %v3282_v36 = vpack.c.bf16 %v3268_v44, %v3267_v14 }
 0x7a7   : > { %5190 = vmatmul.mubr.bf16.gmra.mrb[124].mxu1 %v2838_v32 }
 0x7a8   : > { %5241 = vmatprep.mubr.bf16.mxu1 %v3281_v33 }
 0x7af   : > { %5242 = vmatmul.mubr.bf16.vlgmr.msra.gmra.mrb[128].mxu1 %v3282_v36 }
 0x7b0   : > { %5258 = vmatpush3.bf16.xpose.msra.mxu1 %v3443_v34 }
 0x7b1   : > { %5362 = vmatprep.subr.msk.bf16.mxu1 %vm9301_vm15, %v3405_v40  ;;  %vm9305_vm15 = vmmov %vm9303_vm0 }
 0x7b3   : > { %v3228_v1 = vpop.xlane.xlu0 %3227 }
 0x7b4   : > { %5983 = vrcp.f32 %v3228_v1 }
 0x7b5   : > { %5985 = vrcp.f32 %v3230_v8 }
 0x7b7   : > { %v3232_v12 = vpop.xlane.xlu0 %3231 }
 0x7b8   : > { %5260 = vmatpush3.bf16.xpose.msra.mxu1 %v3446_v47  ;;  %5987 = vrcp.f32 %v3232_v12 }
 0x7b9   : > { %5363 = vmatprep.subr.msk.bf16.mxu1 %vm9303_vm0, %v3407_v29 }
 0x7bb   : > { %v3234_v30 = vpop.xlane.xlu0 %3233 }
 0x7bc   : > { %5989 = vrcp.f32 %v3234_v30 }
 0x7be   : > { %v5984_v11 = vpop.eup %5983 }
 0x7bf   : > { %v3236_v51 = vpop.xlane.xlu0 %3235  ;;  %v3270_v19 = vmul.f32 %v5984_v11, %v8038_v6  ;;  %v5986_v37 = vpop.eup %5985 }
 0x7c0   : > { %5262 = vmatpush3.bf16.xpose.msra.mxu1 %v3449_v60  ;;  %5991 = vrcp.f32 %v3236_v51  ;;  %v3271_v20 = vmul.f32 %v5986_v37, %v8013_v24 }
 0x7c1   : > { %5364 = vmatprep.subr.msk.bf16.mxu1 %vm9305_vm15, %v3409_v25  ;;  %v3283_v13 = vpack.c.bf16 %v3270_v19, %v3269_v42  ;;  %vm9308_vm15 = vmmov %vm9303_vm0 }
 0x7c2   : > { %v5988_v21 = vpop.eup %5987 }
 0x7c3   : > { %5245 = vmatprep.mubr.bf16.mxu1 %v3283_v13  ;;  %v3238_v23 = vpop.xlane.xlu0 %3237  ;;  %v3272_v10 = vmul.f32 %v5988_v21, %v8043_v41 }
 0x7c4   : > { %5993 = vrcp.f32 %v3238_v23 }
 0x7c5   : > { %v3284_v8 = vpack.c.bf16 %v3272_v10, %v3271_v20 }
 0x7c6   : > { %v5990_v53 = vpop.eup %5989 }
 0x7c7   : > { %5246 = vmatmul.mubr.bf16.gmra.mrb[132].mxu1 %v3284_v8  ;;  %v3240_v6 = vpop.xlane.xlu0 %3239  ;;  %v3273_v38 = vmul.f32 %v5990_v53, %v8048_v54 }
 0x7c8   : > { %5264 = vmatpush3.bf16.xpose.msra.mxu1 %v3452_v35  ;;  %5995 = vrcp.f32 %v3240_v6 }
 0x7ca   : > { %v5992_v55 = vpop.eup %5991 }
 0x7cb   : > { %v3242_v48 = vpop.xlane.xlu0 %3241  ;;  %v3274_v52 = vmul.f32 %v5992_v55, %v8055_v28 }
 0x7cc   : > { %5997 = vrcp.f32 %v3242_v48 }
 0x7cd   : > { %v3285_v9 = vpack.c.bf16 %v3274_v52, %v3273_v38 }
 0x7ce   : > { %v5994_v31 = vpop.eup %5993 }
 0x7cf   : > { %v3244_v24 = vpop.xlane.xlu1 %3243  ;;  %5249 = vmatprep.mubr.bf16.mxu1 %v3285_v9  ;;  %v3246_v41 = vpop.xlane.xlu0 %3245  ;;  %v3275_v3 = vmul.f32 %v5994_v31, %v8060_v56 }
 0x7d0   : > { %5999 = vrcp.f32 %v3244_v24 }
 0x7d1   : > { %6001 = vrcp.f32 %v3246_v41 }
 0x7d2   : > { %v5996_v50 = vpop.eup %5995 }
 0x7d3   : > { %v3248_v22 = vpop.xlane.xlu0 %3247  ;;  %v3276_v16 = vmul.f32 %v5996_v50, %v8063_v49  ;;  %v3417_v17 = vpop.permute.xlu1 %3416 }
 0x7d4   : > { %6003 = vrcp.f32 %v3248_v22 }
 0x7d5   : > { %v3286_v7 = vpack.c.bf16 %v3276_v16, %v3275_v3 }
 0x7d6   : > { %v5998_v0 = vpop.eup %5997 }
 0x7d7   : > { %5250 = vmatmul.mubr.bf16.gmra.mrb[136].mxu1 %v3286_v7  ;;  %v3411_v54 = vpop.permute.xlu0 %3410  ;;  %v3277_v57 = vmul.f32 %v5998_v0, %v8066_v18  ;;  %v3395_v36 = vpop.permute.xlu1 %3394 }
 0x7d8   : > { %v3455_v28 = vsel %vm9306_vm14, %v3411_v54, 0  ;;  %5365 = vmatprep.subr.msk.bf16.mxu1 %vm9307_vm13, %v3411_v54  ;;  %vm9309_vm14 = vmmov %vm9303_vm0 }
 0x7d9   : > { %5266 = vmatpush3.bf16.xpose.msra.mxu1 %v3455_v28  ;;  %vm9310_vm13 = vmmov %vm9303_vm0 }
 0x7da   : > { %v6000_v58 = vpop.eup %5999 }
 0x7db   : > { %v3413_v61 = vpop.permute.xlu0 %3412  ;;  %v3278_v43 = vmul.f32 %v6000_v58, %v8069_v27  ;;  %v6002_v26 = vpop.eup %6001 }
 0x7dc   : > { %5366 = vmatprep.subr.msk.bf16.mxu1 %vm9308_vm15, %v3413_v61  ;;  %v3279_v4 = vmul.f32 %v6002_v26, %v8071_v15  ;;  %v3458_v63 = vsel %vm9303_vm0, %v3413_v61, 0  ;;  %vm9311_vm15 = vmmov %vm9303_vm0  ;;  %v3399_v34 = vpop.permute.xlu1 %3398 }
 0x7dd   : > { %v3287_v56 = vpack.c.bf16 %v3278_v43, %v3277_v57 }
 0x7de   : > { %v6004_v49 = vpop.eup %6003 }
 0x7df   : > { %5253 = vmatprep.mubr.bf16.mxu1 %v3287_v56  ;;  %v3415_v32 = vpop.permute.xlu0 %3414  ;;  %v3280_v33 = vmul.f32 %v6004_v49, %v8075_v39  ;;  %v3464_v39 = vsel %vm9313_vm12, %v3417_v17, 0  ;;  %vm9317_vm12 = vmmov %vm9303_vm0 }
 0x7e0   : > { %v3461_v44 = vsel %vm9311_vm15, %v3415_v32, 0  ;;  %v3742_v12 = vpop.permute.xlu1 %3741  ;;  %vm9318_vm15 = vmmov %vm9303_vm0 }
 0x7e1   : > { %5268 = vmatpush3.bf16.xpose.msra.mxu1 %v3458_v63  ;;  %v3288_v5 = vpack.c.bf16 %v3280_v33, %v3279_v4 }
 0x7e2   : > { %5367 = vmatprep.subr.msk.bf16.mxu1 %vm9309_vm14, %v3415_v32  ;;  %vm9314_vm14 = vmmov %vm9303_vm0 }
 0x7e3   : > { %5254 = vmatmul.mubr.bf16.gmra.mrb[140].mxu1 %v3288_v5  ;;  %v3387_v18 = vpop.permute.xlu0 %3386 }
 0x7e4   : > { %5273 = vmatprep.mubr.msk.bf16.mxu1 %vm9310_vm13, %v3387_v18  ;;  %vm9316_vm13 = vmmov %vm9303_vm0 }
 0x7e7   : > { %v3389_v27 = vpop.permute.xlu0 %3388 }
 0x7e9   : > { %5270 = vmatpush3.bf16.xpose.msra.mxu1 %v3461_v44 }
 0x7ea   : > { %5368 = vmatprep.subr.msk.bf16.mxu1 %vm9312_vm1, %v3417_v17  ;;  %vm9315_vm1 = vmmov %vm9303_vm0 }
 0x7eb   : > { %v3391_v15 = vpop.permute.xlu0 %3390 }
 0x7ef   : > { %v3393_v14 = vpop.permute.xlu0 %3392 }
 0x7f1   : > { %5272 = vmatpush3.bf16.xpose.msra.mxu1 %v3464_v39 }
 0x7f3   : > { %v3397_v40 = vpop.permute.xlu0 %3396 }
 0x7f7   : > { %v3401_v1 = vpop.permute.xlu0 %3400 }
 0x7f8   : > { %5274 = vmatmul.mubr.msk.bf16.vlgmr.msra.gmra.mrb[144].mxu1 %vm9303_vm0, %v3389_v27 }
 0x7f9   : > { %5277 = vmatprep.mubr.msk.bf16.mxu1 %vm9314_vm14, %v3391_v15 }
 0x7fb   : > { %v3740_v47 = vpop.permute.xlu0 %3739 }
 0x7fc   : > { %5289 = vmatprep.subr.bf16.mxu0 %v3740_v47 }
 0x7fd   : > { %5290 = vmatpush3.bf16.msra.mxu0 %v3740_v47 }
 0x7fe   : > { %5291 = vmatprep.subr.bf16.mxu0 %v3742_v12 }
 0x7ff   : > { %v3744_v29 = vpop.permute.xlu0 %3743 }
 0x800   : > { %5278 = vmatmul.mubr.msk.bf16.gmra.mrb[148].mxu1 %vm9315_vm1, %v3393_v14  ;;  %vm9407_vm1 = vmmov %vm9303_vm0 }
 0x801   : > { %5281 = vmatprep.mubr.msk.bf16.mxu1 %vm9316_vm13, %v3395_v36  ;;  %5292 = vmatpush3.bf16.msra.mxu0 %v3742_v12  ;;  %vm9408_vm13 = vmmov %vm9303_vm0 }
 0x802   : > { %5293 = vmatprep.subr.bf16.mxu0 %v3744_v29 }
 0x803   : > { %v3746_v30 = vpop.permute.xlu0 %3745 }
 0x805   : > { %5294 = vmatpush3.bf16.msra.mxu0 %v3744_v29 }
 0x806   : > { %5295 = vmatprep.subr.bf16.mxu0 %v3746_v30 }
 0x808   : > { %5282 = vmatmul.mubr.msk.bf16.gmra.mrb[152].mxu1 %vm9317_vm12, %v3397_v40 }
 0x809   : > { %5285 = vmatprep.mubr.msk.bf16.mxu1 %vm9318_vm15, %v3399_v34  ;;  %5296 = vmatpush3.bf16.msra.mxu0 %v3746_v30  ;;  %vm9411_vm15 = vmmov %vm9303_vm0 }
 0x810   : > { %5286 = vmatmul.mubr.msk.bf16.gmra.mrb[156].mxu1 %vm9303_vm0, %v3401_v1 }
 0x851   : > { %v8192_v2 = vpop.f32.mrb[112].mxu1 }
 0x852   : > { %v8194_v11 = vpop.f32.mrb[113].mxu1 }
 0x853   : > { %v8196_v60 = vpop.f32.mrb[114].mxu1 }
 0x854   : > { %v8200_v42 = vpop.f32.mrb[115].mxu1 }
 0x85b   : > { %v8204_v37 = vpop.f32.mrb[116].mxu1 }
 0x85c   : > { %v8206_v25 = vpop.f32.mrb[117].mxu1 }
 0x85d   : > { %v8208_v13 = vpop.f32.mrb[118].mxu1 }
 0x85e   : > { %v8212_v23 = vpop.f32.mrb[119].mxu1 }
 0x863   : > { %v8216_v10 = vpop.f32.mrb[120].mxu1 }
 0x864   : > { %v8218_v8 = vpop.f32.mrb[121].mxu1 }
 0x865   : > { %v8220_v35 = vpop.f32.mrb[122].mxu1 }
 0x866   : > { %v8224_v53 = vpop.f32.mrb[123].mxu1 }
 0x87a   : > { %v8228_v48 = vpop.f32.mrb[124].mxu1 }
 0x87b   : > { %v8230_v38 = vpop.f32.mrb[125].mxu1 }
 0x87c   : > { %v8232_v52 = vpop.f32.mrb[126].mxu1 }
 0x87d   : > { %v8236_v24 = vpop.f32.mrb[127].mxu1 }
 0x882   : > { %v8240_v31 = vpop.f32.mrb[128].mxu1 }
 0x883   : > { %v8242_v50 = vpop.f32.mrb[129].mxu1 }
 0x884   : > { %v8244_v22 = vpop.f32.mrb[130].mxu1 }
 0x885   : > { %v8246_v3 = vpop.f32.mrb[131].mxu1 }
 0x89a   : > { %v8248_v16 = vpop.f32.mrb[132].mxu1 }
 0x89b   : > { %v8250_v7 = vpop.f32.mrb[133].mxu1 }
 0x89c   : > { %v8252_v54 = vpop.f32.mrb[134].mxu1 }
 0x89d   : > { %v8254_v0 = vpop.f32.mrb[135].mxu1 }
 0x8aa   : > { %v8256_v28 = vpop.f32.mrb[136].mxu1 }
 0x8ab   : > { %v8258_v58 = vpop.f32.mrb[137].mxu1 }
 0x8ac   : > { %v8260_v61 = vpop.f32.mrb[138].mxu1 }
 0x8ad   : > { %v8262_v57 = vpop.f32.mrb[139].mxu1 }
 0x8b6   : > { %v8264_v43 = vpop.f32.mrb[140].mxu1 }
 0x8b7   : > { %9319 = vst [vmem:[#allocation23_spill] sm:$0xff] %v8264_v43  ;;  %v8266_v26 = vpop.f32.mrb[141].mxu1 }
 0x8b8   : > { %9320 = vst [vmem:[#allocation28_spill] sm:$0xff] %v8266_v26  ;;  %v8268_v56 = vpop.f32.mrb[142].mxu1 }
 0x8b9   : > { %9321 = vst [vmem:[#allocation26_spill] sm:$0xff] %v8268_v56  ;;  %v8270_v49 = vpop.f32.mrb[143].mxu1 }
 0x8ba   : > { %9322 = vst [vmem:[#allocation30_spill] sm:$0xff] %v8270_v49 }
 0x8cb   : > { %v5275_v32 = vpop.f32.mrb[144].mxu1 }
 0x8cc   : > { %v3565_v33 = vsel %vm6734_vm2, %v5275_v32, -1e+30  ;;  %v3500_v63 = vpop.f32.mrb[145].mxu1  ;;  %v9335_v32 = vld [vmem:[#allocation54_spill] sm:$0xff] }
 0x8cd   : > { %v3563_v18 = vsel %vm6745_vm3, %v3500_v63, -1e+30  ;;  %3583 = vmax.xlane.f32.xlu0 %v3565_v33  ;;  %v5276_v27 = vpop.f32.mrb[146].mxu1  ;;  %vm9336_vm3 = vnez %v9335_v32 }
 0x8ce   : > { %3579 = vmax.xlane.f32.xlu1 %v3563_v18  ;;  %v3503_v44 = vpop.f32.mrb[147].mxu1  ;;  %v3566_v39 = vsel %vm6761_vm4, %v5276_v27, -1e+30 }
 0x8cf   : > { %v3564_v15 = vsel %vm6777_vm5, %v3503_v44, -1e+30  ;;  %v9337_v44 = vld [vmem:[#allocation55_spill] sm:$0xff] }
 0x8d0   : > { %vm9338_vm4 = vnez %v9337_v44 }
 0x8d1   : > { %3581 = vmax.xlane.f32.xlu0 %v3564_v15 }
 0x8d2   : > { %3585 = vmax.xlane.f32.xlu1 %v3566_v39 }
 0x8d3   : > { %v5279_v36 = vpop.f32.mrb[148].mxu1 }
 0x8d4   : > { %v3569_v34 = vsel %vm6793_vm6, %v5279_v36, -1e+30  ;;  %v3516_v1 = vpop.f32.mrb[149].mxu1 }
 0x8d5   : > { %3591 = vmax.xlane.f32.xlu0 %v3569_v34  ;;  %v5280_v47 = vpop.f32.mrb[150].mxu1  ;;  %v3567_v4 = vsel %vm6825_vm8, %v3516_v1, -1e+30  ;;  %v9333_v1 = vld [vmem:[#allocation53_spill] sm:$0xff]  ;;  %vm9381_vm8 = vmmov %vm9303_vm0 }
 0x8d6   : > { %v3570_v29 = vsel %vm6809_vm7, %v5280_v47, -1e+30  ;;  %v3519_v30 = vpop.f32.mrb[151].mxu1  ;;  %vm9334_vm2 = vnez %v9333_v1 }
 0x8d7   : > { %3593 = vmax.xlane.f32.xlu1 %v3570_v29  ;;  %v3568_v5 = vsel %vm6841_vm9, %v3519_v30, -1e+30  ;;  %vm9383_vm9 = vmmov %vm9303_vm0 }
 0x8d9   : > { %3587 = vmax.xlane.f32.xlu0 %v3567_v4 }
 0x8db   : > { %3589 = vmax.xlane.f32.xlu1 %v3568_v5  ;;  %v5283_v27 = vpop.f32.mrb[152].mxu1 }
 0x8dc   : > { %v8290_v17 = vsel %vm9261_vm10, %v5283_v27, -1e+30  ;;  %v3532_v14 = vpop.f32.mrb[153].mxu1  ;;  %vm4148_vm10 = vcmask 785408  }
 0x8dd   : > { %3599 = vmax.xlane.f32.xlu0 %v8290_v17  ;;  %v5284_v36 = vpop.f32.mrb[154].mxu1  ;;  %v8300_v30 = vsel %vm9334_vm2, %v3532_v14, -1e+30  ;;  %v9339_v14 = vld [vmem:[#allocation57_spill] sm:$0xff] }
 0x8de   : > { %v8295_v47 = vsel %vm9263_vm11, %v5284_v36, -1e+30  ;;  %v3535_v12 = vpop.f32.mrb[155].mxu1  ;;  %vm9340_vm5 = vnez %v9339_v14  ;;  %vm9384_vm11 = vcmask 523264  }
 0x8df   : > { %3601 = vmax.xlane.f32.xlu1 %v8295_v47  ;;  %v8305_v63 = vsel %vm9336_vm3, %v3535_v12, -1e+30  ;;  %v9341_v12 = vld [vmem:[#allocation56_spill] sm:$0xff]  ;;  %vm9385_vm14 = vmmov %vm9384_vm11 }
 0x8e0   : > { %vm9342_vm6 = vnez %v9341_v12  ;;  %vm9409_vm12 = vmmov %vm9384_vm11 }
 0x8e1   : > { %3595 = vmax.xlane.f32.xlu0 %v8300_v30  ;;  %vm9413_vm2 = vmmov %vm9384_vm11 }
 0x8e2   : > { %vm9414_vm3 = vmmov %vm9413_vm2 }
 0x8e3   : > { %3597 = vmax.xlane.f32.xlu1 %v8305_v63  ;;  %v5287_v27 = vpop.f32.mrb[156].mxu1 }
 0x8e4   : > { %v8310_v36 = vsel %vm9338_vm4, %v5287_v27, -1e+30  ;;  %v3548_v40 = vpop.f32.mrb[157].mxu1  ;;  %v9343_v27 = vld [vmem:[#allocation58_spill] sm:$0xff]  ;;  %vm9415_vm4 = vmmov %vm9303_vm0 }
 0x8e5   : > { %3607 = vmax.xlane.f32.xlu0 %v8310_v36  ;;  %v5288_v9 = vpop.f32.mrb[158].mxu1  ;;  %v8315_v41 = vsel %vm9340_vm5, %v3548_v40, -1e+30  ;;  %vm9344_vm7 = vnez %v9343_v27  ;;  %vm9416_vm5 = vmmov %vm9303_vm0 }
 0x8e6   : > { %v3551_v1 = vpop.f32.mrb[159].mxu1  ;;  %v8324_v32 = vsel %vm9342_vm6, %v5288_v9, -1e+30  ;;  %vm9417_vm6 = vmmov %vm9413_vm2 }
 0x8e7   : > { %v8329_v44 = vsel %vm9344_vm7, %v3551_v1, -1e+30  ;;  %vm9419_vm7 = vmmov %vm9303_vm0 }
 0x8e9   : > { %3603 = vmax.xlane.f32.xlu0 %v8315_v41 }
 0x8f4   : > { %3749 = vrot.lane.b32.xlu1 %v9294_v45, %s6080_s25 }
 0x8ff   : > { %3747 = vrot.lane.b32.xlu0 %v9293_v62, %s6080_s25 }
 0x918   : > { %3609 = vmax.xlane.f32.xlu1 %v8324_v32 }
 0x91c   : > { %3605 = vmax.xlane.f32.xlu1 %v8329_v44 }
 0x95a   : > { %v3584_v40 = vpop.xlane.xlu0 %3583 }
 0x95b   : > { %v3613_v14 = vsub.f32 %v3565_v33, %v3584_v40  ;;  %v3580_v6 = vpop.xlane.xlu1 %3579 }
 0x95c   : > { %v3611_v55 = vsub.f32 %v3563_v18, %v3580_v6 }
 0x95d   : > { %v3631_v45 = vmul.f32 1.442695, %v3613_v14 }
 0x95e   : > { %v3582_v21 = vpop.xlane.xlu0 %3581  ;;  %v3627_v62 = vmul.f32 1.442695, %v3611_v55 }
 0x95f   : > { %6005 = vpow2.f32 %v3631_v45  ;;  %v3586_v20 = vpop.xlane.xlu1 %3585  ;;  %v3612_v9 = vsub.f32 %v3564_v15, %v3582_v21 }
 0x960   : > { %v3614_v12 = vsub.f32 %v3566_v39, %v3586_v20  ;;  %6007 = vpow2.f32 %v3627_v62 }
 0x961   : > { %v3629_v56 = vmul.f32 1.442695, %v3612_v9 }
 0x962   : > { %v3633_v51 = vmul.f32 1.442695, %v3614_v12  ;;  %v3592_v19 = vpop.xlane.xlu0 %3591 }
 0x963   : > { %v3617_v43 = vsub.f32 %v3569_v34, %v3592_v19 }
 0x964   : > { %v3594_v27 = vpop.xlane.xlu1 %3593  ;;  %6009 = vpow2.f32 %v3633_v51 }
 0x965   : > { %v3639_v1 = vmul.f32 1.442695, %v3617_v43  ;;  %v3618_v26 = vsub.f32 %v3570_v29, %v3594_v27 }
 0x966   : > { %v3588_v49 = vpop.xlane.xlu0 %3587 }
 0x967   : > { %6011 = vpow2.f32 %v3639_v1  ;;  %v3615_v33 = vsub.f32 %v3567_v4, %v3588_v49  ;;  %v3641_v20 = vmul.f32 1.442695, %v3618_v26 }
 0x968   : > { %v3590_v6 = vpop.xlane.xlu1 %3589  ;;  %6013 = vpow2.f32 %v3629_v56 }
 0x969   : > { %v8332_v18 = vpop.eup %6005  ;;  %v3635_v40 = vmul.f32 1.442695, %v3615_v33  ;;  %v3616_v55 = vsub.f32 %v3568_v5, %v3590_v6 }
 0x96a   : > { %3663 = vadd.xlane.f32.xlu1 %v8332_v18  ;;  %v3600_v21 = vpop.xlane.xlu0 %3599  ;;  %v8335_v15 = vpop.eup %6007 }
 0x96b   : > { %6015 = vpow2.f32 %v3635_v40  ;;  %v3637_v19 = vmul.f32 1.442695, %v3616_v55  ;;  %v3621_v27 = vsub.f32 %v8290_v17, %v3600_v21 }
 0x96c   : > { %6017 = vpow2.f32 %v3641_v20  ;;  %v3602_v49 = vpop.xlane.xlu1 %3601 }
 0x96d   : > { %6019 = vpow2.f32 %v3637_v19  ;;  %v3622_v33 = vsub.f32 %v8295_v47, %v3602_v49  ;;  %v3647_v40 = vmul.f32 1.442695, %v3621_v27  ;;  %v9349_v27 = vld [vmem:[#allocation24_spill] sm:$0xff] }
 0x96e   : > { %3659 = vadd.xlane.f32.xlu1 %v8335_v15  ;;  %v3596_v51 = vpop.xlane.xlu0 %3595  ;;  %v8338_v43 = vpop.eup %6009 }
 0x96f   : > { %v3619_v12 = vsub.f32 %v8300_v30, %v3596_v51  ;;  %v3649_v55 = vmul.f32 1.442695, %v3622_v33  ;;  %v9351_v33 = vpack.i.bf16 %v8200_v42, %v8194_v11  ;;  %v9359_v11 = vpack.i.bf16 %v8212_v23, %v8206_v25  ;;  %v9360_v42 = vld [vmem:[#allocation85_spill] sm:$0xff] }
 0x970   : > { %v3598_v29 = vpop.xlane.xlu1 %3597  ;;  %v9367_v25 = vpack.i.bf16 %v8224_v53, %v8218_v8 }
 0x971   : > { %v8340_v39 = vpop.eup %6011  ;;  %v3620_v9 = vsub.f32 %v8305_v63, %v3598_v29  ;;  %v3643_v1 = vmul.f32 1.442695, %v3619_v12 }
 0x972   : > { %3665 = vadd.xlane.f32.xlu1 %v8338_v43  ;;  %3671 = vadd.xlane.f32.xlu0 %v8340_v39  ;;  %v3608_v26 = vpop.xlane.xlu0 %3607  ;;  %v8344_v56 = vpop.eup %6013 }
 0x973   : > { %v3645_v6 = vmul.f32 1.442695, %v3620_v9  ;;  %6021 = vpow2.f32 %v3643_v1  ;;  %v9348_v9 = vld [vmem:[#allocation75_spill] sm:$0xff] }
 0x974   : > { %v3750_v62 = vpop.permute.xlu1 %3749  ;;  %v9350_v1 = vpack.i.bf16 %v9348_v9, %v9349_v27  ;;  %v9372_v9 = vld [vmem:[#allocation21_spill] sm:$0xff] }
 0x975   : > { %v8346_v34 = vpop.eup %6015  ;;  %6023 = vpow2.f32 %v3645_v6  ;;  %v9352_v6 = vld [vmem:[#allocation84_spill] sm:$0xff]  ;;  %v9373_v27 = vld [vmem:[#allocation5_spill] sm:$0xff] }
 0x976   : > { %3661 = vadd.xlane.f32.xlu1 %v8344_v56  ;;  %3667 = vadd.xlane.f32.xlu0 %v8346_v34  ;;  %v3604_v4 = vpop.xlane.xlu0 %3603  ;;  %v8350_v5 = vpop.eup %6017  ;;  %6025 = vpow2.f32 %v3647_v40  ;;  %v9353_v40 = vld [vmem:[#allocation72_spill] sm:$0xff]  ;;  %v9374_v8 = vpack.i.bf16 %v9372_v9, %v9373_v27 }
 0x977   : > { %v8352_v14 = vpop.eup %6019  ;;  %v3623_v20 = vsub.f32 %v8315_v41, %v3604_v4  ;;  %6027 = vpow2.f32 %v3649_v55  ;;  %v9354_v55 = vpack.i.bf16 %v9352_v6, %v9353_v40  ;;  %v9376_v6 = vld [vmem:[#allocation13_spill] sm:$0xff]  ;;  %v9377_v40 = vld [vmem:[#allocation74_spill] sm:$0xff] }
 0x979   : > { %v3651_v30 = vmul.f32 1.442695, %v3623_v20  ;;  %v9355_v20 = vpack.i.bf16 %v8196_v60, %v8192_v2  ;;  %v9363_v2 = vpack.i.bf16 %v8208_v13, %v8204_v37  ;;  %v9364_v60 = vld [vmem:[#allocation83_spill] sm:$0xff]  ;;  %v9371_v37 = vpack.i.bf16 %v8220_v35, %v8216_v10 }
 0x97a   : > { %3669 = vadd.xlane.f32.xlu1 %v8352_v14  ;;  %3673 = vadd.xlane.f32.xlu0 %v8350_v5  ;;  %v3748_v45 = vpop.permute.xlu0 %3747 }
 0x97b   : > { %5297 = vmatprep.subr.bf16.mxu0 %v3748_v45  ;;  %6029 = vpow2.f32 %v3651_v30 }
 0x97c   : > { %5298 = vmatpush3.bf16.msra.mxu0 %v3748_v45  ;;  %v9345_v45 = vld [vmem:[#allocation82_spill] sm:$0xff] }
 0x97d   : > { %5299 = vmatprep.subr.bf16.mxu0 %v3750_v62  ;;  %v8368_v51 = vpop.eup %6021 }
 0x97f   : > { %v8370_v49 = vpop.eup %6023 }
 0x980   : > { %5300 = vmatpush3.bf16.msra.mxu0 %v3750_v62  ;;  %v8374_v41 = vpop.eup %6025  ;;  %v9346_v62 = vld [vmem:[#allocation27_spill] sm:$0xff] }
 0x981   : > { %v9347_v12 = vpack.i.bf16 %v9345_v45, %v9346_v62 }
 0x98b   : > { %3753 = vrot.lane.b32.xlu1 %v9296_v46, %s6080_s25 }
 0x990   : > { %3751 = vrot.lane.b32.xlu0 %v9295_v59, %s6080_s25  ;;  %v3625_v59 = vsub.f32 %v8310_v36, %v3608_v26  ;;  %v8376_v36 = vpop.eup %6027 }
 0x992   : > { %v3655_v21 = vmul.f32 1.442695, %v3625_v59  ;;  %v9357_v59 = vld [vmem:[#allocation81_spill] sm:$0xff] }
 0x9a5   : > { %v3610_v46 = vpop.xlane.xlu1 %3609 }
 0x9a6   : > { %v3626_v63 = vsub.f32 %v8324_v32, %v3610_v46  ;;  %v8380_v32 = vpop.eup %6029  ;;  %v9356_v46 = vld [vmem:[#allocation20_spill] sm:$0xff] }
 0x9a7   : > { %v9358_v30 = vpack.i.bf16 %v9356_v46, %v9357_v59 }
 0x9a8   : > { %v3657_v29 = vmul.f32 1.442695, %v3626_v63 }
 0x9a9   : > { %v3606_v19 = vpop.xlane.xlu1 %3605 }
 0x9aa   : > { %v3624_v17 = vsub.f32 %v8329_v44, %v3606_v19  ;;  %v9361_v19 = vld [vmem:[#allocation16_spill] sm:$0xff] }
 0x9ab   : > { %v9362_v63 = vpack.i.bf16 %v9360_v42, %v9361_v19 }
 0x9ac   : > { %v3653_v47 = vmul.f32 1.442695, %v3624_v17  ;;  %v9365_v17 = vld [vmem:[#allocation86_spill] sm:$0xff] }
 0x9ae   : > { %6031 = vpow2.f32 %v3653_v47  ;;  %v9368_v47 = vld [vmem:[#allocation88_spill] sm:$0xff] }
 0x9af   : > { %3677 = vadd.xlane.f32.xlu0 %v8370_v49  ;;  %3675 = vadd.xlane.f32.xlu1 %v8368_v51  ;;  %6033 = vpow2.f32 %v3655_v21  ;;  %v9366_v21 = vpack.i.bf16 %v9364_v60, %v9365_v17 }
 0x9b0   : > { %6035 = vpow2.f32 %v3657_v29  ;;  %v9369_v29 = vld [vmem:[#allocation87_spill] sm:$0xff] }
 0x9b1   : > { %v9370_v45 = vpack.i.bf16 %v9368_v47, %v9369_v29 }
 0x9b3   : > { %3679 = vadd.xlane.f32.xlu0 %v8374_v41  ;;  %3681 = vadd.xlane.f32.xlu1 %v8376_v36 }
 0x9b7   : > { %3683 = vadd.xlane.f32.xlu0 %v8380_v32 }
 0x9b8   : > { %v8383_v44 = vpop.eup %6031 }
 0x9b9   : > { %3685 = vadd.xlane.f32.xlu1 %v8383_v44  ;;  %v8386_v26 = vpop.eup %6033 }
 0x9ba   : > { %v8389_v4 = vpop.eup %6035 }
 0x9bb   : > { %3687 = vadd.xlane.f32.xlu0 %v8386_v26 }
 0x9bd   : > { %3689 = vadd.xlane.f32.xlu1 %v8389_v4 }
 0x9ce   : > { %5387 = vrot.lane.b32.xlu1 %v9347_v12, %s6078_s12 }
 0x9d1   : > { %5382 = vrot.lane.b32.xlu0 %v9350_v1, %s6079_s24 }
 0x9d5   : > { %5392 = vrot.lane.b32.xlu0 %v9351_v33, %s6080_s25  ;;  %v9375_v33 = vpack.i.bf16 %v8236_v24, %v8230_v38  ;;  %v9379_v38 = vpack.i.bf16 %v8232_v52, %v8228_v48 }
 0x9d9   : > { %5407 = vrot.lane.b32.xlu0 %v9354_v55, %s6078_s12  ;;  %v9378_v55 = vpack.i.bf16 %v9376_v6, %v9377_v40 }
 0x9dd   : > { %5417 = vrot.lane.b32.xlu0 %v9355_v20, %s6080_s25 }
 0x9e1   : > { %5427 = vrot.lane.b32.xlu0 %v9358_v30, %s6078_s12 }
 0x9e5   : > { %5432 = vrot.lane.b32.xlu0 %v9359_v11, %s6080_s25 }
 0x9e9   : > { %5447 = vrot.lane.b32.xlu0 %v9362_v63, %s6078_s12 }
 0x9ed   : > { %5457 = vrot.lane.b32.xlu0 %v9363_v2, %s6080_s25 }
 0x9f1   : > { %5467 = vrot.lane.b32.xlu0 %v9366_v21, %s6078_s12 }
 0x9f5   : > { %5472 = vrot.lane.b32.xlu0 %v9367_v25, %s6080_s25 }
 0x9f7   : > { %v3664_v23 = vpop.xlane.xlu1 %3663 }
 0x9f9   : > { %5487 = vrot.lane.b32.xlu0 %v9370_v45, %s6078_s12 }
 0x9fb   : > { %v3660_v62 = vpop.xlane.xlu1 %3659 }
 0x9fd   : > { %5497 = vrot.lane.b32.xlu0 %v9371_v37, %s6080_s25 }
 0x9ff   : > { %v3666_v13 = vpop.xlane.xlu1 %3665  ;;  %v3672_v12 = vpop.xlane.xlu0 %3671 }
 0xa00   : > { %6037 = vrcp.f32 %v3666_v13 }
 0xa01   : > { %5507 = vrot.lane.b32.xlu0 %v9374_v8, %s6078_s12  ;;  %6039 = vrcp.f32 %v3660_v62 }
 0xa02   : > { %6041 = vrcp.f32 %v3664_v23 }
 0xa03   : > { %v3662_v53 = vpop.xlane.xlu1 %3661  ;;  %v3668_v1 = vpop.xlane.xlu0 %3667 }
 0xa04   : > { %6043 = vrcp.f32 %v3662_v53 }
 0xa05   : > { %5512 = vrot.lane.b32.xlu0 %v9375_v33, %s6080_s25  ;;  %6045 = vrcp.f32 %v3668_v1 }
 0xa07   : > { %v3670_v10 = vpop.xlane.xlu1 %3669  ;;  %v3674_v35 = vpop.xlane.xlu0 %3673 }
 0xa08   : > { %6047 = vrcp.f32 %v3670_v10 }
 0xa09   : > { %6049 = vrcp.f32 %v3674_v35  ;;  %5527 = vrot.lane.b32.xlu0 %v9378_v55, %s6078_s12 }
 0xa0a   : > { %v6038_v20 = vpop.eup %6037  ;;  %6051 = vrcp.f32 %v3672_v12 }
 0xa0b   : > { %v3752_v46 = vpop.permute.xlu0 %3751  ;;  %v6040_v59 = vpop.eup %6039  ;;  %v3710_v42 = vmul.f32 %v6038_v20, %v8338_v43 }
 0xa0c   : > { %5301 = vmatprep.subr.bf16.mxu0 %v3752_v46  ;;  %v6042_v30 = vpop.eup %6041  ;;  %v3754_v11 = vpop.permute.xlu1 %3753  ;;  %v3707_v19 = vmul.f32 %v6040_v59, %v8335_v15  ;;  %v9382_v59 = vld [vmem:[#allocation67_spill] sm:$0xff] }
 0xa0d   : > { %5537 = vrot.lane.b32.xlu0 %v9379_v38, %s6080_s25  ;;  %5302 = vmatpush3.bf16.msra.mxu0 %v3752_v46  ;;  %v3709_v60 = vmul.f32 %v6042_v30, %v8332_v18  ;;  %v9380_v46 = vld [vmem:[#allocation59_spill] sm:$0xff] }
 0xa0e   : > { %v6044_v24 = vpop.eup %6043  ;;  %5303 = vmatprep.subr.bf16.mxu0 %v3754_v11 }
 0xa0f   : > { %v3708_v63 = vmul.f32 %v6044_v24, %v8344_v56  ;;  %v6046_v2 = vpop.eup %6045  ;;  %v3724_v25 = vpack.c.bf16 %v3710_v42, %v3709_v60 }
 0xa10   : > { %v3711_v48 = vmul.f32 %v6046_v2, %v8346_v34 }
 0xa11   : > { %5304 = vmatpush3.bf16.msra.mxu0 %v3754_v11  ;;  %v3723_v17 = vpack.c.bf16 %v3708_v63, %v3707_v19 }
 0xa12   : > { %v6048_v21 = vpop.eup %6047 }
 0xa13   : > { %v6050_v23 = vpop.eup %6049  ;;  %5305 = vmatprep.mubr.bf16.mxu0 %v3723_v17  ;;  %v3712_v52 = vmul.f32 %v6048_v21, %v8352_v14 }
 0xa14   : > { %5306 = vmatmul.mubr.bf16.vlgmr.msra.gmra.mrb[112].mxu0 %v3724_v25  ;;  %v6052_v43 = vpop.eup %6051  ;;  %v3714_v15 = vmul.f32 %v6050_v23, %v8350_v5 }
 0xa15   : > { %v3725_v47 = vpack.c.bf16 %v3712_v52, %v3711_v48  ;;  %v3713_v56 = vmul.f32 %v6052_v43, %v8340_v39 }
 0xa17   : > { %5309 = vmatprep.mubr.bf16.mxu0 %v3725_v47  ;;  %v3726_v29 = vpack.c.bf16 %v3714_v15, %v3713_v56  ;;  %v5649_v15 = vld [vmem:[%s8797_s2] ss:$8 sps:$4 sm:$0xff]   ;;  %v5654_v56 = vld [vmem:[%s8797_s2 + $0x14] ss:$8 sps:$4 sm:$0xff]  }
 0xa1c   : > { %5310 = vmatmul.mubr.bf16.gmra.mrb[116].mxu0 %v3726_v29  ;;  %v5655_v29 = vld [vmem:[%s8797_s2 + $0x20] ss:$8 sps:$4 sm:$0xff]  }
 0xa3c   : > { %v3676_v18 = vpop.xlane.xlu1 %3675  ;;  %v3678_v45 = vpop.xlane.xlu0 %3677 }
 0xa3d   : > { %6053 = vrcp.f32 %v3676_v18  ;;  %v5660_v18 = vld [vmem:[%s8797_s2 + $0x34] ss:$8 sps:$4 sm:$0xff]  }
 0xa3e   : > { %6055 = vrcp.f32 %v3678_v45  ;;  %v5658_v45 = vld [vmem:[%s8797_s2 + $0x30] ss:$8 sps:$4 sm:$0xff]  }
 0xa40   : > { %v3682_v62 = vpop.xlane.xlu1 %3681  ;;  %v3680_v37 = vpop.xlane.xlu0 %3679 }
 0xa41   : > { %6057 = vrcp.f32 %v3682_v62  ;;  %v5663_v62 = vld [vmem:[%s8797_s2 + $0x44] ss:$8 sps:$4 sm:$0xff]  }
 0xa42   : > { %6059 = vrcp.f32 %v3680_v37  ;;  %v5661_v37 = vld [vmem:[%s8797_s2 + $0x40] ss:$8 sps:$4 sm:$0xff]  }
 0xa44   : > { %v3684_v34 = vpop.xlane.xlu0 %3683 }
 0xa45   : > { %6061 = vrcp.f32 %v3684_v34  ;;  %v5666_v34 = vld [vmem:[%s8797_s2 + $0x54] ss:$8 sps:$4 sm:$0xff]  }
 0xa46   : > { %v3686_v14 = vpop.xlane.xlu1 %3685 }
 0xa47   : > { %v6054_v13 = vpop.eup %6053  ;;  %6063 = vrcp.f32 %v3686_v14  ;;  %v5664_v14 = vld [vmem:[%s8797_s2 + $0x50] ss:$8 sps:$4 sm:$0xff]  }
 0xa48   : > { %v6056_v12 = vpop.eup %6055  ;;  %v3688_v5 = vpop.xlane.xlu0 %3687  ;;  %v3715_v9 = vmul.f32 %v6054_v13, %v8368_v51  ;;  %v5669_v13 = vld [vmem:[%s8797_s2 + $0x64] ss:$8 sps:$4 sm:$0xff]  }
 0xa49   : > { %6065 = vrcp.f32 %v3688_v5  ;;  %v3716_v39 = vmul.f32 %v6056_v12, %v8370_v49  ;;  %v5667_v12 = vld [vmem:[%s8797_s2 + $0x60] ss:$8 sps:$4 sm:$0xff]   ;;  %v5672_v5 = vld [vmem:[%s8797_s2 + $0x74] ss:$8 sps:$4 sm:$0xff]  }
 0xa4a   : > { %v3690_v27 = vpop.xlane.xlu1 %3689 }
 0xa4b   : > { %v6058_v8 = vpop.eup %6057  ;;  %6067 = vrcp.f32 %v3690_v27  ;;  %v3727_v53 = vpack.c.bf16 %v3716_v39, %v3715_v9  ;;  %v5670_v9 = vld [vmem:[%s8797_s2 + $0x70] ss:$8 sps:$4 sm:$0xff]   ;;  %v5675_v39 = vld [vmem:[%s8797_s2 + $0x84] ss:$8 sps:$4 sm:$0xff]   ;;  %v5673_v27 = vld [vmem:[%s8797_s2 + $0x80] ss:$8 sps:$4 sm:$0xff]  }
 0xa4c   : > { %v6060_v1 = vpop.eup %6059  ;;  %v5383_v33 = vpop.permute.xlu0 %5382  ;;  %v3718_v10 = vmul.f32 %v6058_v8, %v8376_v36  ;;  %v5678_v8 = vld [vmem:[%s8797_s2 + $0x94] ss:$8 sps:$4 sm:$0xff]  }
 0xa4d   : > { %5313 = vmatprep.mubr.bf16.mxu0 %v3727_v53  ;;  %v5385_v35 = vunpack.i.h.bf16 %v5383_v33  ;;  %v5384_v6 = vunpack.i.l.bf16 %v5383_v33  ;;  %v3717_v40 = vmul.f32 %v6060_v1, %v8374_v41  ;;  %v5676_v53 = vld [vmem:[%s8797_s2 + $0x90] ss:$8 sps:$4 sm:$0xff]   ;;  %v5681_v1 = vld [vmem:[%s8797_s2 + $0xa4] ss:$8 sps:$4 sm:$0xff]   ;;  %v5679_v33 = vld [vmem:[%s8797_s2 + $0xa0] ss:$8 sps:$4 sm:$0xff]  }
 0xa4e   : > { %v5388_v55 = vpop.permute.xlu1 %5387 }
 0xa4f   : > { %v6062_v20 = vpop.eup %6061  ;;  %v4117_v51 = vsel %vm9381_vm8, %v9380_v46, %v5385_v35  ;;  %v4116_v49 = vsel %vm9383_vm9, %v9382_v59, %v5384_v6  ;;  %v5390_v30 = vunpack.i.h.bf16 %v5388_v55  ;;  %v5389_v11 = vunpack.i.l.bf16 %v5388_v55  ;;  %v5682_v35 = vld [vmem:[%s8797_s2 + $0xb0] ss:$8 sps:$4 sm:$0xff]   ;;  %vm9421_vm8 = vmmov %vm9303_vm0 }
 0xa50   : > { %v3728_v38 = vpack.c.bf16 %v3718_v10, %v3717_v40  ;;  %v5393_v24 = vpop.permute.xlu0 %5392  ;;  %v3719_v2 = vmul.f32 %v6062_v20, %v8380_v32  ;;  %v5684_v10 = vld [vmem:[%s8797_s2 + $0xb4] ss:$8 sps:$4 sm:$0xff]   ;;  %vm9422_vm9 = vmmov %vm9413_vm2 }
 0xa51   : > { %v6064_v42 = vpop.eup %6063  ;;  %v4132_v36 = vsel %vm9384_vm11, %v4116_v49, %v5389_v11  ;;  %v4133_v19 = vsel %vm9385_vm14, %v4117_v51, %v5390_v30  ;;  %v5395_v63 = vunpack.i.h.bf16 %v5393_v24  ;;  %v5394_v41 = vunpack.i.l.bf16 %v5393_v24  ;;  %v9386_v30 = vld [vmem:[#allocation65_spill] sm:$0xff]  ;;  %vm9423_vm11 = vmmov %vm9413_vm2 }
 0xa52   : > { %5314 = vmatmul.mubr.bf16.gmra.mrb[120].mxu0 %v3728_v38  ;;  %v3720_v60 = vmul.f32 %v6064_v42, %v8383_v44  ;;  %v5651_v44 = vld [vmem:[%s8797_s2 + $0x4] ss:$8 sps:$4 sm:$0xff]   ;;  %v9387_v11 = vld [vmem:[#allocation29_spill] sm:$0xff]  ;;  %vm9424_vm14 = vmmov %vm9303_vm0 }
 0xa53   : > { %v6066_v17 = vpop.eup %6065  ;;  %v8481_v21 = vsel %vm4148_vm10, %v4132_v36, %v5394_v41  ;;  %v8484_v25 = vsel %vm4148_vm10, %v4133_v19, %v5395_v63  ;;  %4352 = vmatprep.subr.bf16.mxu0 %v5651_v44  ;;  %v9388_v38 = vpack.i.bf16 %v9386_v30, %v9387_v11  ;;  %v9389_v63 = vld [vmem:[#allocation79_spill] sm:$0xff]  ;;  %v9390_v41 = vld [vmem:[#allocation18_spill] sm:$0xff] }
 0xa54   : > { %v4181_v23 = vpack.c.bf16 %v8484_v25, %v8481_v21  ;;  %v3729_v48 = vpack.c.bf16 %v3720_v60, %v3719_v2  ;;  %v3721_v43 = vmul.f32 %v6066_v17, %v8386_v26  ;;  %4353 = vmatpush1.bf16.msra.mxu0 %v5649_v15  ;;  %v5652_v26 = vld [vmem:[%s8797_s2 + $0x10] ss:$8 sps:$4 sm:$0xff]   ;;  %v9391_v2 = vpack.i.bf16 %v9389_v63, %v9390_v41  ;;  %v9393_v17 = vld [vmem:[#allocation66_spill] sm:$0xff]  ;;  %v9412_v63 = vld [vmem:[#allocation35_spill] sm:$0xff] }
 0xa55   : > { %v6068_v52 = vpop.eup %6067  ;;  %4354 = vmatprep.subr.bf16.mxu0 %v5654_v56  ;;  %v9392_v60 = vld [vmem:[#allocation80_spill] sm:$0xff] }
 0xa56   : > { %5317 = vmatprep.mubr.bf16.mxu0 %v3729_v48  ;;  %v3722_v47 = vmul.f32 %v6068_v52, %v8389_v4  ;;  %v5657_v4 = vld [vmem:[%s8797_s2 + $0x24] ss:$8 sps:$4 sm:$0xff]   ;;  %v9394_v48 = vpack.i.bf16 %v9392_v60, %v9393_v17 }
 0xa57   : > { %v9395_v52 = vld [vmem:[#allocation22_spill] sm:$0xff] }
 0xa58   : > { %v3730_v32 = vpack.c.bf16 %v3722_v47, %v3721_v43  ;;  %4355 = vmatpush1.bf16.msra.mxu0 %v5652_v26  ;;  %v9396_v43 = vld [vmem:[#allocation31_spill] sm:$0xff] }
 0xa59   : > { %4356 = vmatprep.subr.bf16.mxu0 %v5657_v4  ;;  %v9397_v47 = vpack.i.bf16 %v9395_v52, %v9396_v43 }
 0xa5a   : > { %5318 = vmatmul.mubr.bf16.gmra.mrb[124].mxu0 %v3730_v32 }
 0xa5c   : > { %4357 = vmatpush1.bf16.msra.mxu0 %v5655_v29 }
 0xa5d   : > { %4358 = vmatprep.subr.bf16.mxu0 %v5660_v18 }
 0xa60   : > { %4359 = vmatpush1.bf16.msra.mxu0 %v5658_v45  ;;  %v9398_v45 = vld [vmem:[#allocation70_spill] sm:$0xff] }
 0xa61   : > { %4360 = vmatprep.subr.bf16.mxu0 %v5663_v62  ;;  %v9399_v62 = vld [vmem:[#allocation68_spill] sm:$0xff] }
 0xa64   : > { %4361 = vmatpush1.bf16.msra.mxu0 %v5661_v37  ;;  %v9400_v37 = vpack.i.bf16 %v9398_v45, %v9399_v62  ;;  %v9420_v62 = vld [vmem:[#allocation69_spill] sm:$0xff] }
 0xa65   : > { %4362 = vmatprep.subr.bf16.mxu0 %v5666_v34 }
 0xa68   : > { %4363 = vmatpush1.bf16.msra.mxu0 %v5664_v14 }
 0xa69   : > { %4364 = vmatprep.subr.bf16.mxu0 %v5669_v13 }
 0xa6c   : > { %4365 = vmatpush1.bf16.msra.mxu0 %v5667_v12 }
 0xa6d   : > { %4366 = vmatprep.subr.bf16.mxu0 %v5672_v5  ;;  %v9401_v5 = vld [vmem:[#allocation6_spill] sm:$0xff] }
 0xa70   : > { %4367 = vmatpush1.bf16.msra.mxu0 %v5670_v9  ;;  %v9402_v9 = vld [vmem:[#allocation4_spill] sm:$0xff] }
 0xa71   : > { %4368 = vmatprep.subr.bf16.mxu0 %v5675_v39  ;;  %v9403_v39 = vpack.i.bf16 %v9401_v5, %v9402_v9 }
 0xa74   : > { %4369 = vmatpush1.bf16.msra.mxu0 %v5673_v27  ;;  %v9404_v27 = vld [vmem:[#allocation78_spill] sm:$0xff] }
 0xa75   : > { %4370 = vmatprep.subr.bf16.mxu0 %v5678_v8  ;;  %v9405_v8 = vld [vmem:[#allocation77_spill] sm:$0xff] }
 0xa78   : > { %4371 = vmatpush1.bf16.msra.mxu0 %v5676_v53  ;;  %v9406_v53 = vpack.i.bf16 %v9404_v27, %v9405_v8 }
 0xa79   : > { %4372 = vmatprep.subr.bf16.mxu0 %v5681_v1  ;;  %v5408_v1 = vpop.permute.xlu0 %5407 }
 0xa7a   : > { %v5410_v11 = vunpack.i.h.bf16 %v5408_v1 }
 0xa7c   : > { %4373 = vmatpush1.bf16.msra.mxu0 %v5679_v33 }
 0xa7d   : > { %4374 = vmatprep.subr.bf16.mxu0 %v5684_v10  ;;  %v5418_v33 = vpop.permute.xlu0 %5417 }
 0xa80   : > { %4375 = vmatpush1.bf16.msra.mxu0 %v5682_v35 }
 0xa81   : > { %v5428_v10 = vpop.permute.xlu0 %5427 }
 0xae7   : > { %v5307_v6 = vpop.f32.mrb[112].mxu0 }
 0xae8   : > { %v3797_v40 = vpop.f32.mrb[113].mxu0 }
 0xae9   : > { %v5308_v55 = vpop.f32.mrb[114].mxu0 }
 0xaea   : > { %v5411_v20 = vpack.i.bf16 %v5308_v55, %v5307_v6  ;;  %v3800_v46 = vpop.f32.mrb[115].mxu0 }
 0xaeb   : > { %v5396_v51 = vpack.i.bf16 %v3800_v46, %v3797_v40  ;;  %v5433_v46 = vpop.permute.xlu0 %5432 }
 0xaed   : > { %5397 = vrot.lane.b32.xlu1 %v5396_v51, %s6079_s24 }
 0xaef   : > { %v5311_v59 = vpop.f32.mrb[116].mxu0  ;;  %v5448_v43 = vpop.permute.xlu0 %5447 }
 0xaf0   : > { %v3813_v49 = vpop.f32.mrb[117].mxu0 }
 0xaf1   : > { %5402 = vrot.lane.b32.xlu1 %v9388_v38, %s6079_s24  ;;  %v5312_v24 = vpop.f32.mrb[118].mxu0  ;;  %v5409_v38 = vunpack.i.l.bf16 %v5408_v1 }
 0xaf2   : > { %v5451_v42 = vpack.i.bf16 %v5312_v24, %v5311_v59  ;;  %v3816_v36 = vpop.f32.mrb[119].mxu0  ;;  %v5420_v24 = vunpack.i.h.bf16 %v5418_v33 }
 0xaf3   : > { %v5436_v19 = vpack.i.bf16 %v3816_v36, %v3813_v49  ;;  %v9410_v36 = vld [vmem:[#allocation63_spill] sm:$0xff] }
 0xaf5   : > { %5412 = vrot.lane.b32.xlu1 %v5411_v20, %s6079_s24 }
 0xaf9   : > { %5422 = vrot.lane.b32.xlu1 %v9391_v2, %s6079_s24 }
 0xafd   : > { %5437 = vrot.lane.b32.xlu1 %v5436_v19, %s6079_s24 }
 0xb01   : > { %5442 = vrot.lane.b32.xlu1 %v9394_v48, %s6079_s24 }
 0xb05   : > { %5452 = vrot.lane.b32.xlu1 %v5451_v42, %s6079_s24  ;;  %v5419_v42 = vunpack.i.l.bf16 %v5418_v33 }
 0xb09   : > { %5462 = vrot.lane.b32.xlu1 %v9397_v47, %s6079_s24 }
 0xb25   : > { %v5315_v32 = vpop.f32.mrb[120].mxu0 }
 0xb26   : > { %v3829_v44 = vpop.f32.mrb[121].mxu0 }
 0xb27   : > { %v5316_v15 = vpop.f32.mrb[122].mxu0 }
 0xb28   : > { %v5491_v56 = vpack.i.bf16 %v5316_v15, %v5315_v32  ;;  %v3832_v26 = vpop.f32.mrb[123].mxu0 }
 0xb29   : > { %v5476_v4 = vpack.i.bf16 %v3832_v26, %v3829_v44  ;;  %v5429_v26 = vunpack.i.l.bf16 %v5428_v10 }
 0xb2b   : > { %5477 = vrot.lane.b32.xlu1 %v5476_v4, %s6079_s24  ;;  %v5435_v4 = vunpack.i.h.bf16 %v5433_v46 }
 0xb2d   : > { %v5319_v29 = vpop.f32.mrb[124].mxu0 }
 0xb2e   : > { %v3845_v18 = vpop.f32.mrb[125].mxu0 }
 0xb2f   : > { %5482 = vrot.lane.b32.xlu1 %v9400_v37, %s6079_s24  ;;  %v5320_v34 = vpop.f32.mrb[126].mxu0 }
 0xb30   : > { %v5531_v14 = vpack.i.bf16 %v5320_v34, %v5319_v29  ;;  %v3848_v13 = vpop.f32.mrb[127].mxu0  ;;  %v5434_v29 = vunpack.i.l.bf16 %v5433_v46  ;;  %v9427_v46 = vld [vmem:[#allocation61_spill] sm:$0xff] }
 0xb31   : > { %v5516_v12 = vpack.i.bf16 %v3848_v13, %v3845_v18  ;;  %v9418_v18 = vld [vmem:[#allocation64_spill] sm:$0xff] }
 0xb33   : > { %5492 = vrot.lane.b32.xlu1 %v5491_v56, %s6079_s24  ;;  %v5430_v56 = vunpack.i.h.bf16 %v5428_v10 }
 0xb37   : > { %5502 = vrot.lane.b32.xlu1 %v9403_v39, %s6079_s24 }
 0xb3b   : > { %5517 = vrot.lane.b32.xlu1 %v5516_v12, %s6079_s24 }
 0xb3f   : > { %5522 = vrot.lane.b32.xlu1 %v9406_v53, %s6079_s24 }
 0xb43   : > { %5532 = vrot.lane.b32.xlu1 %v5531_v14, %s6079_s24 }
 0xb5f   : > { %v5398_v35 = vpop.permute.xlu1 %5397 }
 0xb60   : > { %v5400_v6 = vunpack.i.h.bf16 %v5398_v35  ;;  %v5399_v40 = vunpack.i.l.bf16 %v5398_v35  ;;  %v5450_v35 = vunpack.i.h.bf16 %v5448_v43 }
 0xb62   : > { %v4166_v55 = vsel %vm9407_vm1, %v8246_v3, %v5400_v6  ;;  %v4165_v20 = vsel %vm9408_vm13, %v8242_v50, %v5399_v40  ;;  %vm9425_vm1 = vmmov %vm9303_vm0  ;;  %v5449_v6 = vunpack.i.l.bf16 %v5448_v43 }
 0xb63   : > { %v4182_v51 = vpack.c.bf16 %v4166_v55, %v4165_v20  ;;  %v5403_v59 = vpop.permute.xlu1 %5402  ;;  %vm9426_vm13 = vmmov %vm9413_vm2 }
 0xb64   : > { %v5405_v49 = vunpack.i.h.bf16 %v5403_v59  ;;  %v5404_v30 = vunpack.i.l.bf16 %v5403_v59  ;;  %v9429_v59 = vld [vmem:[#allocation60_spill] sm:$0xff] }
 0xb65   : > { %4733 = vmatprep.mubr.msk.bf16.mxu0 %vm9409_vm12, %v4182_v51  ;;  %vm9428_vm12 = vmmov %vm9303_vm0 }
 0xb66   : > { %v4119_v19 = vsel %vm9411_vm15, %v9410_v36, %v5405_v49  ;;  %v4118_v3 = vsel %vm9303_vm0, %v9412_v63, %v5404_v30  ;;  %4385 = vmatmul.mubr.bf16.vlgmr.msra.gmra.mrb[128].mxu0 %v4181_v23  ;;  %vm9430_vm15 = vmmov %vm9303_vm0 }
 0xb67   : > { %v5413_v50 = vpop.permute.xlu1 %5412  ;;  %v4134_v41 = vsel %vm9413_vm2, %v4118_v3, %v5409_v38  ;;  %v4135_v2 = vsel %vm9414_vm3, %v4119_v19, %v5410_v11  ;;  %vm9431_vm0 = vmmov %vm9413_vm2 }
 0xb68   : > { %v5415_v60 = vunpack.i.h.bf16 %v5413_v50  ;;  %v5414_v17 = vunpack.i.l.bf16 %v5413_v50  ;;  %v4151_v48 = vsel %vm4148_vm10, %v4134_v41, %v5419_v42  ;;  %v4152_v52 = vsel %vm4148_vm10, %v4135_v2, %v5420_v24  ;;  %vm9432_vm2 = vmmov %vm9431_vm0 }
 0xb69   : > { %v4183_v47 = vpack.c.bf16 %v4152_v52, %v4151_v48  ;;  %vm9433_vm3 = vmmov %vm9425_vm1 }
 0xb6a   : > { %v4168_v32 = vsel %vm9415_vm4, %v8244_v22, %v5415_v60  ;;  %v4167_v21 = vsel %vm9416_vm5, %v8240_v31, %v5414_v17  ;;  %v5458_v22 = vpop.permute.xlu0 %5457  ;;  %vm9434_vm4 = vmmov %vm9425_vm1 }
 0xb6b   : > { %v4184_v25 = vpack.c.bf16 %v4168_v32, %v4167_v21  ;;  %v5423_v23 = vpop.permute.xlu1 %5422  ;;  %v5460_v55 = vunpack.i.h.bf16 %v5458_v22  ;;  %v5459_v20 = vunpack.i.l.bf16 %v5458_v22  ;;  %vm9435_vm5 = vmmov %vm9431_vm0  ;;  %v9438_v21 = vld [vmem:[#allocation71_spill] sm:$0xff] }
 0xb6c   : > { %v5425_v44 = vunpack.i.h.bf16 %v5423_v23  ;;  %v5424_v15 = vunpack.i.l.bf16 %v5423_v23 }
 0xb6d   : > { %4734 = vmatprep.mubr.msk.bf16.mxu0 %vm9417_vm6, %v4184_v25  ;;  %vm9437_vm6 = vmmov %vm9425_vm1 }
 0xb6e   : > { %v4121_v45 = vsel %vm9419_vm7, %v9418_v18, %v5425_v44  ;;  %v4120_v37 = vsel %vm9421_vm8, %v9420_v62, %v5424_v15  ;;  %4395 = vmatmul.mubr.bf16.gmra.mrb[132].mxu0 %v4183_v47  ;;  %v5468_v40 = vpop.permute.xlu0 %5467  ;;  %v9436_v47 = vld [vmem:[#allocation76_spill] sm:$0xff]  ;;  %vm9439_vm7 = vmmov %vm9425_vm1 }
 0xb6f   : > { %v5438_v34 = vpop.permute.xlu1 %5437  ;;  %v4136_v31 = vsel %vm9422_vm9, %v4120_v37, %v5429_v26  ;;  %v4137_v14 = vsel %vm9423_vm11, %v4121_v45, %v5430_v56  ;;  %v5470_v17 = vunpack.i.h.bf16 %v5468_v40  ;;  %v5469_v48 = vunpack.i.l.bf16 %v5468_v40  ;;  %vm9440_vm8 = vmmov %vm9431_vm0 }
 0xb70   : > { %v5440_v13 = vunpack.i.h.bf16 %v5438_v34  ;;  %v5439_v12 = vunpack.i.l.bf16 %v5438_v34  ;;  %v4153_v5 = vsel %vm4148_vm10, %v4136_v31, %v5434_v29  ;;  %v4154_v9 = vsel %vm4148_vm10, %v4137_v14, %v5435_v4  ;;  %vm9441_vm9 = vmmov %vm9431_vm0 }
 0xb71   : > { %v4185_v39 = vpack.c.bf16 %v4154_v9, %v4153_v5  ;;  %vm9442_vm11 = vmmov %vm9425_vm1 }
 0xb72   : > { %v4170_v27 = vsel %vm9424_vm14, %v8254_v0, %v5440_v13  ;;  %v4169_v8 = vsel %vm9425_vm1, %v8250_v7, %v5439_v12  ;;  %v5473_v3 = vpop.permute.xlu0 %5472  ;;  %vm9443_vm14 = vmmov %vm9425_vm1 }
 0xb73   : > { %v4186_v53 = vpack.c.bf16 %v4170_v27, %v4169_v8  ;;  %v5443_v1 = vpop.permute.xlu1 %5442  ;;  %v5475_v52 = vunpack.i.h.bf16 %v5473_v3  ;;  %v5474_v43 = vunpack.i.l.bf16 %v5473_v3  ;;  %vm9444_vm1 = vmmov %vm9431_vm0  ;;  %v9447_v8 = vld [vmem:[#allocation62_spill] sm:$0xff] }
 0xb74   : > { %v5445_v33 = vunpack.i.h.bf16 %v5443_v1  ;;  %v5444_v10 = vunpack.i.l.bf16 %v5443_v1 }
 0xb75   : > { %4735 = vmatprep.mubr.msk.bf16.mxu0 %vm9426_vm13, %v4186_v53  ;;  %vm9446_vm13 = vmmov %vm9433_vm3 }
 0xb76   : > { %v4123_v51 = vsel %vm9428_vm12, %v9427_v46, %v5445_v33  ;;  %v4122_v0 = vsel %vm9430_vm15, %v9429_v59, %v5444_v10  ;;  %4405 = vmatmul.mubr.bf16.gmra.mrb[136].mxu0 %v4185_v39  ;;  %v5488_v56 = vpop.permute.xlu0 %5487  ;;  %v9445_v39 = vld [vmem:[#allocation14_spill] sm:$0xff]  ;;  %vm9448_vm12 = vmmov %vm9433_vm3 }
 0xb77   : > { %v5453_v49 = vpop.permute.xlu1 %5452  ;;  %v4138_v7 = vsel %vm9431_vm0, %v4122_v0, %v5449_v6  ;;  %v4139_v30 = vsel %vm9432_vm2, %v4123_v51, %v5450_v35  ;;  %v5490_v13 = vunpack.i.h.bf16 %v5488_v56  ;;  %v5489_v12 = vunpack.i.l.bf16 %v5488_v56  ;;  %vm9449_vm15 = vmmov %vm9431_vm0 }
 0xb78   : > { %v5455_v11 = vunpack.i.h.bf16 %v5453_v49  ;;  %v5454_v38 = vunpack.i.l.bf16 %v5453_v49  ;;  %v4155_v24 = vsel %vm4148_vm10, %v4138_v7, %v5459_v20  ;;  %v4156_v42 = vsel %vm4148_vm10, %v4139_v30, %v5460_v55  ;;  %vm9450_vm2 = vmmov %vm9433_vm3 }
 0xb79   : > { %v4187_v36 = vpack.c.bf16 %v4156_v42, %v4155_v24  ;;  %v9453_v42 = vld [vmem:[#allocation12_spill] sm:$0xff] }
 0xb7a   : > { %v4172_v19 = vsel %vm9433_vm3, %v8252_v54, %v5455_v11  ;;  %v4171_v63 = vsel %vm9434_vm4, %v8248_v16, %v5454_v38  ;;  %v5498_v26 = vpop.permute.xlu0 %5497  ;;  %vm9451_vm3 = vmmov %vm9450_vm2 }
 0xb7b   : > { %v4188_v50 = vpack.c.bf16 %v4172_v19, %v4171_v63  ;;  %v5463_v41 = vpop.permute.xlu1 %5462  ;;  %v5500_v5 = vunpack.i.h.bf16 %v5498_v26  ;;  %v5499_v9 = vunpack.i.l.bf16 %v5498_v26  ;;  %vm9452_vm4 = vmmov %vm9431_vm0  ;;  %v9455_v19 = vld [vmem:[#allocation73_spill] sm:$0xff]  ;;  %v9464_v26 = vld [vmem:[#allocation8_spill] sm:$0xff] }
 0xb7c   : > { %v5465_v2 = vunpack.i.h.bf16 %v5463_v41  ;;  %v5464_v60 = vunpack.i.l.bf16 %v5463_v41 }
 0xb7d   : > { %4736 = vmatprep.mubr.msk.bf16.mxu0 %vm9435_vm5, %v4188_v50  ;;  %vm9454_vm5 = vmmov %vm9450_vm2 }
 0xb7e   : > { %v4125_v32 = vsel %vm9437_vm6, %v9436_v47, %v5465_v2  ;;  %v4124_v54 = vsel %vm9439_vm7, %v9438_v21, %v5464_v60  ;;  %4415 = vmatmul.mubr.bf16.gmra.mrb[140].mxu0 %v4187_v36  ;;  %v5508_v45 = vpop.permute.xlu0 %5507  ;;  %vm9456_vm6 = vmmov %vm9450_vm2 }
 0xb7f   : > { %v4140_v16 = vsel %vm9440_vm8, %v4124_v54, %v5469_v48  ;;  %v4141_v25 = vsel %vm9441_vm9, %v4125_v32, %v5470_v17  ;;  %v5510_v7 = vunpack.i.h.bf16 %v5508_v45  ;;  %v5509_v30 = vunpack.i.l.bf16 %v5508_v45  ;;  %vm9457_vm7 = vmmov %vm9431_vm0  ;;  %v9459_v48 = vld [vmem:[#allocation30_spill] sm:$0xff] }
 0xb80   : > { %v4157_v23 = vsel %vm4148_vm10, %v4140_v16, %v5474_v43  ;;  %v4158_v44 = vsel %vm4148_vm10, %v4141_v25, %v5475_v52  ;;  %vm9458_vm8 = vmmov %vm9431_vm0  ;;  %v9461_v43 = vld [vmem:[#allocation28_spill] sm:$0xff] }
 0xb81   : > { %v4189_v15 = vpack.c.bf16 %v4158_v44, %v4157_v23  ;;  %vm9460_vm9 = vmmov %vm9450_vm2 }
 0xb9d   : > { %v5478_v4 = vpop.permute.xlu1 %5477 }
 0xb9e   : > { %v5480_v29 = vunpack.i.h.bf16 %v5478_v4  ;;  %v5479_v18 = vunpack.i.l.bf16 %v5478_v4 }
 0xba0   : > { %v4174_v62 = vsel %vm9442_vm11, %v8262_v57, %v5480_v29  ;;  %v4173_v37 = vsel %vm9443_vm14, %v8258_v58, %v5479_v18  ;;  %v5513_v57 = vpop.permute.xlu0 %5512  ;;  %vm9462_vm11 = vmmov %vm9450_vm2  ;;  %v9466_v29 = vld [vmem:[#allocation2_spill] sm:$0xff] }
 0xba1   : > { %v4190_v22 = vpack.c.bf16 %v4174_v62, %v4173_v37  ;;  %v5483_v34 = vpop.permute.xlu1 %5482  ;;  %v5515_v38 = vunpack.i.h.bf16 %v5513_v57  ;;  %v5514_v24 = vunpack.i.l.bf16 %v5513_v57  ;;  %vm9463_vm14 = vmmov %vm9431_vm0  ;;  %v295_v57 = vld [vmem:[%s8798_s3] sm:$0x3] }
 0xba2   : > { %v5485_v31 = vunpack.i.h.bf16 %v5483_v34  ;;  %v5484_v14 = vunpack.i.l.bf16 %v5483_v34 }
 0xba3   : > { %4737 = vmatprep.mubr.msk.bf16.mxu0 %vm9444_vm1, %v4190_v22  ;;  %vm9465_vm1 = vmmov %vm9450_vm2 }
 0xba4   : > { %v4127_v27 = vsel %vm9446_vm13, %v9445_v39, %v5485_v31  ;;  %v4126_v53 = vsel %vm9448_vm12, %v9447_v8, %v5484_v14  ;;  %4425 = vmatmul.mubr.bf16.gmra.mrb[144].mxu0 %v4189_v15  ;;  %v5528_v11 = vpop.permute.xlu0 %5527  ;;  %vm9467_vm13 = vmmov %vm9465_vm1  ;;  %v9475_v8 = vld [vmem:[#allocation42_spill] sm:$0xff] }
 0xba5   : > { %v5493_v1 = vpop.permute.xlu1 %5492  ;;  %v4142_v58 = vsel %vm9449_vm15, %v4126_v53, %v5489_v12  ;;  %v4143_v33 = vsel %vm9431_vm0, %v4127_v27, %v5490_v13  ;;  %v5530_v23 = vunpack.i.h.bf16 %v5528_v11  ;;  %v5529_v44 = vunpack.i.l.bf16 %v5528_v11  ;;  %vm9468_vm12 = vmmov %vm9431_vm0  ;;  %v9470_v12 = vld [vmem:[#allocation26_spill] sm:$0xff] }
 0xba6   : > { %v5495_v10 = vunpack.i.h.bf16 %v5493_v1  ;;  %v5494_v35 = vunpack.i.l.bf16 %v5493_v1  ;;  %v4159_v6 = vsel %vm4148_vm10, %v4142_v58, %v5499_v9  ;;  %v4160_v40 = vsel %vm4148_vm10, %v4143_v33, %v5500_v5  ;;  %vm9469_vm15 = vmmov %vm9431_vm0  ;;  %v9472_v9 = vld [vmem:[#allocation23_spill] sm:$0xff] }
 0xba7   : > { %v4191_v55 = vpack.c.bf16 %v4160_v40, %v4159_v6  ;;  %vm9471_vm0 = vmmov %vm9465_vm1  ;;  %v4200_v53 = vsub.s32 0, %v9475_v8  ;;  %v4204_v1 = vsub.s32 1, %v9475_v8 }
 0xba8   : > { %v4176_v20 = vsel %vm9450_vm2, %v8260_v61, %v5495_v10  ;;  %v4175_v46 = vsel %vm9451_vm3, %v8256_v28, %v5494_v35  ;;  %v5538_v32 = vpop.permute.xlu0 %5537  ;;  %vm9473_vm2 = vmmov %vm9471_vm0 }
 0xba9   : > { %v4192_v51 = vpack.c.bf16 %v4176_v20, %v4175_v46  ;;  %v5503_v59 = vpop.permute.xlu1 %5502  ;;  %v5540_v15 = vunpack.i.h.bf16 %v5538_v32  ;;  %v5539_v56 = vunpack.i.l.bf16 %v5538_v32  ;;  %vm9474_vm3 = vmmov %vm9452_vm4  ;;  %v8703_v58 = vrot.slane %v295_v57, %v4200_v53 }
 0xbaa   : > { %v5505_v0 = vunpack.i.h.bf16 %v5503_v59  ;;  %v5504_v49 = vunpack.i.l.bf16 %v5503_v59  ;;  %v8705_v33 = vrot.slane %v295_v57, %v4204_v1 }
 0xbab   : > { %4738 = vmatprep.mubr.msk.bf16.mxu0 %vm9452_vm4, %v4192_v51  ;;  %vm9477_vm4 = vmmov %vm9474_vm3 }
 0xbac   : > { %v4129_v36 = vsel %vm9454_vm5, %v9453_v42, %v5505_v0  ;;  %v4128_v61 = vsel %vm9456_vm6, %v9455_v19, %v5504_v49  ;;  %4435 = vmatmul.mubr.bf16.gmra.mrb[148].mxu0 %v4191_v55  ;;  %vm9478_vm5 = vmmov %vm9474_vm3 }
 0xbad   : > { %v5518_v63 = vpop.permute.xlu1 %5517  ;;  %v4144_v28 = vsel %vm9457_vm7, %v4128_v61, %v5509_v30  ;;  %v4145_v3 = vsel %vm9458_vm8, %v4129_v36, %v5510_v7  ;;  %vm9479_vm6 = vmmov %vm9474_vm3 }
 0xbae   : > { %v5520_v50 = vunpack.i.h.bf16 %v5518_v63  ;;  %v5519_v41 = vunpack.i.l.bf16 %v5518_v63  ;;  %v4161_v2 = vsel %vm4148_vm10, %v4144_v28, %v5514_v24  ;;  %v4162_v60 = vsel %vm4148_vm10, %v4145_v3, %v5515_v38  ;;  %vm9480_vm7 = vmmov %vm9474_vm3 }
 0xbaf   : > { %v4193_v17 = vpack.c.bf16 %v4162_v60, %v4161_v2  ;;  %vm9481_vm8 = vmmov %vm9474_vm3 }
 0xbb0   : > { %v4178_v52 = vsel %vm9460_vm9, %v9459_v48, %v5520_v50  ;;  %v4177_v47 = vsel %vm9462_vm11, %v9461_v43, %v5519_v41  ;;  %vm9482_vm9 = vmmov %vm9474_vm3 }
 0xbb1   : > { %v4194_v21 = vpack.c.bf16 %v4178_v52, %v4177_v47  ;;  %v5523_v54 = vpop.permute.xlu1 %5522  ;;  %vm9483_vm11 = vmmov %vm9474_vm3 }
 0xbb2   : > { %v5525_v16 = vunpack.i.h.bf16 %v5523_v54  ;;  %v5524_v25 = vunpack.i.l.bf16 %v5523_v54 }
 0xbb3   : > { %4739 = vmatprep.mubr.msk.bf16.mxu0 %vm9463_vm14, %v4194_v21  ;;  %vm9484_vm14 = vmmov %vm9474_vm3 }
 0xbb4   : > { %v4131_v4 = vsel %vm9465_vm1, %v9464_v26, %v5525_v16  ;;  %v4130_v18 = vsel %vm9467_vm13, %v9466_v29, %v5524_v25  ;;  %4445 = vmatmul.mubr.bf16.gmra.mrb[152].mxu0 %v4193_v17  ;;  %vm9485_vm1 = vmmov %vm9474_vm3 }
 0xbb5   : > { %v5533_v45 = vpop.permute.xlu1 %5532  ;;  %v4146_v62 = vsel %vm9468_vm12, %v4130_v18, %v5529_v44  ;;  %v4147_v37 = vsel %vm9469_vm15, %v4131_v4, %v5530_v23  ;;  %vm9486_vm13 = vmmov %vm9485_vm1 }
 0xbb6   : > { %v5535_v22 = vunpack.i.h.bf16 %v5533_v45  ;;  %v5534_v34 = vunpack.i.l.bf16 %v5533_v45  ;;  %v4163_v31 = vsel %vm4148_vm10, %v4146_v62, %v5539_v56  ;;  %v4164_v14 = vsel %vm4148_vm10, %v4147_v37, %v5540_v15  ;;  %vm9476_vm10 = vmmov %vm9474_vm3 }
 0xbb7   : > { %v4195_v13 = vpack.c.bf16 %v4164_v14, %v4163_v31  ;;  %vm9487_vm12 = vmmov %vm9485_vm1 }
 0xbb8   : > { %v4180_v5 = vsel %vm9471_vm0, %v9470_v12, %v5535_v22  ;;  %v4179_v39 = vsel %vm9473_vm2, %v9472_v9, %v5534_v34  ;;  %vm9488_vm15 = vmmov %vm9485_vm1 }
 0xbb9   : > { %v4196_v27 = vpack.c.bf16 %v4180_v5, %v4179_v39  ;;  %vm9489_vm0 = vmmov %vm9485_vm1 }
 0xbba   : > { %vm9490_vm2 = vmmov %vm9489_vm0 }
 0xbbb   : > { %4740 = vmatprep.mubr.msk.bf16.mxu0 %vm9474_vm3, %v4196_v27  ;;  %vm9491_vm3 = vmmov %vm9489_vm0 }
 0xbbc   : > { %4455 = vmatmul.mubr.bf16.gmra.mrb[156].mxu0 %v4195_v13 }
 0xc39   : > { %v4386_v10 = vpop.f32.mrb[128].mxu0 }
 0xc3a   : > { %v4387_v35 = vadd.f32 %v4386_v10, %v8703_v58  ;;  %v4388_v6 = vpop.f32.mrb[129].mxu0 }
 0xc3b   : > { %v4389_v40 = vadd.f32 %v4388_v6, %v8705_v33  ;;  %v4390_v55 = vpop.f32.mrb[130].mxu0 }
 0xc3c   : > { %4465 = vst [vmem:[%s8710_s6] sm:$0xff] %v4387_v35  ;;  %v4391_v20 = vadd.f32 %v4390_v55, %v8703_v58  ;;  %v4392_v46 = vpop.f32.mrb[131].mxu0 }
 0xc3d   : > { %4466 = vst.msk [vmem:[%s8710_s6 + $0x8] sm:$0xff] %vm9476_vm10, %v4389_v40  ;;  %v4393_v51 = vadd.f32 %v4392_v46, %v8705_v33 }
 0xc3e   : > { %4467 = vst [vmem:[%s8710_s6 + $0x10] sm:$0xff] %v4391_v20 }
 0xc3f   : > { %4468 = vst.msk [vmem:[%s8710_s6 + $0x18] sm:$0xff] %vm9477_vm4, %v4393_v51 }
 0xc41   : > { %v4396_v59 = vpop.f32.mrb[132].mxu0 }
 0xc42   : > { %v4397_v0 = vadd.f32 %v4396_v59, %v8703_v58  ;;  %v4398_v49 = vpop.f32.mrb[133].mxu0 }
 0xc43   : > { %v4399_v7 = vadd.f32 %v4398_v49, %v8705_v33  ;;  %v4400_v30 = vpop.f32.mrb[134].mxu0 }
 0xc44   : > { %4469 = vst [vmem:[%s8710_s6 + $0x20] sm:$0xff] %v4397_v0  ;;  %v4401_v11 = vadd.f32 %v4400_v30, %v8703_v58  ;;  %v4402_v38 = vpop.f32.mrb[135].mxu0 }
 0xc45   : > { %4470 = vst.msk [vmem:[%s8710_s6 + $0x28] sm:$0xff] %vm9478_vm5, %v4399_v7  ;;  %v4403_v24 = vadd.f32 %v4402_v38, %v8705_v33 }
 0xc46   : > { %4471 = vst [vmem:[%s8710_s6 + $0x30] sm:$0xff] %v4401_v11 }
 0xc47   : > { %4472 = vst.msk [vmem:[%s8710_s6 + $0x38] sm:$0xff] %vm9479_vm6, %v4403_v24 }
 0xc49   : > { %v4406_v42 = vpop.f32.mrb[136].mxu0 }
 0xc4a   : > { %v4407_v36 = vadd.f32 %v4406_v42, %v8703_v58  ;;  %v4408_v19 = vpop.f32.mrb[137].mxu0 }
 0xc4b   : > { %v4409_v61 = vadd.f32 %v4408_v19, %v8705_v33  ;;  %v4410_v63 = vpop.f32.mrb[138].mxu0 }
 0xc4c   : > { %4473 = vst [vmem:[%s8710_s6 + $0x40] sm:$0xff] %v4407_v36  ;;  %v4411_v28 = vadd.f32 %v4410_v63, %v8703_v58  ;;  %v4412_v3 = vpop.f32.mrb[139].mxu0 }
 0xc4d   : > { %4474 = vst.msk [vmem:[%s8710_s6 + $0x48] sm:$0xff] %vm9480_vm7, %v4409_v61  ;;  %v4413_v50 = vadd.f32 %v4412_v3, %v8705_v33 }
 0xc4e   : > { %4475 = vst [vmem:[%s8710_s6 + $0x50] sm:$0xff] %v4411_v28 }
 0xc4f   : > { %4476 = vst.msk [vmem:[%s8710_s6 + $0x58] sm:$0xff] %vm9481_vm8, %v4413_v50 }
 0xc51   : > { %v4416_v41 = vpop.f32.mrb[140].mxu0 }
 0xc52   : > { %v4417_v2 = vadd.f32 %v4416_v41, %v8703_v58  ;;  %v4418_v60 = vpop.f32.mrb[141].mxu0 }
 0xc53   : > { %v4419_v17 = vadd.f32 %v4418_v60, %v8705_v33  ;;  %v4420_v48 = vpop.f32.mrb[142].mxu0 }
 0xc54   : > { %4477 = vst [vmem:[%s8710_s6 + $0x60] sm:$0xff] %v4417_v2  ;;  %v4421_v52 = vadd.f32 %v4420_v48, %v8703_v58  ;;  %v4422_v43 = vpop.f32.mrb[143].mxu0 }
 0xc55   : > { %4478 = vst.msk [vmem:[%s8710_s6 + $0x68] sm:$0xff] %vm9482_vm9, %v4419_v17  ;;  %v4423_v47 = vadd.f32 %v4422_v43, %v8705_v33 }
 0xc56   : > { %4479 = vst [vmem:[%s8710_s6 + $0x70] sm:$0xff] %v4421_v52 }
 0xc57   : > { %4480 = vst.msk [vmem:[%s8710_s6 + $0x78] sm:$0xff] %vm9483_vm11, %v4423_v47 }
 0xc77   : > { %v4426_v32 = vpop.f32.mrb[144].mxu0 }
 0xc78   : > { %v4427_v21 = vadd.f32 %v4426_v32, %v8703_v58  ;;  %v4428_v54 = vpop.f32.mrb[145].mxu0 }
 0xc79   : > { %v4429_v16 = vadd.f32 %v4428_v54, %v8705_v33  ;;  %v4430_v25 = vpop.f32.mrb[146].mxu0 }
 0xc7a   : > { %4481 = vst [vmem:[%s8710_s6 + $0x80] sm:$0xff] %v4427_v21  ;;  %v4431_v23 = vadd.f32 %v4430_v25, %v8703_v58  ;;  %v4432_v44 = vpop.f32.mrb[147].mxu0 }
 0xc7b   : > { %4482 = vst.msk [vmem:[%s8710_s6 + $0x88] sm:$0xff] %vm9484_vm14, %v4429_v16  ;;  %v4433_v15 = vadd.f32 %v4432_v44, %v8705_v33 }
 0xc7c   : > { %4483 = vst [vmem:[%s8710_s6 + $0x90] sm:$0xff] %v4431_v23 }
 0xc7d   : > { %4484 = vst.msk [vmem:[%s8710_s6 + $0x98] sm:$0xff] %vm9485_vm1, %v4433_v15 }
 0xc7f   : > { %v4436_v56 = vpop.f32.mrb[148].mxu0 }
 0xc80   : > { %v4437_v26 = vadd.f32 %v4436_v56, %v8703_v58  ;;  %v4438_v4 = vpop.f32.mrb[149].mxu0 }
 0xc81   : > { %v4439_v29 = vadd.f32 %v4438_v4, %v8705_v33  ;;  %v4440_v18 = vpop.f32.mrb[150].mxu0 }
 0xc82   : > { %4485 = vst [vmem:[%s8710_s6 + $0xa0] sm:$0xff] %v4437_v26  ;;  %v4441_v45 = vadd.f32 %v4440_v18, %v8703_v58  ;;  %v4442_v62 = vpop.f32.mrb[151].mxu0 }
 0xc83   : > { %4486 = vst.msk [vmem:[%s8710_s6 + $0xa8] sm:$0xff] %vm9486_vm13, %v4439_v29  ;;  %v4443_v37 = vadd.f32 %v4442_v62, %v8705_v33 }
 0xc84   : > { %4487 = vst [vmem:[%s8710_s6 + $0xb0] sm:$0xff] %v4441_v45 }
 0xc85   : > { %4488 = vst.msk [vmem:[%s8710_s6 + $0xb8] sm:$0xff] %vm9487_vm12, %v4443_v37 }
 0xc87   : > { %v4446_v22 = vpop.f32.mrb[152].mxu0 }
 0xc88   : > { %v4447_v34 = vadd.f32 %v4446_v22, %v8703_v58  ;;  %v4448_v31 = vpop.f32.mrb[153].mxu0 }
 0xc89   : > { %v4449_v14 = vadd.f32 %v4448_v31, %v8705_v33  ;;  %v4450_v13 = vpop.f32.mrb[154].mxu0 }
 0xc8a   : > { %4489 = vst [vmem:[%s8710_s6 + $0xc0] sm:$0xff] %v4447_v34  ;;  %v4451_v12 = vadd.f32 %v4450_v13, %v8703_v58  ;;  %v4452_v5 = vpop.f32.mrb[155].mxu0 }
 0xc8b   : > { %4490 = vst.msk [vmem:[%s8710_s6 + $0xc8] sm:$0xff] %vm9488_vm15, %v4449_v14  ;;  %v4453_v9 = vadd.f32 %v4452_v5, %v8705_v33 }
 0xc8c   : > { %4491 = vst [vmem:[%s8710_s6 + $0xd0] sm:$0xff] %v4451_v12 }
 0xc8d   : > { %4492 = vst.msk [vmem:[%s8710_s6 + $0xd8] sm:$0xff] %vm9489_vm0, %v4453_v9 }
 0xc8f   : > { %v4456_v39 = vpop.f32.mrb[156].mxu0 }
 0xc90   : > { %v4457_v27 = vadd.f32 %v4456_v39, %v8703_v58  ;;  %v4458_v8 = vpop.f32.mrb[157].mxu0 }
 0xc91   : > { %v4459_v53 = vadd.f32 %v4458_v8, %v8705_v33  ;;  %v4460_v57 = vpop.f32.mrb[158].mxu0 }
 0xc92   : > { %4493 = vst [vmem:[%s8710_s6 + $0xe0] sm:$0xff] %v4457_v27  ;;  %v4461_v1 = vadd.f32 %v4460_v57, %v8703_v58  ;;  %v4462_v10 = vpop.f32.mrb[159].mxu0 }
 0xc93   : > { %4494 = vst.msk [vmem:[%s8710_s6 + $0xe8] sm:$0xff] %vm9490_vm2, %v4459_v53  ;;  %v4463_v35 = vadd.f32 %v4462_v10, %v8705_v33 }
 0xc94   : > { %4495 = vst [vmem:[%s8710_s6 + $0xf0] sm:$0xff] %v4461_v1 }
 0xc95   : > { %4496 = vst.msk [vmem:[%s8710_s6 + $0xf8] sm:$0xff] %vm9491_vm3, %v4463_v35 }
 0xc96 PF: > { %s14_s15 = sadd.s32 1, %s6075_s15  }
 0xc97   : > { %p11_p4 = scmp.ge.s32.totalorder %s14_s15, 4  }
 0xc99   :  { %13 = sbr.rel (!%p11_p4) target bundleno = 1 (0x1), region = 66 }

</bundles_post_ra>
